<compile_context>
chip_gen: v6e
topology: v6e:2x2x1
jax: 0.10.0
libtpu: 0.0.40
codegen_flags: <defaults>
</compile_context>

<pallas_src>
import math

import jax
import jax.numpy as jnp
from jax.experimental import pallas as pl
from jax.experimental.pallas import tpu as pltpu

MAX_ROW_TILE = 1024
BN_EVAL_SCALE = 1.0 / math.sqrt(1.0 + 1e-5)   # BatchNorm1d eval w/ default stats
LN_EPS = 1e-5

# "parallel" lets the runtime shard row tiles across TensorCores where
# available (v7x has 2 TCs); no-op on single-TC v5e/v6e.
_CPARAMS = pltpu.CompilerParams(
    dimension_semantics=("parallel",),
    vmem_limit_bytes=48 * 1024 * 1024,
)


# ----------------------------------------------------------------------------
# Helpers
# ----------------------------------------------------------------------------
def _round_up(n, m):
    return -(-n // m) * m


def _row_tile(n):
    # round to 16 rows (bf16 sublane packing); cap at MAX_ROW_TILE
    return min(MAX_ROW_TILE, _round_up(max(int(n), 1), 16))


def _pad_rows_to(x, n_pad):
    n = x.shape[0]
    if n_pad != n:
        x = jnp.pad(x, ((0, n_pad - n), (0, 0)))
    return x


def _row_spec(tile, width):
    return pl.BlockSpec((tile, width), lambda i: (i, 0))


def _rep_spec(shape):
    return pl.BlockSpec(shape, lambda i: (0, 0))


def _bf16(w):
    return w.astype(jnp.bfloat16)


def _rowvec(b):
    return b.reshape(1, -1).astype(jnp.float32)


def _dot(x, w):
    # bf16 MXU operands, f32 accumulation
    return jnp.dot(x.astype(jnp.bfloat16), w, preferred_element_type=jnp.float32)


def _f32dot(x, w):
    return jnp.dot(x, w, preferred_element_type=jnp.float32)


def _silu(x):
    return x * jax.nn.sigmoid(x)


def _ln(x, g, b):
    mu = jnp.mean(x, axis=-1, keepdims=True)
    xc = x - mu
    var = jnp.mean(xc * xc, axis=-1, keepdims=True)
    return xc * jax.lax.rsqrt(var + LN_EPS) * g + b


# ----------------------------------------------------------------------------
# Generic fused kernels
# ----------------------------------------------------------------------------
def linear_pallas(x, w, b, act="none", out_dtype=jnp.float32):
    """y = act(x @ w + b) in a single row-tiled kernel (bf16 MXU)."""
    x = x.astype(jnp.float32)
    n, k = x.shape
    dout = w.shape[1]
    tile = _row_tile(n)
    n_pad = _round_up(n, tile)
    xp = _pad_rows_to(x, n_pad)

    def kernel(x_ref, w_ref, b_ref, o_ref):
        y = _dot(x_ref[...], w_ref[...]) + b_ref[...]
        if act == "silu":
            y = _silu(y)
        o_ref[...] = y.astype(o_ref.dtype)

    out = pl.pallas_call(
        kernel,
        out_shape=jax.ShapeDtypeStruct((n_pad, dout), out_dtype),
        grid=(n_pad // tile,),
        in_specs=[_row_spec(tile, k), _rep_spec((k, dout)), _rep_spec((1, dout))],
        out_specs=_row_spec(tile, dout),
        compiler_params=_CPARAMS,
    )(xp, _bf16(w), _rowvec(b))
    return out[:n]


def mlp2_pallas(x, w1, b1, w2, b2, use_bf16=True):
    """y = (silu(x @ w1 + b1)) @ w2 + b2, fused kernel."""
    x = x.astype(jnp.float32)
    n, k = x.shape
    dh = w1.shape[1]
    dout = w2.shape[1]
    tile = _row_tile(n)
    n_pad = _round_up(n, tile)
    xp = _pad_rows_to(x, n_pad)
    dot = _dot if use_bf16 else _f32dot
    wcast = _bf16 if use_bf16 else (lambda w: w.astype(jnp.float32))

    def kernel(x_ref, w1_ref, b1_ref, w2_ref, b2_ref, o_ref):
        h = _silu(dot(x_ref[...], w1_ref[...]) + b1_ref[...])
        o_ref[...] = dot(h, w2_ref[...]) + b2_ref[...]

    out = pl.pallas_call(
        kernel,
        out_shape=jax.ShapeDtypeStruct((n_pad, dout), jnp.float32),
        grid=(n_pad // tile,),
        in_specs=[_row_spec(tile, k),
                  _rep_spec((k, dh)), _rep_spec((1, dh)),
                  _rep_spec((dh, dout)), _rep_spec((1, dout))],
        out_specs=_row_spec(tile, dout),
        compiler_params=_CPARAMS,
    )(xp, wcast(w1), _rowvec(b1), wcast(w2), _rowvec(b2))
    return out[:n]


# ----------------------------------------------------------------------------
# Module-level forward functions (fused Pallas kernels + JAX glue)
# ----------------------------------------------------------------------------
def atom_encoder_fwd(atomic_numbers, megnet_embed, p, D):
    """Fully fused AtomEncoder: meg proj + gate fuse + Linear/SiLU/LN/Linear."""
    emb = p["emb_table"][atomic_numbers].astype(jnp.float32)        # [N, D]
    meg_in = megnet_embed.astype(jnp.float32)                       # [N, 16]
    n = emb.shape[0]
    din = meg_in.shape[1]
    tile = _row_tile(n)
    n_pad = _round_up(n, tile)
    emb_p = _pad_rows_to(emb, n_pad)
    meg_p = _pad_rows_to(meg_in, n_pad)

    def kernel(e_ref, m_ref, wmeg_ref, wstk_ref, vec_ref, o_ref):
        vec = vec_ref[...]                                     # [6, D] stacked
        e = e_ref[...]
        meg = _dot(m_ref[...], wmeg_ref[...]) + vec[0:1, :]
        z = (_dot(e, wstk_ref[0:D, :]) + _dot(meg, wstk_ref[D:2 * D, :])
             + vec[1:2, :])
        g = jax.nn.sigmoid(z)
        fused = g * e + (1.0 - g) * meg
        h = _silu(_dot(fused, wstk_ref[2 * D:3 * D, :]) + vec[2:3, :])
        h = _ln(h, vec[3:4, :], vec[4:5, :])
        o_ref[...] = _dot(h, wstk_ref[3 * D:4 * D, :]) + vec[5:6, :]  # dropout=id

    out = pl.pallas_call(
        kernel,
        out_shape=jax.ShapeDtypeStruct((n_pad, D), jnp.float32),
        grid=(n_pad // tile,),
        in_specs=[_row_spec(tile, D), _row_spec(tile, din),
                  _rep_spec((din, D)), _rep_spec((4 * D, D)), _rep_spec((6, D))],
        out_specs=_row_spec(tile, D),
        compiler_params=_CPARAMS,
    )(emb_p, meg_p, p["w_meg"], p["w_stack"], p["vecs"])
    return out[:n]


def rbf_fwd(edge_dist, p, gamma):
    """Fused Gaussian RBF expansion + Linear/SiLU/Linear."""
    e = edge_dist.shape[0]
    d = edge_dist.astype(jnp.float32).reshape(e, 1)
    centers = p["centers"]                                   # [1, EF]
    ef = centers.shape[1]
    dh = p["w1"].shape[1]
    dout = p["w2"].shape[1]
    tile = _row_tile(e)
    e_pad = _round_up(e, tile)
    dp = _pad_rows_to(d, e_pad)

    def kernel(d_ref, c_ref, w1, b1, w2, b2, o_ref):
        diff = d_ref[...] - c_ref[...]
        ex = jnp.exp(-gamma * diff * diff)
        h = _silu(_dot(ex, w1[...]) + b1[...])
        o_ref[...] = _dot(h, w2[...]) + b2[...]

    out = pl.pallas_call(
        kernel,
        out_shape=jax.ShapeDtypeStruct((e_pad, dout), jnp.float32),
        grid=(e_pad // tile,),
        in_specs=[_row_spec(tile, 1), _rep_spec((1, ef)),
                  _rep_spec((ef, dh)), _rep_spec((1, dh)),
                  _rep_spec((dh, dout)), _rep_spec((1, dout))],
        out_specs=_row_spec(tile, dout),
        compiler_params=_CPARAMS,
    )(dp, centers, p["w1"], p["b1"], p["w2"], p["b2"])
    return out[:e]


def edge_messages_fwd(has_cart, has_mat, D, H, C, radius,
                      xcat=None, dist=None, cp=None,
                      qkv_i=None, qkv_j=None, ea=None, mp=None):
    """One fused per-edge kernel producing CartNet and/or Matformer messages.

    CartNet: fused gate+aggr MLPs ((96,64) + block-diag (64,64) weights) +
    cosine-cutoff envelope. Matformer: head-batched lane-dense message pipeline
    (block-diagonal 384-wide weights, LN stats via constant block-diag matmuls).
    """
    # TODO(synk): CartNet_layer / MatformerConv sources not provided; matching
    # the previously validated reference implementations (gated message passing
    # + envelope; Matformer concat=False/beta=True message pipeline).
    HC = H * C
    inv_s = 1.0 / math.sqrt(3.0 * C)
    E = (xcat if has_cart else qkv_i).shape[0]
    tile = _row_tile(E)
    e_pad = _round_up(E, tile)

    inputs, specs = [], []
    if has_cart:
        inputs += [_pad_rows_to(xcat, e_pad), _pad_rows_to(dist, e_pad),
                   cp["w1"], cp["w2"], cp["bvec"]]
        specs += [_row_spec(tile, 3 * D), _row_spec(tile, 1),
                  _rep_spec((3 * D, 2 * D)), _rep_spec((2 * D, 2 * D)),
                  _rep_spec((2, 2 * D))]
    if has_mat:
        inputs += [_pad_rows_to(qkv_i, e_pad), _pad_rows_to(qkv_j, e_pad)]
        specs += [_row_spec(tile, 3 * HC), _row_spec(tile, 3 * HC)]
        if not has_cart:
            inputs += [_pad_rows_to(ea, e_pad)]
            specs += [_row_spec(tile, D)]
        inputs += [mp["we"], mp["Wmu"], mp["bmu"], mp["Wm"], mp["vecs"],
                   mp["B1"], mp["B2"]]
        specs += [_rep_spec((D, HC)), _rep_spec((3 * HC, 3 * HC)),
                  _rep_spec((1, 3 * HC)), _rep_spec((3 * HC, HC)),
                  _rep_spec((10, HC)), _rep_spec((HC, HC)), _rep_spec((HC, HC))]

    out_shapes, out_specs = [], []
    if has_cart:
        out_shapes.append(jax.ShapeDtypeStruct((e_pad, D), jnp.bfloat16))
        out_specs.append(_row_spec(tile, D))
    if has_mat:
        out_shapes.append(jax.ShapeDtypeStruct((e_pad, HC), jnp.bfloat16))
        out_specs.append(_row_spec(tile, HC))
    n_out = len(out_shapes)

    def kernel(*refs):
        in_refs = refs[:-n_out]
        out_refs = refs[-n_out:]
        it = iter(in_refs)
        if has_cart:
            xcat_r = next(it)
            dist_r = next(it)
            cw1_r = next(it)
            cw2_r = next(it)
            cbv_r = next(it)
        if has_mat:
            qi_r = next(it)
            qj_r = next(it)
            ea_r = None if has_cart else next(it)
            we_r = next(it)
            wmu_r = next(it)
            bmu_r = next(it)
            wm_r = next(it)
            vec_r = next(it)
            b1_r = next(it)
            b2_r = next(it)

        oi = iter(out_refs)
        xc = xcat_r[...] if has_cart else None               # bf16 [T, 3D]

        if has_cart:
            cbv = cbv_r[...]                                 # [2, 2D] biases
            h1 = _silu(_dot(xc, cw1_r[...]) + cbv[0:1, :])
            h2 = _dot(h1, cw2_r[...]) + cbv[1:2, :]          # [gate | aggr]
            gate_pre = h2[:, 0:D] * BN_EVAL_SCALE            # BN eval fold
            aggr_msg = h2[:, D:2 * D]
            dd = dist_r[...]
            env = 0.5 * (jnp.cos(math.pi * dd / radius) + 1.0)
            env = env * (dd <= radius).astype(jnp.float32)
            next(oi)[...] = (jax.nn.sigmoid(gate_pre) * env * aggr_msg
                             ).astype(jnp.bfloat16)

        if has_mat:
            vec = vec_r[...]                                 # [10, HC] stacked
            qi = qi_r[...]                                   # bf16 [T, 3HC]
            qj = qj_r[...]
            ea_v = xc[:, 0:D] if has_cart else ea_r[...]     # bf16 [T, D]
            e_full = _dot(ea_v, we_r[...]) + vec[8:9, :]     # f32 [T, HC]
            q = qi[:, 0:HC].astype(jnp.float32)
            ki = qi[:, HC:2 * HC].astype(jnp.float32)
            kj = qj[:, HC:2 * HC].astype(jnp.float32)
            vi = qi[:, 2 * HC:3 * HC]
            vj = qj[:, 2 * HC:3 * HC]
            # alpha blocks (head-batched, lane-dense)
            a1 = q * ki * inv_s
            a2 = q * kj * inv_s
            a3 = q * e_full * inv_s
            sum3 = a1 + a2 + a3
            sq3 = a1 * a1 + a2 * a2 + a3 * a3
            # per-head LN stats over 3C cols via constant block-diag matmul
            mean = _f32dot(sum3, b1_r[...])
            var = jnp.maximum(_f32dot(sq3, b1_r[...]) - mean * mean, 0.0)
            inv_std = jax.lax.rsqrt(var + LN_EPS)
            g1 = jax.nn.sigmoid((a1 - mean) * inv_std * vec[0:1, :] + vec[3:4, :])
            g2 = jax.nn.sigmoid((a2 - mean) * inv_std * vec[1:2, :] + vec[4:5, :])
            g3 = jax.nn.sigmoid((a3 - mean) * inv_std * vec[2:3, :] + vec[5:6, :])
            # msg_update over all heads: block-diagonal (3HC,3HC) bf16 weight
            V = jnp.concatenate([vi, vj, e_full.astype(jnp.bfloat16)], axis=1)
            mu = _dot(V, wmu_r[...]) + bmu_r[...]            # [T, 3HC]
            G = jnp.concatenate([g1, g2, g3], axis=1)        # [T, 3HC]
            m = _dot(mu * G, wm_r[...]) + vec[9:10, :]       # [T, HC]
            # per-head LN over C via constant block-diag matmul
            mmean = _f32dot(m, b2_r[...])
            mvar = jnp.maximum(_f32dot(m * m, b2_r[...]) - mmean * mmean, 0.0)
            msg = ((m - mmean) * jax.lax.rsqrt(mvar + LN_EPS) * vec[6:7, :]
                   + vec[7:8, :])
            next(oi)[...] = msg.astype(jnp.bfloat16)         # lane-dense [T, HC]

    results = pl.pallas_call(
        kernel,
        out_shape=tuple(out_shapes),
        grid=(e_pad // tile,),
        in_specs=specs,
        out_specs=tuple(out_specs),
        compiler_params=_CPARAMS,
    )(*inputs)
    results = [r[:E] for r in results]
    cart_msg = mat_msg = None
    idx = 0
    if has_cart:
        cart_msg = results[idx]
        idx += 1
    if has_mat:
        mat_msg = results[idx]
    return cart_msg, mat_msg


def node_combine_fwd(has_cart, has_mat, x, cart_aggr, mat_aggr, mp, D, H, C):
    """Fused per-node kernel: CartNet silu(aggr*BN)+x  +  Matformer output path
    (head-mean via constant matmul, BN/SiLU, skip proj, beta blend)."""
    x = x.astype(jnp.float32)
    N = x.shape[0]
    HC = H * C
    tile = _row_tile(N)
    n_pad = _round_up(N, tile)

    inputs = [_pad_rows_to(x, n_pad)]
    specs = [_row_spec(tile, D)]
    if has_cart:
        inputs.append(_pad_rows_to(cart_aggr, n_pad))
        specs.append(_row_spec(tile, D))
    if has_mat:
        inputs += [_pad_rows_to(mat_aggr, n_pad), mp["Mmean"], mp["w_skip"],
                   mp["b_skip"], mp["wbeta"]]
        specs += [_row_spec(tile, HC), _rep_spec((HC, C)), _rep_spec((D, C)),
                  _rep_spec((1, C)), _rep_spec((3, C))]

    def kernel(*refs):
        o_ref = refs[-1]
        it = iter(refs[:-1])
        xv = next(it)[...]
        h_local = None
        h_global = None
        if has_cart:
            ca = next(it)[...]
            h_local = _silu(ca * BN_EVAL_SCALE) + xv
        if has_mat:
            ma = next(it)[...]
            mmean_r = next(it)
            wskip_r = next(it)
            bskip_r = next(it)
            wb_r = next(it)
            out = _f32dot(ma, mmean_r[...])                  # head mean (MXU)
            out = _silu(out * BN_EVAL_SCALE)                 # BN eval + SiLU
            x_sk = _dot(xv, wskip_r[...]) + bskip_r[...]
            wb = wb_r[...]                                   # [3, C]
            z = jnp.sum(out * wb[0:1, :] + x_sk * wb[1:2, :]
                        + (out - x_sk) * wb[2:3, :], axis=-1, keepdims=True)
            beta = jax.nn.sigmoid(z)
            h_global = beta * x_sk + (1.0 - beta) * out
        if has_cart and has_mat:
            o_ref[...] = h_local + h_global
        elif has_cart:
            o_ref[...] = h_local
        else:
            o_ref[...] = h_global

    out = pl.pallas_call(
        kernel,
        out_shape=jax.ShapeDtypeStruct((n_pad, D), jnp.float32),
        grid=(n_pad // tile,),
        in_specs=specs,
        out_specs=_row_spec(tile, D),
        compiler_params=_CPARAMS,
    )(*inputs)
    return out[:N]


def graph_norm_fwd(x, batch, num_graphs, p):
    cnt = jax.ops.segment_sum(jnp.ones((x.shape[0], 1), jnp.float32), batch,
                              num_segments=num_graphs)
    mean = jax.ops.segment_sum(x, batch, num_segments=num_graphs) / cnt
    out = x - mean[batch] * p["mean_scale"]
    var = jax.ops.segment_sum(out * out, batch, num_segments=num_graphs) / cnt
    std = jnp.sqrt(var + 1e-5)
    return p["weight"] * out / std[batch] + p["bias"]


def set2set_fwd(x, batch, num_graphs, p, steps=3):
    D = x.shape[1]
    q_star = jnp.zeros((num_graphs, 2 * D), jnp.float32)
    h = jnp.zeros((num_graphs, D), jnp.float32)
    c = jnp.zeros((num_graphs, D), jnp.float32)
    for _ in range(steps):
        gates = q_star @ p["w_ih"].T + p["b_ih"] + h @ p["w_hh"].T + p["b_hh"]
        i_g, f_g, g_g, o_g = jnp.split(gates, 4, axis=-1)
        c = jax.nn.sigmoid(f_g) * c + jax.nn.sigmoid(i_g) * jnp.tanh(g_g)
        q = jax.nn.sigmoid(o_g) * jnp.tanh(c)
        h = q
        e = jnp.sum(x * q[batch], axis=-1, keepdims=True)
        e_max = jax.ops.segment_max(e, batch, num_segments=num_graphs)
        e_exp = jnp.exp(e - e_max[batch])
        denom = jax.ops.segment_sum(e_exp, batch, num_segments=num_graphs)
        a = e_exp / denom[batch]
        r = jax.ops.segment_sum(a * x, batch, num_segments=num_graphs)
        q_star = jnp.concatenate([q, r], axis=-1)
    return q_star


def unicrystalformer_fwd(params, cfg, atomic_numbers, megnet_embed, edge_index,
                         edge_vec, cart_dist, batch, num_graphs):
    D = cfg["hidden_dim"]
    H = cfg["heads"]
    C = D                                                    # MatformerConv out
    h = atom_encoder_fwd(atomic_numbers, megnet_embed, params["atom_encoder"], D)
    edge_dist = jnp.linalg.norm(edge_vec, axis=1)
    gamma = float(cfg["edge_features"] - 1) / float(cfg["radius"])
    edge_attr = rbf_fwd(edge_dist, params["rbf"], gamma)

    src, dst = edge_index[0], edge_index[1]
    E = src.shape[0]
    N = h.shape[0]
    ea_bf = edge_attr.astype(jnp.bfloat16)
    dist_col = cart_dist.astype(jnp.float32).reshape(E, 1)

    for i in range(cfg["num_layers"]):
        has_cart = i < cfg["num_cart_layers"]
        has_mat = i < cfg["num_mat_layers"]
        cp = params["cart"][i] if has_cart else None
        mp = params["mat"][i] if has_mat else None

        qkv_i = qkv_j = xcat = None
        if has_mat:
            # fused Q/K/V projection, bf16 output stream
            qkv = linear_pallas(h, mp["w_qkv"], mp["b_qkv"],
                                out_dtype=jnp.bfloat16)          # [N, 3HC]
            # TODO(synk): for very large E, gather qkv inside the kernel via
            # PrefetchScalarGridSpec instead of materializing gathered copies.
            qkv_i = jnp.take(qkv, dst, axis=0)
            qkv_j = jnp.take(qkv, src, axis=0)
        if has_cart:
            hb = h.astype(jnp.bfloat16)
            xcat = jnp.concatenate([ea_bf, jnp.take(hb, dst, axis=0),
                                    jnp.take(hb, src, axis=0)], axis=1)  # [E,3D]

        cart_msg, mat_msg = edge_messages_fwd(
            has_cart, has_mat, D, H, C, cfg["radius"],
            xcat=xcat, dist=dist_col, cp=cp,
            qkv_i=qkv_i, qkv_j=qkv_j, ea=ea_bf, mp=mp)

        cart_aggr = (jax.ops.segment_sum(cart_msg.astype(jnp.float32), dst,
                                         num_segments=N) if has_cart else None)
        mat_aggr = (jax.ops.segment_sum(mat_msg.astype(jnp.float32), dst,
                                        num_segments=N) if has_mat else None)

        h_comb = node_combine_fwd(has_cart, has_mat, h, cart_aggr, mat_aggr,
                                  mp, D, H, C)
        h_comb = graph_norm_fwd(h_comb, batch, num_graphs, params["norm_attn"][i])
        h_attn = h + h_comb                                   # dropout = identity
        pf = params["ffn"][i]
        h_ffn = mlp2_pallas(h_attn, pf["w1"], pf["b1"], pf["w2"], pf["b2"])
        h_ffn = graph_norm_fwd(h_ffn, batch, num_graphs, params["norm_ffn"][i])
        h = h_attn + h_ffn                                    # dropout = identity

    graph_emb = set2set_fwd(h, batch, num_graphs, params["s2s"], steps=3)
    pf = params["fc_out"]
    out = mlp2_pallas(graph_emb, pf["w1"], pf["b1"], pf["w2"], pf["b2"],
                      use_bf16=False)                         # final head in f32
    return out


# ----------------------------------------------------------------------------
# Deterministic parameter initialization + packing for the kernels
# ----------------------------------------------------------------------------
class KeyGen:
    def __init__(self, key):
        self.key = key

    def __call__(self):
        self.key, sub = jax.random.split(self.key)
        return sub


def kaiming_linear(kg, din, dout):
    bound = math.sqrt(6.0 / din)
    w = jax.random.uniform(kg(), (din, dout), jnp.float32, -bound, bound)
    b = jnp.zeros((dout,), jnp.float32)   # _init_weights zeros biases
    return w, b


def init_params(kg, cfg):
    D = cfg["hidden_dim"]
    H = cfg["heads"]
    C = D                      # out_channels of MatformerConv
    EF = cfg["edge_features"]

    # AtomEncoder
    w_meg, b_meg = kaiming_linear(kg, 16, D)
    wg, bg = kaiming_linear(kg, 2 * D, D)
    w_o1, b_o1 = kaiming_linear(kg, D, D)
    w_o2, b_o2 = kaiming_linear(kg, D, D)
    atom_encoder = dict(
        emb_table=jax.random.normal(kg(), (119, D), jnp.float32),
        w_meg=w_meg, b_meg=b_meg,
        wg_e=wg[:D], wg_m=wg[D:], bg=bg,
        w_o1=w_o1, b_o1=b_o1,
        ln_g=jnp.ones((D,), jnp.float32), ln_b=jnp.zeros((D,), jnp.float32),
        w_o2=w_o2, b_o2=b_o2,
    )

    centers = jnp.linspace(0.0, cfg["radius"], EF, dtype=jnp.float32)
    w1, b1 = kaiming_linear(kg, EF, D)
    w2, b2 = kaiming_linear(kg, D, D)
    rbf = dict(centers=centers, w1=w1, b1=b1, w2=w2, b2=b2)

    cart = []
    for _ in range(cfg["num_cart_layers"]):
        wg1, bg1 = kaiming_linear(kg, 3 * D, D)
        wg2, bg2 = kaiming_linear(kg, D, D)
        wa1, ba1 = kaiming_linear(kg, 3 * D, D)
        wa2, ba2 = kaiming_linear(kg, D, D)
        cart.append(dict(wg1=wg1, bg1=bg1, wg2=wg2, bg2=bg2,
                         wa1=wa1, ba1=ba1, wa2=wa2, ba2=ba2))

    mat = []
    for _ in range(cfg["num_mat_layers"]):
        wq, bq = kaiming_linear(kg, D, H * C)
        wk, bk = kaiming_linear(kg, D, H * C)
        wv, bv = kaiming_linear(kg, D, H * C)
        we, be = kaiming_linear(kg, D, H * C)
        w_mu, b_mu = kaiming_linear(kg, 3 * C, 3 * C)
        w_m, b_m = kaiming_linear(kg, 3 * C, C)
        w_skip, b_skip = kaiming_linear(kg, D, C)
        w_beta, _ = kaiming_linear(kg, 3 * C, 1)
        mat.append(dict(
            wq=wq, bq=bq, wk=wk, bk=bk, wv=wv, bv=bv, we=we, be=be,
            w_msg_upd=w_mu, b_msg_upd=b_mu,
            w_msg=w_m, b_msg=b_m,
            ln_a_g=jnp.ones((3 * C,), jnp.float32),
            ln_a_b=jnp.zeros((3 * C,), jnp.float32),
            ln_m_g=jnp.ones((C,), jnp.float32),
            ln_m_b=jnp.zeros((C,), jnp.float32),
            w_skip=w_skip, b_skip=b_skip, w_beta=w_beta,
        ))

    def gn():
        return dict(weight=jnp.ones((D,), jnp.float32),
                    bias=jnp.zeros((D,), jnp.float32),
                    mean_scale=jnp.ones((D,), jnp.float32))

    norm_attn = [gn() for _ in range(cfg["num_layers"])]
    norm_ffn = [gn() for _ in range(cfg["num_layers"])]

    ffn = []
    for _ in range(cfg["num_layers"]):
        fw1, fb1 = kaiming_linear(kg, D, 2 * D)
        fw2, fb2 = kaiming_linear(kg, 2 * D, D)
        ffn.append(dict(w1=fw1, b1=fb1, w2=fw2, b2=fb2))

    s = 1.0 / math.sqrt(D)
    s2s = dict(
        w_ih=jax.random.uniform(kg(), (4 * D, 2 * D), jnp.float32, -s, s),
        w_hh=jax.random.uniform(kg(), (4 * D, D), jnp.float32, -s, s),
        b_ih=jax.random.uniform(kg(), (4 * D,), jnp.float32, -s, s),
        b_hh=jax.random.uniform(kg(), (4 * D,), jnp.float32, -s, s),
    )

    fw1, fb1 = kaiming_linear(kg, 2 * D, cfg["fc_features"])
    fw2, fb2 = kaiming_linear(kg, cfg["fc_features"], cfg["output_features"])
    fc_out = dict(w1=fw1, b1=fb1, w2=fw2, b2=fb2)

    return dict(atom_encoder=atom_encoder, rbf=rbf, cart=cart, mat=mat,
                norm_attn=norm_attn, norm_ffn=norm_ffn, ffn=ffn,
                s2s=s2s, fc_out=fc_out)


def prepare_params(params, cfg):
    """Pack / pre-transform parameters once for the fused Pallas kernels."""
    D = cfg["hidden_dim"]
    H = cfg["heads"]
    C = D
    HC = H * C

    ae = params["atom_encoder"]
    atom_encoder = dict(
        emb_table=ae["emb_table"],
        w_meg=_bf16(ae["w_meg"]),
        w_stack=_bf16(jnp.concatenate(
            [ae["wg_e"], ae["wg_m"], ae["w_o1"], ae["w_o2"]], axis=0)),
        vecs=jnp.stack([ae["b_meg"], ae["bg"], ae["b_o1"],
                        ae["ln_g"], ae["ln_b"], ae["b_o2"]]).astype(jnp.float32),
    )

    rb = params["rbf"]
    rbf = dict(centers=rb["centers"].reshape(1, -1).astype(jnp.float32),
               w1=_bf16(rb["w1"]), b1=_rowvec(rb["b1"]),
               w2=_bf16(rb["w2"]), b2=_rowvec(rb["b2"]))

    cart = []
    for pc in params["cart"]:
        def reorder(w):   # input order becomes [edge_attr | x_i | x_j]
            return jnp.concatenate([w[2 * D:], w[:D], w[D:2 * D]], axis=0)
        w1 = jnp.concatenate([reorder(pc["wg1"]), reorder(pc["wa1"])], axis=1)
        w2 = jnp.zeros((2 * D, 2 * D), jnp.float32)
        w2 = w2.at[:D, :D].set(pc["wg2"]).at[D:, D:].set(pc["wa2"])
        bvec = jnp.stack([jnp.concatenate([pc["bg1"], pc["ba1"]]),
                          jnp.concatenate([pc["bg2"], pc["ba2"]])]
                         ).astype(jnp.float32)
        cart.append(dict(w1=_bf16(w1), w2=_bf16(w2), bvec=bvec))

    mat = []
    eye_h = jnp.eye(H, dtype=jnp.float32)
    blk = jnp.kron(jnp.eye(H, dtype=jnp.float32), jnp.ones((C, C), jnp.float32))
    for pm in params["mat"]:
        wmu_r = pm["w_msg_upd"].reshape(3, C, 3, C)
        Wmu = jnp.einsum('icjd,hg->ihcjgd', wmu_r, eye_h).reshape(3 * HC, 3 * HC)
        bmu = jnp.tile(pm["b_msg_upd"].reshape(3, 1, C), (1, H, 1)).reshape(1, 3 * HC)
        wm_r = pm["w_msg"].reshape(3, C, C)
        Wm = jnp.einsum('icd,hg->ihcgd', wm_r, eye_h).reshape(3 * HC, HC)

        def tile_block(v, b):
            return jnp.tile(v[b * C:(b + 1) * C], H)
        vecs = jnp.stack([
            tile_block(pm["ln_a_g"], 0), tile_block(pm["ln_a_g"], 1),
            tile_block(pm["ln_a_g"], 2),
            tile_block(pm["ln_a_b"], 0), tile_block(pm["ln_a_b"], 1),
            tile_block(pm["ln_a_b"], 2),
            jnp.tile(pm["ln_m_g"], H), jnp.tile(pm["ln_m_b"], H),
            pm["be"], jnp.tile(pm["b_msg"], H),
        ]).astype(jnp.float32)                               # [10, HC]

        mat.append(dict(
            w_qkv=_bf16(jnp.concatenate([pm["wq"], pm["wk"], pm["wv"]], axis=1)),
            b_qkv=jnp.concatenate([pm["bq"], pm["bk"], pm["bv"]]),
            we=_bf16(pm["we"]),
            Wmu=_bf16(Wmu), bmu=bmu.astype(jnp.float32),
            Wm=_bf16(Wm), vecs=vecs,
            B1=blk / (3.0 * C), B2=blk / float(C),
            Mmean=jnp.tile(jnp.eye(C, dtype=jnp.float32), (H, 1)) / float(H),
            w_skip=_bf16(pm["w_skip"]), b_skip=_rowvec(pm["b_skip"]),
            wbeta=pm["w_beta"].reshape(3, C).astype(jnp.float32),
        ))

    return dict(atom_encoder=atom_encoder, rbf=rbf, cart=cart, mat=mat,
                norm_attn=params["norm_attn"], norm_ffn=params["norm_ffn"],
                ffn=params["ffn"], s2s=params["s2s"], fc_out=params["fc_out"])


# ----------------------------------------------------------------------------
# Main
# ----------------------------------------------------------------------------
if __name__ == "__main__":
    cfg = dict(
        hidden_dim=32,
        edge_features=32,      # kept == hidden_dim (required by forward wiring)
        fc_features=32,
        output_features=1,
        heads=4,
        num_cart_layers=2,
        num_mat_layers=2,
        radius=8.0,
    )
    cfg["num_layers"] = max(cfg["num_cart_layers"], cfg["num_mat_layers"])

    key = jax.random.PRNGKey(0)
    kg = KeyGen(key)
    raw_params = init_params(kg, cfg)
    params = prepare_params(raw_params, cfg)

    # Small synthetic crystal-graph batch: 2 graphs x 8 atoms, 24 edges each.
    N_PER_G, NUM_G = 8, 2
    N = N_PER_G * NUM_G
    E_PER_G = 24
    E = E_PER_G * NUM_G

    atomic_numbers = jax.random.randint(kg(), (N,), 1, 119)
    megnet_embed = jax.random.normal(kg(), (N, 16), jnp.float32)

    src0 = jax.random.randint(kg(), (E_PER_G,), 0, N_PER_G)
    dst0 = jax.random.randint(kg(), (E_PER_G,), 0, N_PER_G)
    src = jnp.concatenate([src0, src0 + N_PER_G])
    dst = jnp.concatenate([dst0, dst0 + N_PER_G])
    edge_index = jnp.stack([src, dst], axis=0)     # [2, E] (row0=src j, row1=dst i)

    edge_vec = jax.random.normal(kg(), (E, 3), jnp.float32) * 2.0   # data.edge_attr
    cart_dist = jnp.linalg.norm(edge_vec, axis=1)                   # data.cart_dist
    batch = jnp.concatenate([jnp.zeros((N_PER_G,), jnp.int32),
                             jnp.ones((N_PER_G,), jnp.int32)])

    fwd = jax.jit(lambda p, an, me, ei, ev, cd, b: unicrystalformer_fwd(
        p, cfg, an, me, ei, ev, cd, b, NUM_G))
    out = fwd(params, atomic_numbers, megnet_embed, edge_index, edge_vec,
              cart_dist, batch)
    out = jax.block_until_ready(out)
    assert out.shape == (NUM_G, cfg["output_features"])
    assert bool(jnp.all(jnp.isfinite(out)))
    print("KERNEL_OK")
</pallas_src>

<mosaic_0001>
module attributes {stable_mosaic.version = 11 : i64} {
  func.func private @main(%arg0: i32) attributes {dimension_semantics = [#tpu.dimension_semantics<core_parallel>], iteration_bounds = array<i64: 2>, tpu.core_type = #tpu.core_type<sc_scalar_subcore>, window_params = []} {
    return
  }
}

module attributes {stable_mosaic.version = 11 : i64} {
  func.func private @main(%arg0: i32) attributes {dimension_semantics = [#tpu.dimension_semantics<core_parallel>], iteration_bounds = array<i64: 2>, tpu.core_type = #tpu.core_type<sc_scalar_subcore>, window_params = []} {
    return
  }
}

module attributes {stable_mosaic.version = 11 : i64} {
  func.func @kernel(%arg0: i32, %arg1: memref<16x32xf32, #tpu.memory_space<vmem>>, %arg2: memref<16x16xf32, #tpu.memory_space<vmem>>, %arg3: memref<16x32xbf16, #tpu.memory_space<vmem>>, %arg4: memref<128x32xbf16, #tpu.memory_space<vmem>>, %arg5: memref<6x32xf32, #tpu.memory_space<vmem>>, %arg6: memref<16x32xf32, #tpu.memory_space<vmem>>) attributes {dimension_semantics = [#tpu.dimension_semantics<parallel>], iteration_bounds = array<i64: 1>, scalar_prefetch = 0 : i64, scratch_operands = 0 : i64, tpu.core_type = #tpu.core_type<tc>, window_params = [{transform_indices = @transform_0, window_bounds = array<i64: 16, 32>}, {transform_indices = @transform_1, window_bounds = array<i64: 16, 16>}, {pipeline_mode = #tpu.pipeline_mode<synchronous>, transform_indices = @transform_2, window_bounds = array<i64: 16, 32>}, {pipeline_mode = #tpu.pipeline_mode<synchronous>, transform_indices = @transform_3, window_bounds = array<i64: 128, 32>}, {pipeline_mode = #tpu.pipeline_mode<synchronous>, transform_indices = @transform_4, window_bounds = array<i64: 6, 32>}, {transform_indices = @transform_5, window_bounds = array<i64: 16, 32>}]} {
    %c0 = arith.constant 0 : index
    %c0_0 = arith.constant 0 : index
    %0 = vector.load %arg5[%c0, %c0_0] : memref<6x32xf32, #tpu.memory_space<vmem>>, vector<6x32xf32>
    %c0_1 = arith.constant 0 : index
    %c0_2 = arith.constant 0 : index
    %1 = vector.load %arg1[%c0_1, %c0_2] : memref<16x32xf32, #tpu.memory_space<vmem>>, vector<16x32xf32>
    %c0_3 = arith.constant 0 : index
    %c0_4 = arith.constant 0 : index
    %2 = vector.load %arg2[%c0_3, %c0_4] : memref<16x16xf32, #tpu.memory_space<vmem>>, vector<16x16xf32>
    %c0_5 = arith.constant 0 : index
    %c0_6 = arith.constant 0 : index
    %3 = vector.load %arg3[%c0_5, %c0_6] : memref<16x32xbf16, #tpu.memory_space<vmem>>, vector<16x32xbf16>
    %4 = arith.truncf %2 : vector<16x16xf32> to vector<16x16xbf16>
    %cst = arith.constant dense<0.000000e+00> : vector<16x32xf32>
    %5 = tpu.matmul %4, %3, %cst {dimension_numbers = #tpu.dot_dimension_numbers<[1], [0], [0], [1], [0, 0, 1, 1], [], []>} : vector<16x16xbf16>, vector<16x32xbf16>, vector<16x32xf32> -> vector<16x32xf32>
    %6 = vector.extract_strided_slice %0 {offsets = [0, 0], sizes = [1, 32], strides = [1, 1]} : vector<6x32xf32> to vector<1x32xf32>
    %7 = vector.broadcast %6 : vector<1x32xf32> to vector<16x32xf32>
    %8 = arith.addf %5, %7 : vector<16x32xf32>
    %c0_7 = arith.constant 0 : index
    %c0_8 = arith.constant 0 : index
    %9 = vector.load %arg4[%c0_7, %c0_8] : memref<128x32xbf16, #tpu.memory_space<vmem>>, vector<32x32xbf16>
    %10 = arith.truncf %1 : vector<16x32xf32> to vector<16x32xbf16>
    %cst_9 = arith.constant dense<0.000000e+00> : vector<16x32xf32>
    %11 = tpu.matmul %10, %9, %cst_9 {dimension_numbers = #tpu.dot_dimension_numbers<[1], [0], [0], [1], [0, 0, 1, 1], [], []>} : vector<16x32xbf16>, vector<32x32xbf16>, vector<16x32xf32> -> vector<16x32xf32>
    %c32 = arith.constant 32 : index
    %c0_10 = arith.constant 0 : index
    %12 = vector.load %arg4[%c32, %c0_10] : memref<128x32xbf16, #tpu.memory_space<vmem>>, vector<32x32xbf16>
    %13 = arith.truncf %8 : vector<16x32xf32> to vector<16x32xbf16>
    %cst_11 = arith.constant dense<0.000000e+00> : vector<16x32xf32>
    %14 = tpu.matmul %13, %12, %cst_11 {dimension_numbers = #tpu.dot_dimension_numbers<[1], [0], [0], [1], [0, 0, 1, 1], [], []>} : vector<16x32xbf16>, vector<32x32xbf16>, vector<16x32xf32> -> vector<16x32xf32>
    %15 = arith.addf %11, %14 : vector<16x32xf32>
    %16 = vector.extract_strided_slice %0 {offsets = [1, 0], sizes = [1, 32], strides = [1, 1]} : vector<6x32xf32> to vector<1x32xf32>
    %17 = vector.broadcast %16 : vector<1x32xf32> to vector<16x32xf32>
    %18 = arith.addf %15, %17 : vector<16x32xf32>
    %19 = arith.negf %18 : vector<16x32xf32>
    %20 = math.exp %19 : vector<16x32xf32>
    %cst_12 = arith.constant 1.000000e+00 : f32
    %21 = vector.broadcast %cst_12 : f32 to vector<16x32xf32>
    %22 = arith.addf %21, %20 : vector<16x32xf32>
    %23 = arith.divf %21, %22 : vector<16x32xf32>
    %24 = arith.mulf %23, %1 : vector<16x32xf32>
    %cst_13 = arith.constant 1.000000e+00 : f32
    %25 = vector.broadcast %cst_13 : f32 to vector<16x32xf32>
    %26 = arith.subf %25, %23 : vector<16x32xf32>
    %27 = arith.mulf %26, %8 : vector<16x32xf32>
    %28 = arith.addf %24, %27 : vector<16x32xf32>
    %c64 = arith.constant 64 : index
    %c0_14 = arith.constant 0 : index
    %29 = vector.load %arg4[%c64, %c0_14] : memref<128x32xbf16, #tpu.memory_space<vmem>>, vector<32x32xbf16>
    %30 = arith.truncf %28 : vector<16x32xf32> to vector<16x32xbf16>
    %cst_15 = arith.constant dense<0.000000e+00> : vector<16x32xf32>
    %31 = tpu.matmul %30, %29, %cst_15 {dimension_numbers = #tpu.dot_dimension_numbers<[1], [0], [0], [1], [0, 0, 1, 1], [], []>} : vector<16x32xbf16>, vector<32x32xbf16>, vector<16x32xf32> -> vector<16x32xf32>
    %32 = vector.extract_strided_slice %0 {offsets = [2, 0], sizes = [1, 32], strides = [1, 1]} : vector<6x32xf32> to vector<1x32xf32>
    %33 = vector.broadcast %32 : vector<1x32xf32> to vector<16x32xf32>
    %34 = arith.addf %31, %33 : vector<16x32xf32>
    %35 = arith.negf %34 : vector<16x32xf32>
    %36 = math.exp %35 : vector<16x32xf32>
    %cst_16 = arith.constant 1.000000e+00 : f32
    %37 = vector.broadcast %cst_16 : f32 to vector<16x32xf32>
    %38 = arith.addf %37, %36 : vector<16x32xf32>
    %39 = arith.divf %37, %38 : vector<16x32xf32>
    %40 = arith.mulf %34, %39 : vector<16x32xf32>
    %41 = vector.extract_strided_slice %0 {offsets = [3, 0], sizes = [1, 32], strides = [1, 1]} : vector<6x32xf32> to vector<1x32xf32>
    %42 = vector.extract_strided_slice %0 {offsets = [4, 0], sizes = [1, 32], strides = [1, 1]} : vector<6x32xf32> to vector<1x32xf32>
    %cst_17 = arith.constant dense<0.000000e+00> : vector<16xf32>
    %43 = vector.multi_reduction <add>, %40, %cst_17 [1] : vector<16x32xf32> to vector<16xf32>
    %44 = vector.shape_cast %43 : vector<16xf32> to vector<16x1xf32>
    %cst_18 = arith.constant 3.200000e+01 : f32
    %45 = vector.broadcast %cst_18 : f32 to vector<16x1xf32>
    %46 = arith.divf %44, %45 : vector<16x1xf32>
    %47 = vector.broadcast %46 : vector<16x1xf32> to vector<16x32xf32>
    %48 = arith.subf %40, %47 : vector<16x32xf32>
    %49 = arith.mulf %48, %48 : vector<16x32xf32>
    %cst_19 = arith.constant dense<0.000000e+00> : vector<16xf32>
    %50 = vector.multi_reduction <add>, %49, %cst_19 [1] : vector<16x32xf32> to vector<16xf32>
    %51 = vector.shape_cast %50 : vector<16xf32> to vector<16x1xf32>
    %cst_20 = arith.constant 3.200000e+01 : f32
    %52 = vector.broadcast %cst_20 : f32 to vector<16x1xf32>
    %53 = arith.divf %51, %52 : vector<16x1xf32>
    %cst_21 = arith.constant 9.99999974E-6 : f32
    %54 = vector.broadcast %cst_21 : f32 to vector<16x1xf32>
    %55 = arith.addf %53, %54 : vector<16x1xf32>
    %56 = math.rsqrt %55 : vector<16x1xf32>
    %57 = vector.broadcast %56 : vector<16x1xf32> to vector<16x32xf32>
    %58 = arith.mulf %48, %57 : vector<16x32xf32>
    %59 = vector.broadcast %41 : vector<1x32xf32> to vector<16x32xf32>
    %60 = arith.mulf %58, %59 : vector<16x32xf32>
    %61 = vector.broadcast %42 : vector<1x32xf32> to vector<16x32xf32>
    %62 = arith.addf %60, %61 : vector<16x32xf32>
    %c96 = arith.constant 96 : index
    %c0_22 = arith.constant 0 : index
    %63 = vector.load %arg4[%c96, %c0_22] : memref<128x32xbf16, #tpu.memory_space<vmem>>, vector<32x32xbf16>
    %64 = arith.truncf %62 : vector<16x32xf32> to vector<16x32xbf16>
    %cst_23 = arith.constant dense<0.000000e+00> : vector<16x32xf32>
    %65 = tpu.matmul %64, %63, %cst_23 {dimension_numbers = #tpu.dot_dimension_numbers<[1], [0], [0], [1], [0, 0, 1, 1], [], []>} : vector<16x32xbf16>, vector<32x32xbf16>, vector<16x32xf32> -> vector<16x32xf32>
    %66 = vector.extract_strided_slice %0 {offsets = [5, 0], sizes = [1, 32], strides = [1, 1]} : vector<6x32xf32> to vector<1x32xf32>
    %67 = vector.broadcast %66 : vector<1x32xf32> to vector<16x32xf32>
    %68 = arith.addf %65, %67 : vector<16x32xf32>
    %c0_24 = arith.constant 0 : index
    %c0_25 = arith.constant 0 : index
    %69 = vector.load %arg6[%c0_24, %c0_25] : memref<16x32xf32, #tpu.memory_space<vmem>>, vector<16x32xf32>
    tpu.vector_store %arg6[%c0_24, %c0_25], %68 {strides = array<i32>} : memref<16x32xf32, #tpu.memory_space<vmem>>, vector<16x32xf32>,
    return
  }
  func.func @transform_0(%arg0: i32) -> (i32, i32) {
    %c0_i32 = arith.constant 0 : i32
    %c0_i32_0 = arith.constant 0 : i32
    return %arg0, %c0_i32 : i32, i32
  }
  func.func @transform_1(%arg0: i32) -> (i32, i32) {
    %c0_i32 = arith.constant 0 : i32
    %c0_i32_0 = arith.constant 0 : i32
    return %arg0, %c0_i32 : i32, i32
  }
  func.func @transform_2(%arg0: i32) -> (i32, i32) {
    %c0_i32 = arith.constant 0 : i32
    %c0_i32_0 = arith.constant 0 : i32
    %c0_i32_1 = arith.constant 0 : i32
    return %c0_i32, %c0_i32_0 : i32, i32
  }
  func.func @transform_3(%arg0: i32) -> (i32, i32) {
    %c0_i32 = arith.constant 0 : i32
    %c0_i32_0 = arith.constant 0 : i32
    %c0_i32_1 = arith.constant 0 : i32
    return %c0_i32, %c0_i32_0 : i32, i32
  }
  func.func @transform_4(%arg0: i32) -> (i32, i32) {
    %c0_i32 = arith.constant 0 : i32
    %c0_i32_0 = arith.constant 0 : i32
    %c0_i32_1 = arith.constant 0 : i32
    return %c0_i32, %c0_i32_0 : i32, i32
  }
  func.func @transform_5(%arg0: i32) -> (i32, i32) {
    %c0_i32 = arith.constant 0 : i32
    %c0_i32_0 = arith.constant 0 : i32
    return %arg0, %c0_i32 : i32, i32
  }
}

module attributes {stable_mosaic.version = 11 : i64} {
  func.func @kernel(%arg0: i32, %arg1: memref<16x32xf32, #tpu.memory_space<vmem>>, %arg2: memref<32x384xbf16, #tpu.memory_space<vmem>>, %arg3: memref<1x384xf32, #tpu.memory_space<vmem>>, %arg4: memref<16x384xbf16, #tpu.memory_space<vmem>>) attributes {dimension_semantics = [#tpu.dimension_semantics<parallel>], iteration_bounds = array<i64: 1>, scalar_prefetch = 0 : i64, scratch_operands = 0 : i64, tpu.core_type = #tpu.core_type<tc>, window_params = [{transform_indices = @transform_0, window_bounds = array<i64: 16, 32>}, {pipeline_mode = #tpu.pipeline_mode<synchronous>, transform_indices = @transform_1, window_bounds = array<i64: 32, 384>}, {pipeline_mode = #tpu.pipeline_mode<synchronous>, transform_indices = @transform_2, window_bounds = array<i64: 1, 384>}, {transform_indices = @transform_3, window_bounds = array<i64: 16, 384>}]} {
    %c0 = arith.constant 0 : index
    %c0_0 = arith.constant 0 : index
    %0 = vector.load %arg1[%c0, %c0_0] : memref<16x32xf32, #tpu.memory_space<vmem>>, vector<16x32xf32>
    %c0_1 = arith.constant 0 : index
    %c0_2 = arith.constant 0 : index
    %1 = vector.load %arg2[%c0_1, %c0_2] : memref<32x384xbf16, #tpu.memory_space<vmem>>, vector<32x384xbf16>
    %2 = arith.truncf %0 : vector<16x32xf32> to vector<16x32xbf16>
    %cst = arith.constant dense<0.000000e+00> : vector<16x384xf32>
    %3 = tpu.matmul %2, %1, %cst {dimension_numbers = #tpu.dot_dimension_numbers<[1], [0], [0], [1], [0, 0, 1, 1], [], []>} : vector<16x32xbf16>, vector<32x384xbf16>, vector<16x384xf32> -> vector<16x384xf32>
    %c0_3 = arith.constant 0 : index
    %c0_4 = arith.constant 0 : index
    %4 = vector.load %arg3[%c0_3, %c0_4] : memref<1x384xf32, #tpu.memory_space<vmem>>, vector<1x384xf32>
    %5 = vector.broadcast %4 : vector<1x384xf32> to vector<16x384xf32>
    %6 = arith.addf %3, %5 : vector<16x384xf32>
    %7 = arith.truncf %6 : vector<16x384xf32> to vector<16x384xbf16>
    %c0_5 = arith.constant 0 : index
    %c0_6 = arith.constant 0 : index
    %8 = vector.load %arg4[%c0_5, %c0_6] : memref<16x384xbf16, #tpu.memory_space<vmem>>, vector<16x384xbf16>
    tpu.vector_store %arg4[%c0_5, %c0_6], %7 {strides = array<i32>} : memref<16x384xbf16, #tpu.memory_space<vmem>>, vector<16x384xbf16>,
    return
  }
  func.func @transform_0(%arg0: i32) -> (i32, i32) {
    %c0_i32 = arith.constant 0 : i32
    %c0_i32_0 = arith.constant 0 : i32
    return %arg0, %c0_i32 : i32, i32
  }
  func.func @transform_1(%arg0: i32) -> (i32, i32) {
    %c0_i32 = arith.constant 0 : i32
    %c0_i32_0 = arith.constant 0 : i32
    %c0_i32_1 = arith.constant 0 : i32
    return %c0_i32, %c0_i32_0 : i32, i32
  }
  func.func @transform_2(%arg0: i32) -> (i32, i32) {
    %c0_i32 = arith.constant 0 : i32
    %c0_i32_0 = arith.constant 0 : i32
    %c0_i32_1 = arith.constant 0 : i32
    return %c0_i32, %c0_i32_0 : i32, i32
  }
  func.func @transform_3(%arg0: i32) -> (i32, i32) {
    %c0_i32 = arith.constant 0 : i32
    %c0_i32_0 = arith.constant 0 : i32
    return %arg0, %c0_i32 : i32, i32
  }
}

module attributes {stable_mosaic.version = 11 : i64} {
  func.func @kernel(%arg0: i32, %arg1: memref<48x1xf32, #tpu.memory_space<vmem>>, %arg2: memref<1x32xf32, #tpu.memory_space<vmem>>, %arg3: memref<32x32xbf16, #tpu.memory_space<vmem>>, %arg4: memref<1x32xf32, #tpu.memory_space<vmem>>, %arg5: memref<32x32xbf16, #tpu.memory_space<vmem>>, %arg6: memref<1x32xf32, #tpu.memory_space<vmem>>, %arg7: memref<48x32xf32, #tpu.memory_space<vmem>>) attributes {dimension_semantics = [#tpu.dimension_semantics<parallel>], iteration_bounds = array<i64: 1>, scalar_prefetch = 0 : i64, scratch_operands = 0 : i64, tpu.core_type = #tpu.core_type<tc>, window_params = [{transform_indices = @transform_0, window_bounds = array<i64: 48, 1>}, {pipeline_mode = #tpu.pipeline_mode<synchronous>, transform_indices = @transform_1, window_bounds = array<i64: 1, 32>}, {pipeline_mode = #tpu.pipeline_mode<synchronous>, transform_indices = @transform_2, window_bounds = array<i64: 32, 32>}, {pipeline_mode = #tpu.pipeline_mode<synchronous>, transform_indices = @transform_3, window_bounds = array<i64: 1, 32>}, {pipeline_mode = #tpu.pipeline_mode<synchronous>, transform_indices = @transform_4, window_bounds = array<i64: 32, 32>}, {pipeline_mode = #tpu.pipeline_mode<synchronous>, transform_indices = @transform_5, window_bounds = array<i64: 1, 32>}, {transform_indices = @transform_6, window_bounds = array<i64: 48, 32>}]} {
    %c0 = arith.constant 0 : index
    %c0_0 = arith.constant 0 : index
    %0 = vector.load %arg1[%c0, %c0_0] : memref<48x1xf32, #tpu.memory_space<vmem>>, vector<48x1xf32>
    %c0_1 = arith.constant 0 : index
    %c0_2 = arith.constant 0 : index
    %1 = vector.load %arg2[%c0_1, %c0_2] : memref<1x32xf32, #tpu.memory_space<vmem>>, vector<1x32xf32>
    %2 = vector.broadcast %0 : vector<48x1xf32> to vector<48x32xf32>
    %3 = vector.broadcast %1 : vector<1x32xf32> to vector<48x32xf32>
    %4 = arith.subf %2, %3 : vector<48x32xf32>
    %cst = arith.constant -3.875000e+00 : f32
    %5 = vector.broadcast %cst : f32 to vector<48x32xf32>
    %6 = arith.mulf %5, %4 : vector<48x32xf32>
    %7 = arith.mulf %6, %4 : vector<48x32xf32>
    %8 = math.exp %7 : vector<48x32xf32>
    %c0_3 = arith.constant 0 : index
    %c0_4 = arith.constant 0 : index
    %9 = vector.load %arg3[%c0_3, %c0_4] : memref<32x32xbf16, #tpu.memory_space<vmem>>, vector<32x32xbf16>
    %10 = arith.truncf %8 : vector<48x32xf32> to vector<48x32xbf16>
    %cst_5 = arith.constant dense<0.000000e+00> : vector<48x32xf32>
    %11 = tpu.matmul %10, %9, %cst_5 {dimension_numbers = #tpu.dot_dimension_numbers<[1], [0], [0], [1], [0, 0, 1, 1], [], []>} : vector<48x32xbf16>, vector<32x32xbf16>, vector<48x32xf32> -> vector<48x32xf32>
    %c0_6 = arith.constant 0 : index
    %c0_7 = arith.constant 0 : index
    %12 = vector.load %arg4[%c0_6, %c0_7] : memref<1x32xf32, #tpu.memory_space<vmem>>, vector<1x32xf32>
    %13 = vector.broadcast %12 : vector<1x32xf32> to vector<48x32xf32>
    %14 = arith.addf %11, %13 : vector<48x32xf32>
    %15 = arith.negf %14 : vector<48x32xf32>
    %16 = math.exp %15 : vector<48x32xf32>
    %cst_8 = arith.constant 1.000000e+00 : f32
    %17 = vector.broadcast %cst_8 : f32 to vector<48x32xf32>
    %18 = arith.addf %17, %16 : vector<48x32xf32>
    %19 = arith.divf %17, %18 : vector<48x32xf32>
    %20 = arith.mulf %14, %19 : vector<48x32xf32>
    %c0_9 = arith.constant 0 : index
    %c0_10 = arith.constant 0 : index
    %21 = vector.load %arg5[%c0_9, %c0_10] : memref<32x32xbf16, #tpu.memory_space<vmem>>, vector<32x32xbf16>
    %22 = arith.truncf %20 : vector<48x32xf32> to vector<48x32xbf16>
    %cst_11 = arith.constant dense<0.000000e+00> : vector<48x32xf32>
    %23 = tpu.matmul %22, %21, %cst_11 {dimension_numbers = #tpu.dot_dimension_numbers<[1], [0], [0], [1], [0, 0, 1, 1], [], []>} : vector<48x32xbf16>, vector<32x32xbf16>, vector<48x32xf32> -> vector<48x32xf32>
    %c0_12 = arith.constant 0 : index
    %c0_13 = arith.constant 0 : index
    %24 = vector.load %arg6[%c0_12, %c0_13] : memref<1x32xf32, #tpu.memory_space<vmem>>, vector<1x32xf32>
    %25 = vector.broadcast %24 : vector<1x32xf32> to vector<48x32xf32>
    %26 = arith.addf %23, %25 : vector<48x32xf32>
    %c0_14 = arith.constant 0 : index
    %c0_15 = arith.constant 0 : index
    %27 = vector.load %arg7[%c0_14, %c0_15] : memref<48x32xf32, #tpu.memory_space<vmem>>, vector<48x32xf32>
    tpu.vector_store %arg7[%c0_14, %c0_15], %26 {strides = array<i32>} : memref<48x32xf32, #tpu.memory_space<vmem>>, vector<48x32xf32>,
    return
  }
  func.func @transform_0(%arg0: i32) -> (i32, i32) {
    %c0_i32 = arith.constant 0 : i32
    %c0_i32_0 = arith.constant 0 : i32
    return %arg0, %c0_i32 : i32, i32
  }
  func.func @transform_1(%arg0: i32) -> (i32, i32) {
    %c0_i32 = arith.constant 0 : i32
    %c0_i32_0 = arith.constant 0 : i32
    %c0_i32_1 = arith.constant 0 : i32
    return %c0_i32, %c0_i32_0 : i32, i32
  }
  func.func @transform_2(%arg0: i32) -> (i32, i32) {
    %c0_i32 = arith.constant 0 : i32
    %c0_i32_0 = arith.constant 0 : i32
    %c0_i32_1 = arith.constant 0 : i32
    return %c0_i32, %c0_i32_0 : i32, i32
  }
  func.func @transform_3(%arg0: i32) -> (i32, i32) {
    %c0_i32 = arith.constant 0 : i32
    %c0_i32_0 = arith.constant 0 : i32
    %c0_i32_1 = arith.constant 0 : i32
    return %c0_i32, %c0_i32_0 : i32, i32
  }
  func.func @transform_4(%arg0: i32) -> (i32, i32) {
    %c0_i32 = arith.constant 0 : i32
    %c0_i32_0 = arith.constant 0 : i32
    %c0_i32_1 = arith.constant 0 : i32
    return %c0_i32, %c0_i32_0 : i32, i32
  }
  func.func @transform_5(%arg0: i32) -> (i32, i32) {
    %c0_i32 = arith.constant 0 : i32
    %c0_i32_0 = arith.constant 0 : i32
    %c0_i32_1 = arith.constant 0 : i32
    return %c0_i32, %c0_i32_0 : i32, i32
  }
  func.func @transform_6(%arg0: i32) -> (i32, i32) {
    %c0_i32 = arith.constant 0 : i32
    %c0_i32_0 = arith.constant 0 : i32
    return %arg0, %c0_i32 : i32, i32
  }
}

module attributes {stable_mosaic.version = 11 : i64} {
  func.func @kernel(%arg0: i32, %arg1: memref<48x96xbf16, #tpu.memory_space<vmem>>, %arg2: memref<48x1xf32, #tpu.memory_space<vmem>>, %arg3: memref<96x64xbf16, #tpu.memory_space<vmem>>, %arg4: memref<64x64xbf16, #tpu.memory_space<vmem>>, %arg5: memref<2x64xf32, #tpu.memory_space<vmem>>, %arg6: memref<48x384xbf16, #tpu.memory_space<vmem>>, %arg7: memref<48x384xbf16, #tpu.memory_space<vmem>>, %arg8: memref<32x128xbf16, #tpu.memory_space<vmem>>, %arg9: memref<384x384xbf16, #tpu.memory_space<vmem>>, %arg10: memref<1x384xf32, #tpu.memory_space<vmem>>, %arg11: memref<384x128xbf16, #tpu.memory_space<vmem>>, %arg12: memref<10x128xf32, #tpu.memory_space<vmem>>, %arg13: memref<128x128xf32, #tpu.memory_space<vmem>>, %arg14: memref<128x128xf32, #tpu.memory_space<vmem>>, %arg15: memref<48x32xbf16, #tpu.memory_space<vmem>>, %arg16: memref<48x128xbf16, #tpu.memory_space<vmem>>) attributes {dimension_semantics = [#tpu.dimension_semantics<parallel>], iteration_bounds = array<i64: 1>, scalar_prefetch = 0 : i64, scratch_operands = 0 : i64, tpu.core_type = #tpu.core_type<tc>, window_params = [{transform_indices = @transform_0, window_bounds = array<i64: 48, 96>}, {transform_indices = @transform_1, window_bounds = array<i64: 48, 1>}, {pipeline_mode = #tpu.pipeline_mode<synchronous>, transform_indices = @transform_2, window_bounds = array<i64: 96, 64>}, {pipeline_mode = #tpu.pipeline_mode<synchronous>, transform_indices = @transform_3, window_bounds = array<i64: 64, 64>}, {pipeline_mode = #tpu.pipeline_mode<synchronous>, transform_indices = @transform_4, window_bounds = array<i64: 2, 64>}, {transform_indices = @transform_5, window_bounds = array<i64: 48, 384>}, {transform_indices = @transform_6, window_bounds = array<i64: 48, 384>}, {pipeline_mode = #tpu.pipeline_mode<synchronous>, transform_indices = @transform_7, window_bounds = array<i64: 32, 128>}, {pipeline_mode = #tpu.pipeline_mode<synchronous>, transform_indices = @transform_8, window_bounds = array<i64: 384, 384>}, {pipeline_mode = #tpu.pipeline_mode<synchronous>, transform_indices = @transform_9, window_bounds = array<i64: 1, 384>}, {pipeline_mode = #tpu.pipeline_mode<synchronous>, transform_indices = @transform_10, window_bounds = array<i64: 384, 128>}, {pipeline_mode = #tpu.pipeline_mode<synchronous>, transform_indices = @transform_11, window_bounds = array<i64: 10, 128>}, {pipeline_mode = #tpu.pipeline_mode<synchronous>, transform_indices = @transform_12, window_bounds = array<i64: 128, 128>}, {pipeline_mode = #tpu.pipeline_mode<synchronous>, transform_indices = @transform_13, window_bounds = array<i64: 128, 128>}, {transform_indices = @transform_14, window_bounds = array<i64: 48, 32>}, {transform_indices = @transform_15, window_bounds = array<i64: 48, 128>}]} {
    %c0 = arith.constant 0 : index
    %c0_0 = arith.constant 0 : index
    %0 = vector.load %arg1[%c0, %c0_0] : memref<48x96xbf16, #tpu.memory_space<vmem>>, vector<48x96xbf16>
    %c0_1 = arith.constant 0 : index
    %c0_2 = arith.constant 0 : index
    %1 = vector.load %arg5[%c0_1, %c0_2] : memref<2x64xf32, #tpu.memory_space<vmem>>, vector<2x64xf32>
    %c0_3 = arith.constant 0 : index
    %c0_4 = arith.constant 0 : index
    %2 = vector.load %arg3[%c0_3, %c0_4] : memref<96x64xbf16, #tpu.memory_space<vmem>>, vector<96x64xbf16>
    %cst = arith.constant dense<0.000000e+00> : vector<48x64xf32>
    %3 = tpu.matmul %0, %2, %cst {dimension_numbers = #tpu.dot_dimension_numbers<[1], [0], [0], [1], [0, 0, 1, 1], [], []>} : vector<48x96xbf16>, vector<96x64xbf16>, vector<48x64xf32> -> vector<48x64xf32>
    %4 = vector.extract_strided_slice %1 {offsets = [0, 0], sizes = [1, 64], strides = [1, 1]} : vector<2x64xf32> to vector<1x64xf32>
    %5 = vector.broadcast %4 : vector<1x64xf32> to vector<48x64xf32>
    %6 = arith.addf %3, %5 : vector<48x64xf32>
    %7 = arith.negf %6 : vector<48x64xf32>
    %8 = math.exp %7 : vector<48x64xf32>
    %cst_5 = arith.constant 1.000000e+00 : f32
    %9 = vector.broadcast %cst_5 : f32 to vector<48x64xf32>
    %10 = arith.addf %9, %8 : vector<48x64xf32>
    %11 = arith.divf %9, %10 : vector<48x64xf32>
    %12 = arith.mulf %6, %11 : vector<48x64xf32>
    %c0_6 = arith.constant 0 : index
    %c0_7 = arith.constant 0 : index
    %13 = vector.load %arg4[%c0_6, %c0_7] : memref<64x64xbf16, #tpu.memory_space<vmem>>, vector<64x64xbf16>
    %14 = arith.truncf %12 : vector<48x64xf32> to vector<48x64xbf16>
    %cst_8 = arith.constant dense<0.000000e+00> : vector<48x64xf32>
    %15 = tpu.matmul %14, %13, %cst_8 {dimension_numbers = #tpu.dot_dimension_numbers<[1], [0], [0], [1], [0, 0, 1, 1], [], []>} : vector<48x64xbf16>, vector<64x64xbf16>, vector<48x64xf32> -> vector<48x64xf32>
    %16 = vector.extract_strided_slice %1 {offsets = [1, 0], sizes = [1, 64], strides = [1, 1]} : vector<2x64xf32> to vector<1x64xf32>
    %17 = vector.broadcast %16 : vector<1x64xf32> to vector<48x64xf32>
    %18 = arith.addf %15, %17 : vector<48x64xf32>
    %19 = vector.extract_strided_slice %18 {offsets = [0, 0], sizes = [48, 32], strides = [1, 1]} : vector<48x64xf32> to vector<48x32xf32>
    %cst_9 = arith.constant 0.999994993 : f32
    %20 = vector.broadcast %cst_9 : f32 to vector<48x32xf32>
    %21 = arith.mulf %19, %20 : vector<48x32xf32>
    %22 = vector.extract_strided_slice %18 {offsets = [0, 32], sizes = [48, 32], strides = [1, 1]} : vector<48x64xf32> to vector<48x32xf32>
    %c0_10 = arith.constant 0 : index
    %c0_11 = arith.constant 0 : index
    %23 = vector.load %arg2[%c0_10, %c0_11] : memref<48x1xf32, #tpu.memory_space<vmem>>, vector<48x1xf32>
    %cst_12 = arith.constant 3.14159274 : f32
    %24 = vector.broadcast %cst_12 : f32 to vector<48x1xf32>
    %25 = arith.mulf %24, %23 : vector<48x1xf32>
    %cst_13 = arith.constant 8.000000e+00 : f32
    %26 = vector.broadcast %cst_13 : f32 to vector<48x1xf32>
    %27 = arith.divf %25, %26 : vector<48x1xf32>
    %28 = math.cos %27 : vector<48x1xf32>
    %cst_14 = arith.constant 1.000000e+00 : f32
    %29 = vector.broadcast %cst_14 : f32 to vector<48x1xf32>
    %30 = arith.addf %28, %29 : vector<48x1xf32>
    %cst_15 = arith.constant 5.000000e-01 : f32
    %31 = vector.broadcast %cst_15 : f32 to vector<48x1xf32>
    %32 = arith.mulf %31, %30 : vector<48x1xf32>
    %cst_16 = arith.constant 8.000000e+00 : f32
    %33 = vector.broadcast %cst_16 : f32 to vector<48x1xf32>
    %34 = arith.cmpf ole, %23, %33 : vector<48x1xf32>
    %35 = arith.extui %34 : vector<48x1xi1> to vector<48x1xi32>
    %36 = arith.sitofp %35 : vector<48x1xi32> to vector<48x1xf32>
    %37 = arith.mulf %32, %36 : vector<48x1xf32>
    %38 = arith.negf %21 : vector<48x32xf32>
    %39 = math.exp %38 : vector<48x32xf32>
    %cst_17 = arith.constant 1.000000e+00 : f32
    %40 = vector.broadcast %cst_17 : f32 to vector<48x32xf32>
    %41 = arith.addf %40, %39 : vector<48x32xf32>
    %42 = arith.divf %40, %41 : vector<48x32xf32>
    %43 = vector.broadcast %37 : vector<48x1xf32> to vector<48x32xf32>
    %44 = arith.mulf %42, %43 : vector<48x32xf32>
    %45 = arith.mulf %44, %22 : vector<48x32xf32>
    %46 = arith.truncf %45 : vector<48x32xf32> to vector<48x32xbf16>
    %c0_18 = arith.constant 0 : index
    %c0_19 = arith.constant 0 : index
    %47 = vector.load %arg15[%c0_18, %c0_19] : memref<48x32xbf16, #tpu.memory_space<vmem>>, vector<48x32xbf16>
    tpu.vector_store %arg15[%c0_18, %c0_19], %46 {strides = array<i32>} : memref<48x32xbf16, #tpu.memory_space<vmem>>, vector<48x32xbf16>,
    %c0_20 = arith.constant 0 : index
    %c0_21 = arith.constant 0 : index
    %48 = vector.load %arg12[%c0_20, %c0_21] : memref<10x128xf32, #tpu.memory_space<vmem>>, vector<10x128xf32>
    %c0_22 = arith.constant 0 : index
    %c0_23 = arith.constant 0 : index
    %49 = vector.load %arg6[%c0_22, %c0_23] : memref<48x384xbf16, #tpu.memory_space<vmem>>, vector<48x384xbf16>
    %c0_24 = arith.constant 0 : index
    %c0_25 = arith.constant 0 : index
    %50 = vector.load %arg7[%c0_24, %c0_25] : memref<48x384xbf16, #tpu.memory_space<vmem>>, vector<48x384xbf16>
    %51 = vector.extract_strided_slice %0 {offsets = [0, 0], sizes = [48, 32], strides = [1, 1]} : vector<48x96xbf16> to vector<48x32xbf16>
    %c0_26 = arith.constant 0 : index
    %c0_27 = arith.constant 0 : index
    %52 = vector.load %arg8[%c0_26, %c0_27] : memref<32x128xbf16, #tpu.memory_space<vmem>>, vector<32x128xbf16>
    %cst_28 = arith.constant dense<0.000000e+00> : vector<48x128xf32>
    %53 = tpu.matmul %51, %52, %cst_28 {dimension_numbers = #tpu.dot_dimension_numbers<[1], [0], [0], [1], [0, 0, 1, 1], [], []>} : vector<48x32xbf16>, vector<32x128xbf16>, vector<48x128xf32> -> vector<48x128xf32>
    %54 = vector.extract_strided_slice %48 {offsets = [8, 0], sizes = [1, 128], strides = [1, 1]} : vector<10x128xf32> to vector<1x128xf32>
    %55 = vector.broadcast %54 : vector<1x128xf32> to vector<48x128xf32>
    %56 = arith.addf %53, %55 : vector<48x128xf32>
    %57 = vector.extract_strided_slice %49 {offsets = [0, 0], sizes = [48, 128], strides = [1, 1]} : vector<48x384xbf16> to vector<48x128xbf16>
    %58 = arith.extf %57 : vector<48x128xbf16> to vector<48x128xf32>
    %59 = vector.extract_strided_slice %49 {offsets = [0, 128], sizes = [48, 128], strides = [1, 1]} : vector<48x384xbf16> to vector<48x128xbf16>
    %60 = arith.extf %59 : vector<48x128xbf16> to vector<48x128xf32>
    %61 = vector.extract_strided_slice %50 {offsets = [0, 128], sizes = [48, 128], strides = [1, 1]} : vector<48x384xbf16> to vector<48x128xbf16>
    %62 = arith.extf %61 : vector<48x128xbf16> to vector<48x128xf32>
    %63 = vector.extract_strided_slice %49 {offsets = [0, 256], sizes = [48, 128], strides = [1, 1]} : vector<48x384xbf16> to vector<48x128xbf16>
    %64 = vector.extract_strided_slice %50 {offsets = [0, 256], sizes = [48, 128], strides = [1, 1]} : vector<48x384xbf16> to vector<48x128xbf16>
    %65 = arith.mulf %58, %60 : vector<48x128xf32>
    %cst_29 = arith.constant 0.102062076 : f32
    %66 = vector.broadcast %cst_29 : f32 to vector<48x128xf32>
    %67 = arith.mulf %65, %66 : vector<48x128xf32>
    %68 = arith.mulf %58, %62 : vector<48x128xf32>
    %cst_30 = arith.constant 0.102062076 : f32
    %69 = vector.broadcast %cst_30 : f32 to vector<48x128xf32>
    %70 = arith.mulf %68, %69 : vector<48x128xf32>
    %71 = arith.mulf %58, %56 : vector<48x128xf32>
    %cst_31 = arith.constant 0.102062076 : f32
    %72 = vector.broadcast %cst_31 : f32 to vector<48x128xf32>
    %73 = arith.mulf %71, %72 : vector<48x128xf32>
    %74 = arith.addf %67, %70 : vector<48x128xf32>
    %75 = arith.addf %74, %73 : vector<48x128xf32>
    %76 = arith.mulf %67, %67 : vector<48x128xf32>
    %77 = arith.mulf %70, %70 : vector<48x128xf32>
    %78 = arith.addf %76, %77 : vector<48x128xf32>
    %79 = arith.mulf %73, %73 : vector<48x128xf32>
    %80 = arith.addf %78, %79 : vector<48x128xf32>
    %c0_32 = arith.constant 0 : index
    %c0_33 = arith.constant 0 : index
    %81 = vector.load %arg13[%c0_32, %c0_33] : memref<128x128xf32, #tpu.memory_space<vmem>>, vector<128x128xf32>
    %cst_34 = arith.constant dense<0.000000e+00> : vector<48x128xf32>
    %82 = tpu.matmul %75, %81, %cst_34 {dimension_numbers = #tpu.dot_dimension_numbers<[1], [0], [0], [1], [0, 0, 1, 1], [], []>} : vector<48x128xf32>, vector<128x128xf32>, vector<48x128xf32> -> vector<48x128xf32>
    %c0_35 = arith.constant 0 : index
    %c0_36 = arith.constant 0 : index
    %83 = vector.load %arg13[%c0_35, %c0_36] : memref<128x128xf32, #tpu.memory_space<vmem>>, vector<128x128xf32>
    %cst_37 = arith.constant dense<0.000000e+00> : vector<48x128xf32>
    %84 = tpu.matmul %80, %83, %cst_37 {dimension_numbers = #tpu.dot_dimension_numbers<[1], [0], [0], [1], [0, 0, 1, 1], [], []>} : vector<48x128xf32>, vector<128x128xf32>, vector<48x128xf32> -> vector<48x128xf32>
    %85 = arith.mulf %82, %82 : vector<48x128xf32>
    %86 = arith.subf %84, %85 : vector<48x128xf32>
    %cst_38 = arith.constant 0.000000e+00 : f32
    %87 = vector.broadcast %cst_38 : f32 to vector<48x128xf32>
    %88 = arith.maximumf %86, %87 : vector<48x128xf32>
    %cst_39 = arith.constant 9.99999974E-6 : f32
    %89 = vector.broadcast %cst_39 : f32 to vector<48x128xf32>
    %90 = arith.addf %88, %89 : vector<48x128xf32>
    %91 = math.rsqrt %90 : vector<48x128xf32>
    %92 = arith.subf %67, %82 : vector<48x128xf32>
    %93 = arith.mulf %92, %91 : vector<48x128xf32>
    %94 = vector.extract_strided_slice %48 {offsets = [0, 0], sizes = [1, 128], strides = [1, 1]} : vector<10x128xf32> to vector<1x128xf32>
    %95 = vector.broadcast %94 : vector<1x128xf32> to vector<48x128xf32>
    %96 = arith.mulf %93, %95 : vector<48x128xf32>
    %97 = vector.extract_strided_slice %48 {offsets = [3, 0], sizes = [1, 128], strides = [1, 1]} : vector<10x128xf32> to vector<1x128xf32>
    %98 = vector.broadcast %97 : vector<1x128xf32> to vector<48x128xf32>
    %99 = arith.addf %96, %98 : vector<48x128xf32>
    %100 = arith.negf %99 : vector<48x128xf32>
    %101 = math.exp %100 : vector<48x128xf32>
    %cst_40 = arith.constant 1.000000e+00 : f32
    %102 = vector.broadcast %cst_40 : f32 to vector<48x128xf32>
    %103 = arith.addf %102, %101 : vector<48x128xf32>
    %104 = arith.divf %102, %103 : vector<48x128xf32>
    %105 = arith.subf %70, %82 : vector<48x128xf32>
    %106 = arith.mulf %105, %91 : vector<48x128xf32>
    %107 = vector.extract_strided_slice %48 {offsets = [1, 0], sizes = [1, 128], strides = [1, 1]} : vector<10x128xf32> to vector<1x128xf32>
    %108 = vector.broadcast %107 : vector<1x128xf32> to vector<48x128xf32>
    %109 = arith.mulf %106, %108 : vector<48x128xf32>
    %110 = vector.extract_strided_slice %48 {offsets = [4, 0], sizes = [1, 128], strides = [1, 1]} : vector<10x128xf32> to vector<1x128xf32>
    %111 = vector.broadcast %110 : vector<1x128xf32> to vector<48x128xf32>
    %112 = arith.addf %109, %111 : vector<48x128xf32>
    %113 = arith.negf %112 : vector<48x128xf32>
    %114 = math.exp %113 : vector<48x128xf32>
    %cst_41 = arith.constant 1.000000e+00 : f32
    %115 = vector.broadcast %cst_41 : f32 to vector<48x128xf32>
    %116 = arith.addf %115, %114 : vector<48x128xf32>
    %117 = arith.divf %115, %116 : vector<48x128xf32>
    %118 = arith.subf %73, %82 : vector<48x128xf32>
    %119 = arith.mulf %118, %91 : vector<48x128xf32>
    %120 = vector.extract_strided_slice %48 {offsets = [2, 0], sizes = [1, 128], strides = [1, 1]} : vector<10x128xf32> to vector<1x128xf32>
    %121 = vector.broadcast %120 : vector<1x128xf32> to vector<48x128xf32>
    %122 = arith.mulf %119, %121 : vector<48x128xf32>
    %123 = vector.extract_strided_slice %48 {offsets = [5, 0], sizes = [1, 128], strides = [1, 1]} : vector<10x128xf32> to vector<1x128xf32>
    %124 = vector.broadcast %123 : vector<1x128xf32> to vector<48x128xf32>
    %125 = arith.addf %122, %124 : vector<48x128xf32>
    %126 = arith.negf %125 : vector<48x128xf32>
    %127 = math.exp %126 : vector<48x128xf32>
    %cst_42 = arith.constant 1.000000e+00 : f32
    %128 = vector.broadcast %cst_42 : f32 to vector<48x128xf32>
    %129 = arith.addf %128, %127 : vector<48x128xf32>
    %130 = arith.divf %128, %129 : vector<48x128xf32>
    %131 = arith.truncf %56 : vector<48x128xf32> to vector<48x128xbf16>
    %132 = tpu.concatenate %63, %64, %131 in 1 : vector<48x128xbf16>, vector<48x128xbf16>, vector<48x128xbf16> -> vector<48x384xbf16>
    %c0_43 = arith.constant 0 : index
    %c0_44 = arith.constant 0 : index
    %133 = vector.load %arg9[%c0_43, %c0_44] : memref<384x384xbf16, #tpu.memory_space<vmem>>, vector<384x384xbf16>
    %cst_45 = arith.constant dense<0.000000e+00> : vector<48x384xf32>
    %134 = tpu.matmul %132, %133, %cst_45 {dimension_numbers = #tpu.dot_dimension_numbers<[1], [0], [0], [1], [0, 0, 1, 1], [], []>} : vector<48x384xbf16>, vector<384x384xbf16>, vector<48x384xf32> -> vector<48x384xf32>
    %c0_46 = arith.constant 0 : index
    %c0_47 = arith.constant 0 : index
    %135 = vector.load %arg10[%c0_46, %c0_47] : memref<1x384xf32, #tpu.memory_space<vmem>>, vector<1x384xf32>
    %136 = vector.broadcast %135 : vector<1x384xf32> to vector<48x384xf32>
    %137 = arith.addf %134, %136 : vector<48x384xf32>
    %138 = tpu.concatenate %104, %117, %130 in 1 : vector<48x128xf32>, vector<48x128xf32>, vector<48x128xf32> -> vector<48x384xf32>
    %139 = arith.mulf %137, %138 : vector<48x384xf32>
    %c0_48 = arith.constant 0 : index
    %c0_49 = arith.constant 0 : index
    %140 = vector.load %arg11[%c0_48, %c0_49] : memref<384x128xbf16, #tpu.memory_space<vmem>>, vector<384x128xbf16>
    %141 = arith.truncf %139 : vector<48x384xf32> to vector<48x384xbf16>
    %cst_50 = arith.constant dense<0.000000e+00> : vector<48x128xf32>
    %142 = tpu.matmul %141, %140, %cst_50 {dimension_numbers = #tpu.dot_dimension_numbers<[1], [0], [0], [1], [0, 0, 1, 1], [], []>} : vector<48x384xbf16>, vector<384x128xbf16>, vector<48x128xf32> -> vector<48x128xf32>
    %143 = vector.extract_strided_slice %48 {offsets = [9, 0], sizes = [1, 128], strides = [1, 1]} : vector<10x128xf32> to vector<1x128xf32>
    %144 = vector.broadcast %143 : vector<1x128xf32> to vector<48x128xf32>
    %145 = arith.addf %142, %144 : vector<48x128xf32>
    %c0_51 = arith.constant 0 : index
    %c0_52 = arith.constant 0 : index
    %146 = vector.load %arg14[%c0_51, %c0_52] : memref<128x128xf32, #tpu.memory_space<vmem>>, vector<128x128xf32>
    %cst_53 = arith.constant dense<0.000000e+00> : vector<48x128xf32>
    %147 = tpu.matmul %145, %146, %cst_53 {dimension_numbers = #tpu.dot_dimension_numbers<[1], [0], [0], [1], [0, 0, 1, 1], [], []>} : vector<48x128xf32>, vector<128x128xf32>, vector<48x128xf32> -> vector<48x128xf32>
    %148 = arith.mulf %145, %145 : vector<48x128xf32>
    %c0_54 = arith.constant 0 : index
    %c0_55 = arith.constant 0 : index
    %149 = vector.load %arg14[%c0_54, %c0_55] : memref<128x128xf32, #tpu.memory_space<vmem>>, vector<128x128xf32>
    %cst_56 = arith.constant dense<0.000000e+00> : vector<48x128xf32>
    %150 = tpu.matmul %148, %149, %cst_56 {dimension_numbers = #tpu.dot_dimension_numbers<[1], [0], [0], [1], [0, 0, 1, 1], [], []>} : vector<48x128xf32>, vector<128x128xf32>, vector<48x128xf32> -> vector<48x128xf32>
    %151 = arith.mulf %147, %147 : vector<48x128xf32>
    %152 = arith.subf %150, %151 : vector<48x128xf32>
    %cst_57 = arith.constant 0.000000e+00 : f32
    %153 = vector.broadcast %cst_57 : f32 to vector<48x128xf32>
    %154 = arith.maximumf %152, %153 : vector<48x128xf32>
    %155 = arith.subf %145, %147 : vector<48x128xf32>
    %cst_58 = arith.constant 9.99999974E-6 : f32
    %156 = vector.broadcast %cst_58 : f32 to vector<48x128xf32>
    %157 = arith.addf %154, %156 : vector<48x128xf32>
    %158 = math.rsqrt %157 : vector<48x128xf32>
    %159 = arith.mulf %155, %158 : vector<48x128xf32>
    %160 = vector.extract_strided_slice %48 {offsets = [6, 0], sizes = [1, 128], strides = [1, 1]} : vector<10x128xf32> to vector<1x128xf32>
    %161 = vector.broadcast %160 : vector<1x128xf32> to vector<48x128xf32>
    %162 = arith.mulf %159, %161 : vector<48x128xf32>
    %163 = vector.extract_strided_slice %48 {offsets = [7, 0], sizes = [1, 128], strides = [1, 1]} : vector<10x128xf32> to vector<1x128xf32>
    %164 = vector.broadcast %163 : vector<1x128xf32> to vector<48x128xf32>
    %165 = arith.addf %162, %164 : vector<48x128xf32>
    %166 = arith.truncf %165 : vector<48x128xf32> to vector<48x128xbf16>
    %c0_59 = arith.constant 0 : index
    %c0_60 = arith.constant 0 : index
    %167 = vector.load %arg16[%c0_59, %c0_60] : memref<48x128xbf16, #tpu.memory_space<vmem>>, vector<48x128xbf16>
    tpu.vector_store %arg16[%c0_59, %c0_60], %166 {strides = array<i32>} : memref<48x128xbf16, #tpu.memory_space<vmem>>, vector<48x128xbf16>,
    return
  }
  func.func @transform_0(%arg0: i32) -> (i32, i32) {
    %c0_i32 = arith.constant 0 : i32
    %c0_i32_0 = arith.constant 0 : i32
    return %arg0, %c0_i32 : i32, i32
  }
  func.func @transform_1(%arg0: i32) -> (i32, i32) {
    %c0_i32 = arith.constant 0 : i32
    %c0_i32_0 = arith.constant 0 : i32
    return %arg0, %c0_i32 : i32, i32
  }
  func.func @transform_2(%arg0: i32) -> (i32, i32) {
    %c0_i32 = arith.constant 0 : i32
    %c0_i32_0 = arith.constant 0 : i32
    %c0_i32_1 = arith.constant 0 : i32
    return %c0_i32, %c0_i32_0 : i32, i32
  }
  func.func @transform_3(%arg0: i32) -> (i32, i32) {
    %c0_i32 = arith.constant 0 : i32
    %c0_i32_0 = arith.constant 0 : i32
    %c0_i32_1 = arith.constant 0 : i32
    return %c0_i32, %c0_i32_0 : i32, i32
  }
  func.func @transform_4(%arg0: i32) -> (i32, i32) {
    %c0_i32 = arith.constant 0 : i32
    %c0_i32_0 = arith.constant 0 : i32
    %c0_i32_1 = arith.constant 0 : i32
    return %c0_i32, %c0_i32_0 : i32, i32
  }
  func.func @transform_5(%arg0: i32) -> (i32, i32) {
    %c0_i32 = arith.constant 0 : i32
    %c0_i32_0 = arith.constant 0 : i32
    return %arg0, %c0_i32 : i32, i32
  }
  func.func @transform_6(%arg0: i32) -> (i32, i32) {
    %c0_i32 = arith.constant 0 : i32
    %c0_i32_0 = arith.constant 0 : i32
    return %arg0, %c0_i32 : i32, i32
  }
  func.func @transform_7(%arg0: i32) -> (i32, i32) {
    %c0_i32 = arith.constant 0 : i32
    %c0_i32_0 = arith.constant 0 : i32
    %c0_i32_1 = arith.constant 0 : i32
    return %c0_i32, %c0_i32_0 : i32, i32
  }
  func.func @transform_8(%arg0: i32) -> (i32, i32) {
    %c0_i32 = arith.constant 0 : i32
    %c0_i32_0 = arith.constant 0 : i32
    %c0_i32_1 = arith.constant 0 : i32
    return %c0_i32, %c0_i32_0 : i32, i32
  }
  func.func @transform_9(%arg0: i32) -> (i32, i32) {
    %c0_i32 = arith.constant 0 : i32
    %c0_i32_0 = arith.constant 0 : i32
    %c0_i32_1 = arith.constant 0 : i32
    return %c0_i32, %c0_i32_0 : i32, i32
  }
  func.func @transform_10(%arg0: i32) -> (i32, i32) {
    %c0_i32 = arith.constant 0 : i32
    %c0_i32_0 = arith.constant 0 : i32
    %c0_i32_1 = arith.constant 0 : i32
    return %c0_i32, %c0_i32_0 : i32, i32
  }
  func.func @transform_11(%arg0: i32) -> (i32, i32) {
    %c0_i32 = arith.constant 0 : i32
    %c0_i32_0 = arith.constant 0 : i32
    %c0_i32_1 = arith.constant 0 : i32
    return %c0_i32, %c0_i32_0 : i32, i32
  }
  func.func @transform_12(%arg0: i32) -> (i32, i32) {
    %c0_i32 = arith.constant 0 : i32
    %c0_i32_0 = arith.constant 0 : i32
    %c0_i32_1 = arith.constant 0 : i32
    return %c0_i32, %c0_i32_0 : i32, i32
  }
  func.func @transform_13(%arg0: i32) -> (i32, i32) {
    %c0_i32 = arith.constant 0 : i32
    %c0_i32_0 = arith.constant 0 : i32
    %c0_i32_1 = arith.constant 0 : i32
    return %c0_i32, %c0_i32_0 : i32, i32
  }
  func.func @transform_14(%arg0: i32) -> (i32, i32) {
    %c0_i32 = arith.constant 0 : i32
    %c0_i32_0 = arith.constant 0 : i32
    return %arg0, %c0_i32 : i32, i32
  }
  func.func @transform_15(%arg0: i32) -> (i32, i32) {
    %c0_i32 = arith.constant 0 : i32
    %c0_i32_0 = arith.constant 0 : i32
    return %arg0, %c0_i32 : i32, i32
  }
}

module attributes {stable_mosaic.version = 11 : i64} {
  func.func @kernel(%arg0: i32, %arg1: memref<16x32xf32, #tpu.memory_space<vmem>>, %arg2: memref<16x32xf32, #tpu.memory_space<vmem>>, %arg3: memref<16x128xf32, #tpu.memory_space<vmem>>, %arg4: memref<128x32xf32, #tpu.memory_space<vmem>>, %arg5: memref<32x32xbf16, #tpu.memory_space<vmem>>, %arg6: memref<1x32xf32, #tpu.memory_space<vmem>>, %arg7: memref<3x32xf32, #tpu.memory_space<vmem>>, %arg8: memref<16x32xf32, #tpu.memory_space<vmem>>) attributes {dimension_semantics = [#tpu.dimension_semantics<parallel>], iteration_bounds = array<i64: 1>, scalar_prefetch = 0 : i64, scratch_operands = 0 : i64, tpu.core_type = #tpu.core_type<tc>, window_params = [{transform_indices = @transform_0, window_bounds = array<i64: 16, 32>}, {transform_indices = @transform_1, window_bounds = array<i64: 16, 32>}, {transform_indices = @transform_2, window_bounds = array<i64: 16, 128>}, {pipeline_mode = #tpu.pipeline_mode<synchronous>, transform_indices = @transform_3, window_bounds = array<i64: 128, 32>}, {pipeline_mode = #tpu.pipeline_mode<synchronous>, transform_indices = @transform_4, window_bounds = array<i64: 32, 32>}, {pipeline_mode = #tpu.pipeline_mode<synchronous>, transform_indices = @transform_5, window_bounds = array<i64: 1, 32>}, {pipeline_mode = #tpu.pipeline_mode<synchronous>, transform_indices = @transform_6, window_bounds = array<i64: 3, 32>}, {transform_indices = @transform_7, window_bounds = array<i64: 16, 32>}]} {
    %c0 = arith.constant 0 : index
    %c0_0 = arith.constant 0 : index
    %0 = vector.load %arg1[%c0, %c0_0] : memref<16x32xf32, #tpu.memory_space<vmem>>, vector<16x32xf32>
    %c0_1 = arith.constant 0 : index
    %c0_2 = arith.constant 0 : index
    %1 = vector.load %arg2[%c0_1, %c0_2] : memref<16x32xf32, #tpu.memory_space<vmem>>, vector<16x32xf32>
    %cst = arith.constant 0.999994993 : f32
    %2 = vector.broadcast %cst : f32 to vector<16x32xf32>
    %3 = arith.mulf %1, %2 : vector<16x32xf32>
    %4 = arith.negf %3 : vector<16x32xf32>
    %5 = math.exp %4 : vector<16x32xf32>
    %cst_3 = arith.constant 1.000000e+00 : f32
    %6 = vector.broadcast %cst_3 : f32 to vector<16x32xf32>
    %7 = arith.addf %6, %5 : vector<16x32xf32>
    %8 = arith.divf %6, %7 : vector<16x32xf32>
    %9 = arith.mulf %3, %8 : vector<16x32xf32>
    %10 = arith.addf %9, %0 : vector<16x32xf32>
    %c0_4 = arith.constant 0 : index
    %c0_5 = arith.constant 0 : index
    %11 = vector.load %arg3[%c0_4, %c0_5] : memref<16x128xf32, #tpu.memory_space<vmem>>, vector<16x128xf32>
    %c0_6 = arith.constant 0 : index
    %c0_7 = arith.constant 0 : index
    %12 = vector.load %arg4[%c0_6, %c0_7] : memref<128x32xf32, #tpu.memory_space<vmem>>, vector<128x32xf32>
    %cst_8 = arith.constant dense<0.000000e+00> : vector<16x32xf32>
    %13 = tpu.matmul %11, %12, %cst_8 {dimension_numbers = #tpu.dot_dimension_numbers<[1], [0], [0], [1], [0, 0, 1, 1], [], []>} : vector<16x128xf32>, vector<128x32xf32>, vector<16x32xf32> -> vector<16x32xf32>
    %cst_9 = arith.constant 0.999994993 : f32
    %14 = vector.broadcast %cst_9 : f32 to vector<16x32xf32>
    %15 = arith.mulf %13, %14 : vector<16x32xf32>
    %16 = arith.negf %15 : vector<16x32xf32>
    %17 = math.exp %16 : vector<16x32xf32>
    %cst_10 = arith.constant 1.000000e+00 : f32
    %18 = vector.broadcast %cst_10 : f32 to vector<16x32xf32>
    %19 = arith.addf %18, %17 : vector<16x32xf32>
    %20 = arith.divf %18, %19 : vector<16x32xf32>
    %21 = arith.mulf %15, %20 : vector<16x32xf32>
    %c0_11 = arith.constant 0 : index
    %c0_12 = arith.constant 0 : index
    %22 = vector.load %arg5[%c0_11, %c0_12] : memref<32x32xbf16, #tpu.memory_space<vmem>>, vector<32x32xbf16>
    %23 = arith.truncf %0 : vector<16x32xf32> to vector<16x32xbf16>
    %cst_13 = arith.constant dense<0.000000e+00> : vector<16x32xf32>
    %24 = tpu.matmul %23, %22, %cst_13 {dimension_numbers = #tpu.dot_dimension_numbers<[1], [0], [0], [1], [0, 0, 1, 1], [], []>} : vector<16x32xbf16>, vector<32x32xbf16>, vector<16x32xf32> -> vector<16x32xf32>
    %c0_14 = arith.constant 0 : index
    %c0_15 = arith.constant 0 : index
    %25 = vector.load %arg6[%c0_14, %c0_15] : memref<1x32xf32, #tpu.memory_space<vmem>>, vector<1x32xf32>
    %26 = vector.broadcast %25 : vector<1x32xf32> to vector<16x32xf32>
    %27 = arith.addf %24, %26 : vector<16x32xf32>
    %c0_16 = arith.constant 0 : index
    %c0_17 = arith.constant 0 : index
    %28 = vector.load %arg7[%c0_16, %c0_17] : memref<3x32xf32, #tpu.memory_space<vmem>>, vector<3x32xf32>
    %29 = vector.extract_strided_slice %28 {offsets = [0, 0], sizes = [1, 32], strides = [1, 1]} : vector<3x32xf32> to vector<1x32xf32>
    %30 = vector.broadcast %29 : vector<1x32xf32> to vector<16x32xf32>
    %31 = arith.mulf %21, %30 : vector<16x32xf32>
    %32 = vector.extract_strided_slice %28 {offsets = [1, 0], sizes = [1, 32], strides = [1, 1]} : vector<3x32xf32> to vector<1x32xf32>
    %33 = vector.broadcast %32 : vector<1x32xf32> to vector<16x32xf32>
    %34 = arith.mulf %27, %33 : vector<16x32xf32>
    %35 = arith.addf %31, %34 : vector<16x32xf32>
    %36 = arith.subf %21, %27 : vector<16x32xf32>
    %37 = vector.extract_strided_slice %28 {offsets = [2, 0], sizes = [1, 32], strides = [1, 1]} : vector<3x32xf32> to vector<1x32xf32>
    %38 = vector.broadcast %37 : vector<1x32xf32> to vector<16x32xf32>
    %39 = arith.mulf %36, %38 : vector<16x32xf32>
    %40 = arith.addf %35, %39 : vector<16x32xf32>
    %cst_18 = arith.constant dense<0.000000e+00> : vector<16xf32>
    %41 = vector.multi_reduction <add>, %40, %cst_18 [1] : vector<16x32xf32> to vector<16xf32>
    %42 = vector.shape_cast %41 : vector<16xf32> to vector<16x1xf32>
    %43 = arith.negf %42 : vector<16x1xf32>
    %44 = math.exp %43 : vector<16x1xf32>
    %cst_19 = arith.constant 1.000000e+00 : f32
    %45 = vector.broadcast %cst_19 : f32 to vector<16x1xf32>
    %46 = arith.addf %45, %44 : vector<16x1xf32>
    %47 = arith.divf %45, %46 : vector<16x1xf32>
    %48 = vector.broadcast %47 : vector<16x1xf32> to vector<16x32xf32>
    %49 = arith.mulf %48, %27 : vector<16x32xf32>
    %cst_20 = arith.constant 1.000000e+00 : f32
    %50 = vector.broadcast %cst_20 : f32 to vector<16x1xf32>
    %51 = arith.subf %50, %47 : vector<16x1xf32>
    %52 = vector.broadcast %51 : vector<16x1xf32> to vector<16x32xf32>
    %53 = arith.mulf %52, %21 : vector<16x32xf32>
    %54 = arith.addf %49, %53 : vector<16x32xf32>
    %55 = arith.addf %10, %54 : vector<16x32xf32>
    %c0_21 = arith.constant 0 : index
    %c0_22 = arith.constant 0 : index
    %56 = vector.load %arg8[%c0_21, %c0_22] : memref<16x32xf32, #tpu.memory_space<vmem>>, vector<16x32xf32>
    tpu.vector_store %arg8[%c0_21, %c0_22], %55 {strides = array<i32>} : memref<16x32xf32, #tpu.memory_space<vmem>>, vector<16x32xf32>,
    return
  }
  func.func @transform_0(%arg0: i32) -> (i32, i32) {
    %c0_i32 = arith.constant 0 : i32
    %c0_i32_0 = arith.constant 0 : i32
    return %arg0, %c0_i32 : i32, i32
  }
  func.func @transform_1(%arg0: i32) -> (i32, i32) {
    %c0_i32 = arith.constant 0 : i32
    %c0_i32_0 = arith.constant 0 : i32
    return %arg0, %c0_i32 : i32, i32
  }
  func.func @transform_2(%arg0: i32) -> (i32, i32) {
    %c0_i32 = arith.constant 0 : i32
    %c0_i32_0 = arith.constant 0 : i32
    return %arg0, %c0_i32 : i32, i32
  }
  func.func @transform_3(%arg0: i32) -> (i32, i32) {
    %c0_i32 = arith.constant 0 : i32
    %c0_i32_0 = arith.constant 0 : i32
    %c0_i32_1 = arith.constant 0 : i32
    return %c0_i32, %c0_i32_0 : i32, i32
  }
  func.func @transform_4(%arg0: i32) -> (i32, i32) {
    %c0_i32 = arith.constant 0 : i32
    %c0_i32_0 = arith.constant 0 : i32
    %c0_i32_1 = arith.constant 0 : i32
    return %c0_i32, %c0_i32_0 : i32, i32
  }
  func.func @transform_5(%arg0: i32) -> (i32, i32) {
    %c0_i32 = arith.constant 0 : i32
    %c0_i32_0 = arith.constant 0 : i32
    %c0_i32_1 = arith.constant 0 : i32
    return %c0_i32, %c0_i32_0 : i32, i32
  }
  func.func @transform_6(%arg0: i32) -> (i32, i32) {
    %c0_i32 = arith.constant 0 : i32
    %c0_i32_0 = arith.constant 0 : i32
    %c0_i32_1 = arith.constant 0 : i32
    return %c0_i32, %c0_i32_0 : i32, i32
  }
  func.func @transform_7(%arg0: i32) -> (i32, i32) {
    %c0_i32 = arith.constant 0 : i32
    %c0_i32_0 = arith.constant 0 : i32
    return %arg0, %c0_i32 : i32, i32
  }
}

module attributes {stable_mosaic.version = 11 : i64} {
  func.func @kernel(%arg0: i32, %arg1: memref<16x32xf32, #tpu.memory_space<vmem>>, %arg2: memref<32x64xbf16, #tpu.memory_space<vmem>>, %arg3: memref<1x64xf32, #tpu.memory_space<vmem>>, %arg4: memref<64x32xbf16, #tpu.memory_space<vmem>>, %arg5: memref<1x32xf32, #tpu.memory_space<vmem>>, %arg6: memref<16x32xf32, #tpu.memory_space<vmem>>) attributes {dimension_semantics = [#tpu.dimension_semantics<parallel>], iteration_bounds = array<i64: 1>, scalar_prefetch = 0 : i64, scratch_operands = 0 : i64, tpu.core_type = #tpu.core_type<tc>, window_params = [{transform_indices = @transform_0, window_bounds = array<i64: 16, 32>}, {pipeline_mode = #tpu.pipeline_mode<synchronous>, transform_indices = @transform_1, window_bounds = array<i64: 32, 64>}, {pipeline_mode = #tpu.pipeline_mode<synchronous>, transform_indices = @transform_2, window_bounds = array<i64: 1, 64>}, {pipeline_mode = #tpu.pipeline_mode<synchronous>, transform_indices = @transform_3, window_bounds = array<i64: 64, 32>}, {pipeline_mode = #tpu.pipeline_mode<synchronous>, transform_indices = @transform_4, window_bounds = array<i64: 1, 32>}, {transform_indices = @transform_5, window_bounds = array<i64: 16, 32>}]} {
    %c0 = arith.constant 0 : index
    %c0_0 = arith.constant 0 : index
    %0 = vector.load %arg1[%c0, %c0_0] : memref<16x32xf32, #tpu.memory_space<vmem>>, vector<16x32xf32>
    %c0_1 = arith.constant 0 : index
    %c0_2 = arith.constant 0 : index
    %1 = vector.load %arg2[%c0_1, %c0_2] : memref<32x64xbf16, #tpu.memory_space<vmem>>, vector<32x64xbf16>
    %2 = arith.truncf %0 : vector<16x32xf32> to vector<16x32xbf16>
    %cst = arith.constant dense<0.000000e+00> : vector<16x64xf32>
    %3 = tpu.matmul %2, %1, %cst {dimension_numbers = #tpu.dot_dimension_numbers<[1], [0], [0], [1], [0, 0, 1, 1], [], []>} : vector<16x32xbf16>, vector<32x64xbf16>, vector<16x64xf32> -> vector<16x64xf32>
    %c0_3 = arith.constant 0 : index
    %c0_4 = arith.constant 0 : index
    %4 = vector.load %arg3[%c0_3, %c0_4] : memref<1x64xf32, #tpu.memory_space<vmem>>, vector<1x64xf32>
    %5 = vector.broadcast %4 : vector<1x64xf32> to vector<16x64xf32>
    %6 = arith.addf %3, %5 : vector<16x64xf32>
    %7 = arith.negf %6 : vector<16x64xf32>
    %8 = math.exp %7 : vector<16x64xf32>
    %cst_5 = arith.constant 1.000000e+00 : f32
    %9 = vector.broadcast %cst_5 : f32 to vector<16x64xf32>
    %10 = arith.addf %9, %8 : vector<16x64xf32>
    %11 = arith.divf %9, %10 : vector<16x64xf32>
    %12 = arith.mulf %6, %11 : vector<16x64xf32>
    %c0_6 = arith.constant 0 : index
    %c0_7 = arith.constant 0 : index
    %13 = vector.load %arg4[%c0_6, %c0_7] : memref<64x32xbf16, #tpu.memory_space<vmem>>, vector<64x32xbf16>
    %14 = arith.truncf %12 : vector<16x64xf32> to vector<16x64xbf16>
    %cst_8 = arith.constant dense<0.000000e+00> : vector<16x32xf32>
    %15 = tpu.matmul %14, %13, %cst_8 {dimension_numbers = #tpu.dot_dimension_numbers<[1], [0], [0], [1], [0, 0, 1, 1], [], []>} : vector<16x64xbf16>, vector<64x32xbf16>, vector<16x32xf32> -> vector<16x32xf32>
    %c0_9 = arith.constant 0 : index
    %c0_10 = arith.constant 0 : index
    %16 = vector.load %arg5[%c0_9, %c0_10] : memref<1x32xf32, #tpu.memory_space<vmem>>, vector<1x32xf32>
    %17 = vector.broadcast %16 : vector<1x32xf32> to vector<16x32xf32>
    %18 = arith.addf %15, %17 : vector<16x32xf32>
    %c0_11 = arith.constant 0 : index
    %c0_12 = arith.constant 0 : index
    %19 = vector.load %arg6[%c0_11, %c0_12] : memref<16x32xf32, #tpu.memory_space<vmem>>, vector<16x32xf32>
    tpu.vector_store %arg6[%c0_11, %c0_12], %18 {strides = array<i32>} : memref<16x32xf32, #tpu.memory_space<vmem>>, vector<16x32xf32>,
    return
  }
  func.func @transform_0(%arg0: i32) -> (i32, i32) {
    %c0_i32 = arith.constant 0 : i32
    %c0_i32_0 = arith.constant 0 : i32
    return %arg0, %c0_i32 : i32, i32
  }
  func.func @transform_1(%arg0: i32) -> (i32, i32) {
    %c0_i32 = arith.constant 0 : i32
    %c0_i32_0 = arith.constant 0 : i32
    %c0_i32_1 = arith.constant 0 : i32
    return %c0_i32, %c0_i32_0 : i32, i32
  }
  func.func @transform_2(%arg0: i32) -> (i32, i32) {
    %c0_i32 = arith.constant 0 : i32
    %c0_i32_0 = arith.constant 0 : i32
    %c0_i32_1 = arith.constant 0 : i32
    return %c0_i32, %c0_i32_0 : i32, i32
  }
  func.func @transform_3(%arg0: i32) -> (i32, i32) {
    %c0_i32 = arith.constant 0 : i32
    %c0_i32_0 = arith.constant 0 : i32
    %c0_i32_1 = arith.constant 0 : i32
    return %c0_i32, %c0_i32_0 : i32, i32
  }
  func.func @transform_4(%arg0: i32) -> (i32, i32) {
    %c0_i32 = arith.constant 0 : i32
    %c0_i32_0 = arith.constant 0 : i32
    %c0_i32_1 = arith.constant 0 : i32
    return %c0_i32, %c0_i32_0 : i32, i32
  }
  func.func @transform_5(%arg0: i32) -> (i32, i32) {
    %c0_i32 = arith.constant 0 : i32
    %c0_i32_0 = arith.constant 0 : i32
    return %arg0, %c0_i32 : i32, i32
  }
}

module attributes {stable_mosaic.version = 11 : i64} {
  func.func @kernel(%arg0: i32, %arg1: memref<16x64xf32, #tpu.memory_space<vmem>>, %arg2: memref<64x32xf32, #tpu.memory_space<vmem>>, %arg3: memref<1x32xf32, #tpu.memory_space<vmem>>, %arg4: memref<32x1xf32, #tpu.memory_space<vmem>>, %arg5: memref<1x1xf32, #tpu.memory_space<vmem>>, %arg6: memref<16x1xf32, #tpu.memory_space<vmem>>) attributes {dimension_semantics = [#tpu.dimension_semantics<parallel>], iteration_bounds = array<i64: 1>, scalar_prefetch = 0 : i64, scratch_operands = 0 : i64, tpu.core_type = #tpu.core_type<tc>, window_params = [{transform_indices = @transform_0, window_bounds = array<i64: 16, 64>}, {pipeline_mode = #tpu.pipeline_mode<synchronous>, transform_indices = @transform_1, window_bounds = array<i64: 64, 32>}, {pipeline_mode = #tpu.pipeline_mode<synchronous>, transform_indices = @transform_2, window_bounds = array<i64: 1, 32>}, {pipeline_mode = #tpu.pipeline_mode<synchronous>, transform_indices = @transform_3, window_bounds = array<i64: 32, 1>}, {pipeline_mode = #tpu.pipeline_mode<synchronous>, transform_indices = @transform_4, window_bounds = array<i64: 1, 1>}, {transform_indices = @transform_5, window_bounds = array<i64: 16, 1>}]} {
    %c0 = arith.constant 0 : index
    %c0_0 = arith.constant 0 : index
    %0 = vector.load %arg1[%c0, %c0_0] : memref<16x64xf32, #tpu.memory_space<vmem>>, vector<16x64xf32>
    %c0_1 = arith.constant 0 : index
    %c0_2 = arith.constant 0 : index
    %1 = vector.load %arg2[%c0_1, %c0_2] : memref<64x32xf32, #tpu.memory_space<vmem>>, vector<64x32xf32>
    %cst = arith.constant dense<0.000000e+00> : vector<16x32xf32>
    %2 = tpu.matmul %0, %1, %cst {dimension_numbers = #tpu.dot_dimension_numbers<[1], [0], [0], [1], [0, 0, 1, 1], [], []>} : vector<16x64xf32>, vector<64x32xf32>, vector<16x32xf32> -> vector<16x32xf32>
    %c0_3 = arith.constant 0 : index
    %c0_4 = arith.constant 0 : index
    %3 = vector.load %arg3[%c0_3, %c0_4] : memref<1x32xf32, #tpu.memory_space<vmem>>, vector<1x32xf32>
    %4 = vector.broadcast %3 : vector<1x32xf32> to vector<16x32xf32>
    %5 = arith.addf %2, %4 : vector<16x32xf32>
    %6 = arith.negf %5 : vector<16x32xf32>
    %7 = math.exp %6 : vector<16x32xf32>
    %cst_5 = arith.constant 1.000000e+00 : f32
    %8 = vector.broadcast %cst_5 : f32 to vector<16x32xf32>
    %9 = arith.addf %8, %7 : vector<16x32xf32>
    %10 = arith.divf %8, %9 : vector<16x32xf32>
    %11 = arith.mulf %5, %10 : vector<16x32xf32>
    %c0_6 = arith.constant 0 : index
    %c0_7 = arith.constant 0 : index
    %12 = vector.load %arg4[%c0_6, %c0_7] : memref<32x1xf32, #tpu.memory_space<vmem>>, vector<32x1xf32>
    %cst_8 = arith.constant dense<0.000000e+00> : vector<16x1xf32>
    %13 = tpu.matmul %11, %12, %cst_8 {dimension_numbers = #tpu.dot_dimension_numbers<[1], [0], [0], [1], [0, 0, 1, 1], [], []>} : vector<16x32xf32>, vector<32x1xf32>, vector<16x1xf32> -> vector<16x1xf32>
    %c0_9 = arith.constant 0 : index
    %c0_10 = arith.constant 0 : index
    %14 = vector.load %arg5[%c0_9, %c0_10] : memref<1x1xf32, #tpu.memory_space<vmem>>, vector<1x1xf32>
    %15 = vector.broadcast %14 : vector<1x1xf32> to vector<16x1xf32>
    %16 = arith.addf %13, %15 : vector<16x1xf32>
    %c0_11 = arith.constant 0 : index
    %c0_12 = arith.constant 0 : index
    %17 = vector.load %arg6[%c0_11, %c0_12] : memref<16x1xf32, #tpu.memory_space<vmem>>, vector<16x1xf32>
    tpu.vector_store %arg6[%c0_11, %c0_12], %16 {strides = array<i32>} : memref<16x1xf32, #tpu.memory_space<vmem>>, vector<16x1xf32>,
    return
  }
  func.func @transform_0(%arg0: i32) -> (i32, i32) {
    %c0_i32 = arith.constant 0 : i32
    %c0_i32_0 = arith.constant 0 : i32
    return %arg0, %c0_i32 : i32, i32
  }
  func.func @transform_1(%arg0: i32) -> (i32, i32) {
    %c0_i32 = arith.constant 0 : i32
    %c0_i32_0 = arith.constant 0 : i32
    %c0_i32_1 = arith.constant 0 : i32
    return %c0_i32, %c0_i32_0 : i32, i32
  }
  func.func @transform_2(%arg0: i32) -> (i32, i32) {
    %c0_i32 = arith.constant 0 : i32
    %c0_i32_0 = arith.constant 0 : i32
    %c0_i32_1 = arith.constant 0 : i32
    return %c0_i32, %c0_i32_0 : i32, i32
  }
  func.func @transform_3(%arg0: i32) -> (i32, i32) {
    %c0_i32 = arith.constant 0 : i32
    %c0_i32_0 = arith.constant 0 : i32
    %c0_i32_1 = arith.constant 0 : i32
    return %c0_i32, %c0_i32_0 : i32, i32
  }
  func.func @transform_4(%arg0: i32) -> (i32, i32) {
    %c0_i32 = arith.constant 0 : i32
    %c0_i32_0 = arith.constant 0 : i32
    %c0_i32_1 = arith.constant 0 : i32
    return %c0_i32, %c0_i32_0 : i32, i32
  }
  func.func @transform_5(%arg0: i32) -> (i32, i32) {
    %c0_i32 = arith.constant 0 : i32
    %c0_i32_0 = arith.constant 0 : i32
    return %arg0, %c0_i32 : i32, i32
  }
}

</mosaic_0001>

<bundles_post_ra>
// kernel: _lambda_.13
= control target key start
LH: loop header
LB: loop body
LE: loop exit
PB: predicated region body
PF: predicated region fallthrough
CT: control target
= control target key end

     0   :  { %v229_v0 = vmov 0.0   ;;  %vm230_vm0 = vmmov 0   ;;  %v231_v3 = vmov 0   ;;  %vm75_vm1 = vcmask 261120   ;;  %s291_s1 = inlined_call_operand.vmem [shape: bf16[32,384], index: 1, kind: input, shape index: {}]   ;;  %s292_s0 = inlined_call_operand.vmem [shape: f32[16,32], index: 0, kind: input, shape index: {}]   ;;  %s293_s2 = inlined_call_operand.vmem [shape: f32[1,384], index: 2, kind: input, shape index: {}]   ;;  %s294_s3 = inlined_call_operand.vmem [shape: bf16[16,384], index: 3, kind: output, shape index: {}]  }
   0x1   :  { %210 = vmatprep.subr.bf16.mxu1 %v229_v0  ;;  %v221_v1 = vld [vmem:[%s291_s1 + $0x1c] ss:$12 sps:$4 sm:$0xff]   ;;  %214 = vmatprep.mubr.msk.bf16.mxu1 %vm230_vm0, %v229_v0  ;;  %v223_v2 = vld [vmem:[%s291_s1 + $0x20] ss:$12 sps:$4 sm:$0xff]   ;;  %v224_v4 = vld [vmem:[%s291_s1 + $0x18] ss:$12 sps:$4 sm:$0xff]   ;;  %v28_v11 = vlaneseq }
   0x2   :  { %111 = vmatprep.mubr.bf16.mxu0 %v231_v3  ;;  %91 = vmatprep.subr.bf16.mxu0 %v221_v1  ;;  %v225_v5 = vld [vmem:[%s291_s1 + $0x4] ss:$12 sps:$4 sm:$0xff]   ;;  %v227_v6 = vld [vmem:[%s291_s1 + $0x8] ss:$12 sps:$4 sm:$0xff]   ;;  %v228_v7 = vld [vmem:[%s291_s1] ss:$12 sps:$4 sm:$0xff]  }
   0x3   :  { %211 = vmatpush3.bf16.msra.mxu1 %v223_v2  ;;  %92 = vmatpush1.bf16.msra.mxu0 %v224_v4  ;;  %v15_v8 = vld [vmem:[%s292_s0] sm:$0xff]  ;;  %v16_v9 = vld [vmem:[%s292_s0 + $0x8] sm:$0xff]  ;;  %v29_v12 = vshrl.u32 %v28_v11, 7 }
   0x4   :  { %212 = vmatprep.subr.bf16.mxu1 %v229_v0  ;;  %93 = vmatprep.subr.bf16.mxu0 %v225_v5  ;;  %v25_v10 = vpack.c.bf16 %v16_v9, %v15_v8  ;;  %v26_v14 = vld [vmem:[%s293_s2] sm:$0x7] }
   0x5   :  { %v38_v13 = vsub.s32 2, %v29_v12  ;;  %v30_v15 = vsub.s32 0, %v29_v12  ;;  %v34_v16 = vsub.s32 1, %v29_v12 }
   0x7   :  { %213 = vmatpush3.bf16.msra.mxu1 %v227_v6  ;;  %94 = vmatpush1.bf16.msra.mxu0 %v228_v7  ;;  %v39_v17 = vrot.slane %v26_v14, %v38_v13  ;;  %v31_v19 = vrot.slane %v26_v14, %v30_v15  ;;  %v35_v20 = vrot.slane %v26_v14, %v34_v16 }
   0xa   :  { %215 = vmatmul.mubr.msk.bf16.vlgmr.msra.gmra.mxu1 %vm75_vm1, %v25_v10  ;;  %197 = vmatmul.mubr.msk.bf16.vlgmr.msra.gmra.mxu0 %vm75_vm1, %v25_v10 }
  0xca   :  { %v156_v18 = vpop.f32.mrf.mxu1  ;;  %v113_v22 = vpop.f32.mrf.mxu0 }
  0xcb   :  { %v157_v21 = vadd.f32 %v156_v18, %v39_v17  ;;  %v114_v26 = vadd.f32 %v113_v22, %v31_v19 }
  0xcc   :  { %v216_v23 = vpop.f32.mrf.mxu1  ;;  %v115_v25 = vpop.f32.mrf.mxu0 }
  0xcd   :  { %v204_v24 = vpack.c.bf16 %v157_v21, %v157_v21  ;;  %v116_v27 = vadd.f32 %v115_v25, %v35_v20 }
  0xce   :  { %v159_v28 = vpop.f32.mrf.mxu1  ;;  %v117_v30 = vpop.f32.mrf.mxu0 }
  0xcf   :  { %184 = vst [vmem:[%s294_s3 + $0x8] sm:$0xf] %v204_v24  ;;  %v160_v29 = vadd.f32 %v159_v28, %v39_v17  ;;  %v203_v31 = vpack.c.bf16 %v116_v27, %v114_v26  ;;  %v118_v35 = vadd.f32 %v117_v30, %v31_v19 }
  0xd0   :  { %v217_v32 = vpop.f32.mrf.mxu1  ;;  %v119_v34 = vpop.f32.mrf.mxu0 }
  0xd1   :  { %v206_v33 = vpack.c.bf16 %v160_v29, %v160_v29  ;;  %183 = vst [vmem:[%s294_s3] sm:$0xff] %v203_v31  ;;  %v120_v36 = vadd.f32 %v119_v34, %v35_v20 }
  0xd3   :  { %186 = vst [vmem:[%s294_s3 + $0x14] sm:$0xf] %v206_v33  ;;  %v205_v37 = vpack.c.bf16 %v120_v36, %v118_v35 }
  0xd5   :  { %185 = vst [vmem:[%s294_s3 + $0xc] sm:$0xff] %v205_v37 }

// kernel: _lambda_.11
= control target key start
LH: loop header
LB: loop body
LE: loop exit
PB: predicated region body
PF: predicated region fallthrough
CT: control target
= control target key end

     0   :  { %v523_v0 = vmov 0.0   ;;  %vm524_vm0 = vmmov 0   ;;  %vm39_vm1 = vcmask 130048   ;;  %vm106_vm2 = vcmask 261120   ;;  %s648_s2 = inlined_call_operand.vmem [shape: bf16[16,32], index: 2, kind: input, shape index: {}]   ;;  %s649_s1 = inlined_call_operand.vmem [shape: f32[16,16], index: 1, kind: input, shape index: {}]   ;;  %s650_s3 = inlined_call_operand.vmem [shape: bf16[128,32], index: 3, kind: input, shape index: {}]   ;;  %s651_s0 = inlined_call_operand.vmem [shape: f32[16,32], index: 0, kind: input, shape index: {}]   ;;  %s652_s4 = inlined_call_operand.vmem [shape: f32[6,32], index: 4, kind: input, shape index: {}]   ;;  %s653_s5 = inlined_call_operand.vmem [shape: f32[16,32], index: 5, kind: output, shape index: {}]  }
   0x1   :  { %454 = vmatprep.subr.bf16.mxu0 %v523_v0  ;;  %v494_v1 = vld [vmem:[%s648_s2] sm:$0xff]   ;;  %456 = vmatprep.mubr.msk.bf16.mxu0 %vm524_vm0, %v523_v0  ;;  %v25_v3 = vld [vmem:[%s649_s1 + $0x8] sm:$0xff]  ;;  %v497_v7 = vld [vmem:[%s650_s3 + $0x18] sm:$0xff]   ;;  %v29_v12 = vlaneseq }
   0x2   :  { %v24_v2 = vld [vmem:[%s649_s1] sm:$0xff]  ;;  %460 = vmatprep.subr.bf16.mxu1 %v523_v0  ;;  %464 = vmatprep.mubr.msk.bf16.mxu1 %vm524_vm0, %v523_v0  ;;  %v495_v5 = vld [vmem:[%s650_s3 + $0x8] sm:$0xff]   ;;  %v498_v11 = vld [vmem:[%s650_s3 + $0x10] sm:$0xff]  }
   0x3   :  { %455 = vmatpush3.bf16.msra.mxu0 %v494_v1  ;;  %v28_v4 = vpack.c.bf16 %v25_v3, %v24_v2  ;;  %v496_v6 = vld [vmem:[%s650_s3] sm:$0xff]   ;;  %v23_v9 = vld [vmem:[%s651_s0 + $0x8] sm:$0xff]  ;;  %461 = vmatpush3.bf16.msra.mxu1 %v497_v7  ;;  %v598_v13 = vshrl.u32 %v29_v12, 7 }
   0x4   :  { %468 = vmatprep.subr.bf16.mxu0 %v523_v0  ;;  %v22_v8 = vld [vmem:[%s651_s0] sm:$0xff]  ;;  %462 = vmatprep.subr.bf16.mxu1 %v523_v0  ;;  %v499_v28 = vld [vmem:[%s650_s3 + $0x28] sm:$0xff]  }
   0x5   :  { %v88_v10 = vpack.c.bf16 %v23_v9, %v22_v8  ;;  %v31_v14 = vsub.s32 0, %v598_v13  ;;  %v604_v15 = vld [vmem:[%s652_s4] sm:$0x3f]  ;;  %v209_v30 = vsub.s32 1, %v598_v13  ;;  %v240_v57 = vsub.s32 2, %v598_v13 }
   0x6   :  { %457 = vmatmul.mubr.msk.bf16.vlgmr.msra.gmra.mxu0 %vm39_vm1, %v28_v4  ;;  %v500_v29 = vld [vmem:[%s650_s3 + $0x20] sm:$0xff]  }
   0x7   :  { %469 = vmatpush3.bf16.msra.mxu0 %v495_v5  ;;  %472 = vmatprep.mubr.msk.bf16.mxu0 %vm524_vm0, %v523_v0  ;;  %v32_v17 = vrot.slane %v604_v15, %v31_v14  ;;  %v210_v31 = vrot.slane %v604_v15, %v209_v30  ;;  %v241_v58 = vrot.slane %v604_v15, %v240_v57 }
   0x8   :  { %470 = vmatprep.subr.bf16.mxu0 %v523_v0  ;;  %463 = vmatpush3.bf16.msra.mxu1 %v498_v11 }
   0x9   :  { %476 = vmatprep.subr.bf16.mxu1 %v523_v0 }
   0xb   :  { %471 = vmatpush3.bf16.msra.mxu0 %v496_v6 }
   0xc   :  { %484 = vmatprep.subr.bf16.mxu0 %v523_v0 }
   0xe   :  { %473 = vmatmul.mubr.msk.bf16.vlgmr.msra.gmra.mxu0 %vm106_vm2, %v88_v10 }
   0xf   :  { %488 = vmatprep.mubr.msk.bf16.mxu0 %vm524_vm0, %v523_v0 }
  0xc6   :  { %v77_v16 = vpop.f32.mrf.mxu0 }
  0xc7   :  { %v78_v20 = vadd.f32 %v77_v16, %v32_v17 }
  0xc8   :  { %v458_v18 = vpop.f32.mrf.mxu0 }
  0xca   :  { %v80_v19 = vpop.f32.mrf.mxu0 }
  0xcb   :  { %v81_v21 = vadd.f32 %v80_v19, %v32_v17 }
  0xcc   :  { %v459_v22 = vpop.f32.mrf.mxu0 }
  0xcd   :  { %v93_v23 = vpack.c.bf16 %v81_v21, %v78_v20 }
  0xce   :  { %v200_v24 = vpop.f32.mrf.mxu0 }
  0xcf   :  { %465 = vmatmul.mubr.msk.bf16.vlgmr.msra.gmra.mxu1 %vm106_vm2, %v93_v23 }
  0xd0   :  { %480 = vmatprep.mubr.msk.bf16.mxu1 %vm524_vm0, %v523_v0  ;;  %v474_v25 = vpop.f32.mrf.mxu0  ;;  %477 = vmatpush3.bf16.msra.mxu1 %v499_v28 }
  0xd1   :  { %478 = vmatprep.subr.bf16.mxu1 %v523_v0 }
  0xd2   :  { %v203_v26 = vpop.f32.mrf.mxu0 }
  0xd4   :  { %v475_v27 = vpop.f32.mrf.mxu0  ;;  %479 = vmatpush3.bf16.msra.mxu1 %v500_v29 }
  0xd5   :  { %v502_v27 = vld [vmem:[%s650_s3 + $0x30] sm:$0xff]  }
 0x18f   :  { %v144_v32 = vpop.f32.mrf.mxu1 }
 0x190   :  { %v201_v33 = vadd.f32 %v200_v24, %v144_v32 }
 0x191   :  { %v466_v34 = vpop.f32.mrf.mxu1 }
 0x192   :  { %v211_v35 = vadd.f32 %v210_v31, %v201_v33  ;;  %v341_v34 = vsub.s32 3, %v598_v13 }
 0x193   :  { %v147_v36 = vpop.f32.mrf.mxu1 }
 0x194   :  { %v430_v37 = vmul.f32 -1.442695, %v211_v35  ;;  %v204_v38 = vadd.f32 %v203_v26, %v147_v36  ;;  %v501_v26 = vld [vmem:[%s650_s3 + $0x38] sm:$0xff]  }
 0x195   :  { %v467_v39 = vpop.f32.mrf.mxu1  ;;  %485 = vmatpush3.bf16.msra.mxu0 %v501_v26 }
 0x196   :  { %503 = vpow2.f32 %v430_v37  ;;  %v212_v40 = vadd.f32 %v210_v31, %v204_v38  ;;  %486 = vmatprep.subr.bf16.mxu0 %v523_v0  ;;  %v342_v37 = vrot.slane %v604_v15, %v341_v34  ;;  %v347_v38 = vsub.s32 4, %v598_v13 }
 0x198   :  { %v431_v41 = vmul.f32 -1.442695, %v212_v40 }
 0x199   :  { %487 = vmatpush3.bf16.msra.mxu0 %v502_v27 }
 0x19a   :  { %505 = vpow2.f32 %v431_v41  ;;  %v348_v41 = vrot.slane %v604_v15, %v347_v38 }
 0x1a3   :  { %v504_v42 = vpop.eup %503 }
 0x1a4   :  { %v219_v43 = vadd.f32 1.0, %v504_v42 }
 0x1a6   :  { %507 = vrcp.f32 %v219_v43 }
 0x1a7   :  { %v506_v44 = vpop.eup %505 }
 0x1a8   :  { %v220_v45 = vadd.f32 1.0, %v506_v44 }
 0x1aa   :  { %509 = vrcp.f32 %v220_v45 }
 0x1b3   :  { %v508_v46 = vpop.eup %507 }
 0x1b4   :  { %v227_v47 = vsub.f32 1.0, %v508_v46  ;;  %v225_v51 = vmul.f32 %v508_v46, %v22_v8  ;;  %v358_v46 = vsub.s32 5, %v598_v13 }
 0x1b6   :  { %v229_v50 = vmul.f32 %v227_v47, %v78_v20  ;;  %v359_v47 = vrot.slane %v604_v15, %v358_v46 }
 0x1b7   :  { %v510_v48 = vpop.eup %509 }
 0x1b8   :  { %v228_v49 = vsub.f32 1.0, %v510_v48  ;;  %v226_v52 = vmul.f32 %v510_v48, %v23_v9  ;;  %v231_v54 = vadd.f32 %v229_v50, %v225_v51 }
 0x1ba   :  { %v230_v53 = vmul.f32 %v228_v49, %v81_v21 }
 0x1bc   :  { %v232_v55 = vadd.f32 %v230_v53, %v226_v52 }
 0x1be   :  { %v237_v56 = vpack.c.bf16 %v232_v55, %v231_v54 }
 0x1c0   :  { %481 = vmatmul.mubr.msk.bf16.vlgmr.msra.gmra.mxu1 %vm106_vm2, %v237_v56 }
 0x280   :  { %v291_v59 = vpop.f32.mrf.mxu1 }
 0x281   :  { %v292_v60 = vadd.f32 %v291_v59, %v241_v58 }
 0x282   :  { %v482_v61 = vpop.f32.mrf.mxu1 }
 0x283   :  { %v435_v62 = vmul.f32 -1.442695, %v292_v60 }
 0x284   :  { %v294_v63 = vpop.f32.mrf.mxu1 }
 0x285   :  { %511 = vpow2.f32 %v435_v62  ;;  %v295_v1 = vadd.f32 %v294_v63, %v241_v58 }
 0x286   :  { %v483_v2 = vpop.f32.mrf.mxu1 }
 0x287   :  { %v436_v3 = vmul.f32 -1.442695, %v295_v1 }
 0x289   :  { %513 = vpow2.f32 %v436_v3 }
 0x292   :  { %v512_v4 = vpop.eup %511 }
 0x293   :  { %v304_v5 = vadd.f32 1.0, %v512_v4 }
 0x295   :  { %515 = vrcp.f32 %v304_v5 }
 0x296   :  { %v514_v6 = vpop.eup %513 }
 0x297   :  { %v305_v7 = vadd.f32 1.0, %v514_v6 }
 0x299   :  { %517 = vrcp.f32 %v305_v7 }
 0x2a2   :  { %v516_v8 = vpop.eup %515 }
 0x2a3   :  { %v310_v9 = vmul.f32 %v516_v8, %v292_v60 }
 0x2a5   :  { %v312_v10 = vsel %vm106_vm2, %v310_v9, 0.0 }
 0x2a6   :  { %v518_v11 = vpop.eup %517  ;;  %313 = vadd.xlane.f32.xlu0 %v312_v10 }
 0x2a7   :  { %v311_v12 = vmul.f32 %v518_v11, %v295_v1 }
 0x2a9   :  { %v315_v14 = vsel %vm106_vm2, %v311_v12, 0.0 }
 0x2aa   :  { %316 = vadd.xlane.f32.xlu0 %v315_v14 }
 0x32f   :  { %v314_v16 = vpop.xlane.xlu0 %313 }
 0x330   :  { %v319_v17 = vmul.f32 0.03125, %v314_v16 }
 0x332   :  { %v321_v18 = vsub.f32 %v310_v9, %v319_v17 }
 0x333   :  { %v317_v19 = vpop.xlane.xlu0 %316 }
 0x334   :  { %v320_v20 = vmul.f32 0.03125, %v317_v19  ;;  %v323_v21 = vmul.f32 %v321_v18, %v321_v18 }
 0x336   :  { %v322_v22 = vsub.f32 %v311_v12, %v320_v20  ;;  %v325_v23 = vsel %vm106_vm2, %v323_v21, 0.0 }
 0x337   :  { %326 = vadd.xlane.f32.xlu1 %v325_v23 }
 0x338   :  { %v324_v24 = vmul.f32 %v322_v22, %v322_v22 }
 0x33a   :  { %v328_v25 = vsel %vm106_vm2, %v324_v24, 0.0 }
 0x33b   :  { %329 = vadd.xlane.f32.xlu1 %v328_v25 }
 0x3c0   :  { %v327_v28 = vpop.xlane.xlu1 %326 }
 0x3c1   :  { %v331_v29 = vmul.f32 0.03125, %v327_v28 }
 0x3c3   :  { %v333_v30 = vadd.f32 1e-05, %v331_v29 }
 0x3c4   :  { %v330_v31 = vpop.xlane.xlu1 %329 }
 0x3c5   :  { %519 = vrsqrt.f32 %v333_v30  ;;  %v332_v32 = vmul.f32 0.03125, %v330_v31 }
 0x3c7   :  { %v334_v33 = vadd.f32 1e-05, %v332_v32 }
 0x3c9   :  { %521 = vrsqrt.f32 %v334_v33 }
 0x3d2   :  { %v520_v35 = vpop.eup %519 }
 0x3d3   :  { %v337_v36 = vmul.f32 %v520_v35, %v321_v18 }
 0x3d5   :  { %v343_v0 = vmul.f32 %v342_v37, %v337_v36 }
 0x3d6   :  { %v522_v39 = vpop.eup %521 }
 0x3d7   :  { %v338_v40 = vmul.f32 %v522_v39, %v322_v22  ;;  %v349_v43 = vadd.f32 %v348_v41, %v343_v0 }
 0x3d9   :  { %v344_v42 = vmul.f32 %v342_v37, %v338_v40 }
 0x3db   :  { %v350_v44 = vadd.f32 %v348_v41, %v344_v42 }
 0x3dd   :  { %v355_v45 = vpack.c.bf16 %v350_v44, %v349_v43 }
 0x3df   :  { %489 = vmatmul.mubr.msk.bf16.vlgmr.msra.gmra.mxu0 %vm106_vm2, %v355_v45 }
 0x49f   :  { %v409_v48 = vpop.f32.mrf.mxu0 }
 0x4a0   :  { %v410_v49 = vadd.f32 %v409_v48, %v359_v47 }
 0x4a1   :  { %v490_v50 = vpop.f32.mrf.mxu0 }
 0x4a2   :  { %416 = vst.msk [vmem:[%s653_s5] sm:$0xff] %vm106_vm2, %v410_v49 }
 0x4a3   :  { %v412_v51 = vpop.f32.mrf.mxu0 }
 0x4a4   :  { %v413_v52 = vadd.f32 %v412_v51, %v359_v47 }
 0x4a5   :  { %v491_v53 = vpop.f32.mrf.mxu0 }
 0x4a6   :  { %417 = vst.msk [vmem:[%s653_s5 + $0x8] sm:$0xff] %vm106_vm2, %v413_v52 }

// kernel: _lambda_.12
= control target key start
LH: loop header
LB: loop body
LE: loop exit
PB: predicated region body
PF: predicated region fallthrough
CT: control target
= control target key end

     0   :  { %v440_v0 = vmov 0   ;;  %v441_v7 = vmov 0.0   ;;  %vm442_vm0 = vmmov 0   ;;  %vm123_vm1 = vcmask 261120   ;;  %s563_s0 = inlined_call_operand.vmem [shape: f32[48,1], index: 0, kind: input, shape index: {}]   ;;  %s564_s2 = inlined_call_operand.vmem [shape: bf16[32,32], index: 2, kind: input, shape index: {}]   ;;  %s565_s1 = inlined_call_operand.vmem [shape: f32[1,32], index: 1, kind: input, shape index: {}]   ;;  %s566_s4 = inlined_call_operand.vmem [shape: bf16[32,32], index: 4, kind: input, shape index: {}]   ;;  %s567_s3 = inlined_call_operand.vmem [shape: f32[1,32], index: 3, kind: input, shape index: {}]   ;;  %s568_s5 = inlined_call_operand.vmem [shape: f32[1,32], index: 5, kind: input, shape index: {}]   ;;  %s569_s6 = inlined_call_operand.vmem [shape: f32[48,32], index: 6, kind: output, shape index: {}]  }
   0x1   :  { %399 = vset.pattern.permute.xlu1 %v440_v0  ;;  %398 = vset.pattern.permute.xlu0 %v440_v0  ;;  %v26_v1 = vld [vmem:[%s563_s0 + $0x10] sm:$0xff]  ;;  %v24_v2 = vld [vmem:[%s563_s0] sm:$0xff]  ;;  %v27_v3 = vld [vmem:[%s563_s0 + $0x18] sm:$0xff] }
   0x2   :  { %43 = vperm.xlu1 %399, %v26_v1   ;;  %33 = vperm.xlu0 %398, %v24_v2   ;;  %v25_v4 = vld [vmem:[%s563_s0 + $0x8] sm:$0xff]  ;;  %v28_v6 = vld [vmem:[%s563_s0 + $0x20] sm:$0xff] }
   0x3   :  { %v29_v5 = vld [vmem:[%s563_s0 + $0x28] sm:$0xff]  ;;  %363 = vmatprep.subr.bf16.mxu0 %v441_v7  ;;  %367 = vmatprep.mubr.msk.bf16.mxu0 %vm442_vm0, %v441_v7  ;;  %v401_v9 = vld [vmem:[%s564_s2] sm:$0xff]  }
   0x4   :  { %v400_v8 = vld [vmem:[%s564_s2 + $0x8] sm:$0xff]   ;;  %379 = vmatprep.subr.bf16.mxu1 %v441_v7  ;;  %383 = vmatprep.mubr.msk.bf16.mxu1 %vm442_vm0, %v441_v7  ;;  %v334_v10 = vld [vmem:[%s565_s1] ss:$0 sm:$0xff] }
   0x5   :  { %364 = vmatpush3.bf16.msra.mxu0 %v400_v8  ;;  %v402_v50 = vld [vmem:[%s566_s4 + $0x8] sm:$0xff]   ;;  %v403_v51 = vld [vmem:[%s566_s4] sm:$0xff]  }
   0x6   :  { %48 = vperm.xlu1 %399, %v27_v3   ;;  %38 = vperm.xlu0 %398, %v25_v4   ;;  %v335_v52 = vld [vmem:[%s567_s3] ss:$0 sm:$0xff] }
   0x7   :  { %365 = vmatprep.subr.bf16.mxu0 %v441_v7  ;;  %380 = vmatpush3.bf16.msra.mxu1 %v402_v50 }
   0x8   :  { %381 = vmatprep.subr.bf16.mxu1 %v441_v7 }
   0x9   :  { %366 = vmatpush3.bf16.msra.mxu0 %v401_v9 }
   0xa   :  { %58 = vperm.xlu1 %399, %v29_v5   ;;  %53 = vperm.xlu0 %398, %v28_v6  }
   0xb   :  { %382 = vmatpush3.bf16.msra.mxu1 %v403_v51 }
  0x7d   :  { %v44_v11 = vpop.permute.xlu1 %43  ;;  %v34_v12 = vpop.permute.xlu0 %33 }
  0x7e   :  { %v67_v13 = vsub.f32 %v34_v12, %v334_v10  ;;  %v69_v14 = vsub.f32 %v44_v11, %v334_v10 }
  0x80   :  { %v73_v15 = vmul.f32 -3.875, %v67_v13  ;;  %v75_v21 = vmul.f32 -3.875, %v69_v14 }
  0x81   :  { %v49_v16 = vpop.permute.xlu1 %48  ;;  %v39_v17 = vpop.permute.xlu0 %38 }
  0x82   :  { %v79_v18 = vmul.f32 %v73_v15, %v67_v13  ;;  %v70_v19 = vsub.f32 %v49_v16, %v334_v10  ;;  %v68_v20 = vsub.f32 %v39_v17, %v334_v10  ;;  %v81_v28 = vmul.f32 %v75_v21, %v69_v14 }
  0x84   :  { %v74_v22 = vmul.f32 -3.875, %v68_v20  ;;  %v76_v23 = vmul.f32 -3.875, %v70_v19  ;;  %v85_v25 = vmul.f32 1.442695, %v79_v18  ;;  %v89_v33 = vmul.f32 1.442695, %v81_v28 }
  0x85   :  { %v59_v24 = vpop.permute.xlu1 %58  ;;  %v54_v27 = vpop.permute.xlu0 %53 }
  0x86   :  { %v80_v26 = vmul.f32 %v74_v22, %v68_v20  ;;  %v72_v30 = vsub.f32 %v59_v24, %v334_v10  ;;  %v82_v31 = vmul.f32 %v76_v23, %v70_v19  ;;  %v71_v32 = vsub.f32 %v54_v27, %v334_v10 }
  0x87   :  { %404 = vpow2.f32 %v85_v25 }
  0x88   :  { %v87_v29 = vmul.f32 1.442695, %v80_v26  ;;  %v78_v34 = vmul.f32 -3.875, %v72_v30  ;;  %v91_v35 = vmul.f32 1.442695, %v82_v31  ;;  %v77_v36 = vmul.f32 -3.875, %v71_v32 }
  0x8a   :  { %406 = vpow2.f32 %v87_v29  ;;  %v84_v37 = vmul.f32 %v78_v34, %v72_v30  ;;  %v83_v38 = vmul.f32 %v77_v36, %v71_v32 }
  0x8b   :  { %408 = vpow2.f32 %v89_v33 }
  0x8c   :  { %410 = vpow2.f32 %v91_v35  ;;  %v95_v39 = vmul.f32 1.442695, %v84_v37  ;;  %v93_v40 = vmul.f32 1.442695, %v83_v38 }
  0x8e   :  { %412 = vpow2.f32 %v95_v39 }
  0x8f   :  { %414 = vpow2.f32 %v93_v40 }
  0x94   :  { %v405_v41 = vpop.eup %404 }
  0x97   :  { %v407_v42 = vpop.eup %406 }
  0x98   :  { %v101_v43 = vpack.c.bf16 %v407_v42, %v405_v41  ;;  %v409_v44 = vpop.eup %408  ;;  %v347_v41 = vld [vmem:[%s568_s5] ss:$0 sm:$0xff] }
  0x99   :  { %v411_v45 = vpop.eup %410 }
  0x9a   :  { %368 = vmatmul.mubr.msk.bf16.vlgmr.msra.gmra.mxu0 %vm123_vm1, %v101_v43  ;;  %v102_v46 = vpack.c.bf16 %v411_v45, %v409_v44 }
  0x9b   :  { %371 = vmatprep.mubr.msk.bf16.mxu0 %vm442_vm0, %v441_v7  ;;  %v413_v47 = vpop.eup %412 }
  0x9c   :  { %v415_v48 = vpop.eup %414 }
  0x9d   :  { %v103_v49 = vpack.c.bf16 %v413_v47, %v415_v48 }
  0xa2   :  { %372 = vmatmul.mubr.msk.bf16.gmra.mxu0 %vm123_vm1, %v102_v46 }
  0xa3   :  { %375 = vmatprep.mubr.msk.bf16.mxu0 %vm442_vm0, %v441_v7 }
  0xaa   :  { %376 = vmatmul.mubr.msk.bf16.gmra.mxu0 %vm123_vm1, %v103_v49 }
 0x15a   :  { %v167_v53 = vpop.f32.mrf.mxu0 }
 0x15b   :  { %v168_v54 = vadd.f32 %v335_v52, %v167_v53 }
 0x15c   :  { %v369_v55 = vpop.f32.mrf.mxu0 }
 0x15d   :  { %v341_v56 = vmul.f32 -1.442695, %v168_v54 }
 0x15e   :  { %v170_v57 = vpop.f32.mrf.mxu0 }
 0x15f   :  { %416 = vpow2.f32 %v341_v56  ;;  %v171_v58 = vadd.f32 %v335_v52, %v170_v57 }
 0x160   :  { %v370_v59 = vpop.f32.mrf.mxu0 }
 0x161   :  { %v342_v60 = vmul.f32 -1.442695, %v171_v58 }
 0x162   :  { %v175_v61 = vpop.f32.mrf.mxu0 }
 0x163   :  { %418 = vpow2.f32 %v342_v60  ;;  %v176_v62 = vadd.f32 %v335_v52, %v175_v61 }
 0x164   :  { %v373_v63 = vpop.f32.mrf.mxu0 }
 0x165   :  { %v343_v0 = vmul.f32 -1.442695, %v176_v62 }
 0x166   :  { %v178_v1 = vpop.f32.mrf.mxu0 }
 0x167   :  { %420 = vpow2.f32 %v343_v0  ;;  %v179_v2 = vadd.f32 %v335_v52, %v178_v1 }
 0x168   :  { %v374_v3 = vpop.f32.mrf.mxu0 }
 0x169   :  { %v344_v4 = vmul.f32 -1.442695, %v179_v2 }
 0x16a   :  { %v183_v5 = vpop.f32.mrf.mxu0 }
 0x16b   :  { %422 = vpow2.f32 %v344_v4  ;;  %v184_v6 = vadd.f32 %v335_v52, %v183_v5 }
 0x16c   :  { %v417_v8 = vpop.eup %416  ;;  %v377_v9 = vpop.f32.mrf.mxu0 }
 0x16d   :  { %v208_v10 = vadd.f32 1.0, %v417_v8  ;;  %v345_v11 = vmul.f32 -1.442695, %v184_v6 }
 0x16e   :  { %v186_v12 = vpop.f32.mrf.mxu0 }
 0x16f   :  { %v187_v13 = vadd.f32 %v335_v52, %v186_v12  ;;  %424 = vpow2.f32 %v345_v11 }
 0x170   :  { %v419_v14 = vpop.eup %418  ;;  %v378_v15 = vpop.f32.mrf.mxu0  ;;  %426 = vrcp.f32 %v208_v10 }
 0x171   :  { %v209_v16 = vadd.f32 1.0, %v419_v14  ;;  %v346_v17 = vmul.f32 -1.442695, %v187_v13 }
 0x173   :  { %428 = vrcp.f32 %v209_v16 }
 0x174   :  { %v421_v18 = vpop.eup %420  ;;  %430 = vpow2.f32 %v346_v17 }
 0x175   :  { %v210_v19 = vadd.f32 1.0, %v421_v18 }
 0x177   :  { %432 = vrcp.f32 %v210_v19 }
 0x178   :  { %v423_v20 = vpop.eup %422 }
 0x179   :  { %v211_v21 = vadd.f32 1.0, %v423_v20 }
 0x17b   :  { %434 = vrcp.f32 %v211_v21 }
 0x17c   :  { %v425_v22 = vpop.eup %424 }
 0x17d   :  { %v427_v23 = vpop.eup %426  ;;  %v212_v24 = vadd.f32 1.0, %v425_v22 }
 0x17e   :  { %v226_v27 = vmul.f32 %v427_v23, %v168_v54 }
 0x17f   :  { %436 = vrcp.f32 %v212_v24 }
 0x180   :  { %v429_v25 = vpop.eup %428 }
 0x181   :  { %v431_v26 = vpop.eup %430  ;;  %v227_v28 = vmul.f32 %v429_v25, %v171_v58 }
 0x182   :  { %v213_v29 = vadd.f32 1.0, %v431_v26 }
 0x183   :  { %v236_v30 = vpack.c.bf16 %v227_v28, %v226_v27 }
 0x184   :  { %438 = vrcp.f32 %v213_v29  ;;  %v433_v31 = vpop.eup %432 }
 0x185   :  { %384 = vmatmul.mubr.msk.bf16.vlgmr.msra.gmra.mxu1 %vm123_vm1, %v236_v30  ;;  %v228_v33 = vmul.f32 %v433_v31, %v176_v62 }
 0x186   :  { %387 = vmatprep.mubr.msk.bf16.mxu1 %vm442_vm0, %v441_v7 }
 0x188   :  { %v435_v32 = vpop.eup %434 }
 0x189   :  { %v229_v34 = vmul.f32 %v435_v32, %v179_v2 }
 0x18b   :  { %v237_v35 = vpack.c.bf16 %v229_v34, %v228_v33 }
 0x18c   :  { %v437_v36 = vpop.eup %436 }
 0x18d   :  { %388 = vmatmul.mubr.msk.bf16.gmra.mxu1 %vm123_vm1, %v237_v35  ;;  %v230_v38 = vmul.f32 %v437_v36, %v184_v6 }
 0x18e   :  { %391 = vmatprep.mubr.msk.bf16.mxu1 %vm442_vm0, %v441_v7 }
 0x191   :  { %v439_v37 = vpop.eup %438 }
 0x192   :  { %v231_v39 = vmul.f32 %v439_v37, %v187_v13 }
 0x194   :  { %v238_v40 = vpack.c.bf16 %v231_v39, %v230_v38 }
 0x196   :  { %392 = vmatmul.mubr.msk.bf16.gmra.mxu1 %vm123_vm1, %v238_v40 }
 0x245   :  { %v301_v42 = vpop.f32.mrf.mxu1 }
 0x246   :  { %v302_v43 = vadd.f32 %v347_v41, %v301_v42 }
 0x247   :  { %v385_v44 = vpop.f32.mrf.mxu1 }
 0x248   :  { %324 = vst.msk [vmem:[%s569_s6] sm:$0xff] %vm123_vm1, %v302_v43 }
 0x249   :  { %v304_v7 = vpop.f32.mrf.mxu1 }
 0x24a   :  { %v305_v45 = vadd.f32 %v347_v41, %v304_v7 }
 0x24b   :  { %v386_v46 = vpop.f32.mrf.mxu1 }
 0x24c   :  { %325 = vst.msk [vmem:[%s569_s6 + $0x8] sm:$0xff] %vm123_vm1, %v305_v45 }
 0x24d   :  { %v309_v47 = vpop.f32.mrf.mxu1 }
 0x24e   :  { %v310_v48 = vadd.f32 %v347_v41, %v309_v47 }
 0x24f   :  { %v389_v49 = vpop.f32.mrf.mxu1 }
 0x250   :  { %326 = vst.msk [vmem:[%s569_s6 + $0x10] sm:$0xff] %vm123_vm1, %v310_v48 }
 0x251   :  { %v312_v50 = vpop.f32.mrf.mxu1 }
 0x252   :  { %v313_v51 = vadd.f32 %v347_v41, %v312_v50 }
 0x253   :  { %v390_v52 = vpop.f32.mrf.mxu1 }
 0x254   :  { %327 = vst.msk [vmem:[%s569_s6 + $0x18] sm:$0xff] %vm123_vm1, %v313_v51 }
 0x256   :  { %v317_v53 = vpop.f32.mrf.mxu1 }
 0x257   :  { %v318_v54 = vadd.f32 %v347_v41, %v317_v53 }
 0x258   :  { %v393_v55 = vpop.f32.mrf.mxu1 }
 0x259   :  { %328 = vst.msk [vmem:[%s569_s6 + $0x20] sm:$0xff] %vm123_vm1, %v318_v54 }
 0x25a   :  { %v320_v56 = vpop.f32.mrf.mxu1 }
 0x25b   :  { %v321_v57 = vadd.f32 %v347_v41, %v320_v56 }
 0x25c   :  { %v394_v58 = vpop.f32.mrf.mxu1 }
 0x25d   :  { %329 = vst.msk [vmem:[%s569_s6 + $0x28] sm:$0xff] %vm123_vm1, %v321_v57 }

// kernel: _lambda_.15
= control target key start
LH: loop header
LB: loop body
LE: loop exit
PB: predicated region body
PF: predicated region fallthrough
CT: control target
= control target key end

     0   :  { %v388_v2 = vmov 0.0   ;;  %vm389_vm0 = vmmov 0   ;;  %vm182_vm1 = vcmask 261120   ;;  %v228_v38 = vlaneseq  ;;  %s542_s3 = inlined_call_operand.vmem [shape: f32[128,32], index: 3, kind: input, shape index: {}]   ;;  %s543_s2 = inlined_call_operand.vmem [shape: f32[16,128], index: 2, kind: input, shape index: {}]   ;;  %s544_s4 = inlined_call_operand.vmem [shape: bf16[32,32], index: 4, kind: input, shape index: {}]   ;;  %s545_s0 = inlined_call_operand.vmem [shape: f32[16,32], index: 0, kind: input, shape index: {}]   ;;  %s546_s5 = inlined_call_operand.vmem [shape: f32[1,32], index: 5, kind: input, shape index: {}]   ;;  %s547_s6 = inlined_call_operand.vmem [shape: f32[3,32], index: 6, kind: input, shape index: {}]   ;;  %s548_s1 = inlined_call_operand.vmem [shape: f32[16,32], index: 1, kind: input, shape index: {}]   ;;  %s549_s7 = inlined_call_operand.vmem [shape: f32[16,32], index: 7, kind: output, shape index: {}]  }
   0x1   :  { %v66_v0 = vld [vmem:[%s542_s3 + $0x78] sm:$0xff]  ;;  %v65_v1 = vld [vmem:[%s542_s3 + $0x70] sm:$0xff]  ;;  %352 = vmatprep.subr.bf16.mxu1 %v388_v2  ;;  %356 = vmatprep.mubr.msk.bf16.mxu1 %vm389_vm0, %v388_v2  ;;  %v64_v3 = vld [vmem:[%s542_s3 + $0x68] sm:$0xff] }
   0x2   :  { %317 = vmatprep.subr.mxu0 %v66_v0  ;;  %v63_v4 = vld [vmem:[%s542_s3 + $0x60] sm:$0xff]  ;;  %v62_v5 = vld [vmem:[%s542_s3 + $0x58] sm:$0xff]  ;;  %v362_v7 = vld [vmem:[%s544_s4 + $0x8] sm:$0xff]   ;;  %v229_v39 = vshrl.u32 %v228_v38, 7 }
   0x3   :  { %318 = vmatpush3.msra.mxu0 %v66_v0  ;;  %v49_v6 = vld [vmem:[%s543_s2] sm:$0xff]  ;;  %v61_v8 = vld [vmem:[%s542_s3 + $0x50] sm:$0xff]  ;;  %353 = vmatpush3.bf16.msra.mxu1 %v362_v7  ;;  %v465_v11 = vld [vmem:[%s545_s0 + $0x8] sm:$0xff] }
   0x4   :  { %319 = vmatprep.subr.mxu0 %v65_v1  ;;  %349 = vmatprep.mubr.f32.mxu0 %v49_v6  ;;  %v363_v9 = vld [vmem:[%s544_s4] sm:$0xff]   ;;  %v60_v12 = vld [vmem:[%s542_s3 + $0x48] sm:$0xff]  ;;  %v58_v15 = vld [vmem:[%s542_s3 + $0x38] sm:$0xff]  ;;  %v236_v40 = vsub.s32 1, %v229_v39  ;;  %v230_v41 = vsub.s32 0, %v229_v39  ;;  %v246_v45 = vsub.s32 2, %v229_v39 }
   0x5   :  { %320 = vmatpush3.msra.mxu0 %v65_v1  ;;  %v460_v10 = vld [vmem:[%s545_s0] sm:$0xff]  ;;  %354 = vmatprep.subr.bf16.mxu1 %v388_v2  ;;  %v57_v16 = vld [vmem:[%s542_s3 + $0x30] sm:$0xff]  ;;  %v56_v17 = vld [vmem:[%s542_s3 + $0x28] sm:$0xff] }
   0x6   :  { %321 = vmatprep.subr.mxu0 %v64_v3  ;;  %v162_v13 = vpack.c.bf16 %v465_v11, %v460_v10  ;;  %v59_v14 = vld [vmem:[%s542_s3 + $0x40] sm:$0xff]  ;;  %v54_v19 = vld [vmem:[%s542_s3 + $0x18] sm:$0xff]  ;;  %v53_v20 = vld [vmem:[%s542_s3 + $0x10] sm:$0xff] }
   0x7   :  { %322 = vmatpush3.msra.mxu0 %v64_v3  ;;  %355 = vmatpush3.bf16.msra.mxu1 %v363_v9  ;;  %v55_v18 = vld [vmem:[%s542_s3 + $0x20] sm:$0xff]  ;;  %v52_v21 = vld [vmem:[%s542_s3 + $0x8] sm:$0xff] }
   0x8   :  { %323 = vmatprep.subr.mxu0 %v63_v4  ;;  %v51_v22 = vld [vmem:[%s542_s3] sm:$0xff]  ;;  %v50_v23 = vld [vmem:[%s543_s2 + $0x8] sm:$0xff] }
   0x9   :  { %324 = vmatpush3.msra.mxu0 %v63_v4  ;;  %v290_v42 = vld [vmem:[%s546_s5] ss:$0 sm:$0xff]  ;;  %v30_v7 = vld [vmem:[%s548_s1 + $0x8] sm:$0xff] }
   0xa   :  { %325 = vmatprep.subr.mxu0 %v62_v5  ;;  %357 = vmatmul.mubr.msk.bf16.vlgmr.msra.gmra.mxu1 %vm182_vm1, %v162_v13  ;;  %v227_v43 = vld [vmem:[%s547_s6] sm:$0x7]  ;;  %v287_v9 = vmul.f32 -0.999995, %v30_v7 }
   0xb   :  { %326 = vmatpush3.msra.mxu0 %v62_v5  ;;  %v237_v47 = vrot.slane %v227_v43, %v236_v40  ;;  %v231_v49 = vrot.slane %v227_v43, %v230_v41  ;;  %v247_v55 = vrot.slane %v227_v43, %v246_v45  ;;  %v29_v6 = vld [vmem:[%s548_s1] sm:$0xff] }
   0xc   :  { %327 = vmatprep.subr.mxu0 %v61_v8  ;;  %v37_v13 = vmul.f32 1.442695, %v287_v9 }
   0xd   :  { %328 = vmatpush3.msra.mxu0 %v61_v8  ;;  %v286_v8 = vmul.f32 -0.999995, %v29_v6 }
   0xe   :  { %329 = vmatprep.subr.mxu0 %v60_v12 }
   0xf   :  { %330 = vmatpush3.msra.mxu0 %v60_v12  ;;  %v35_v12 = vmul.f32 1.442695, %v286_v8 }
  0x10   :  { %331 = vmatprep.subr.mxu0 %v59_v14 }
  0x11   :  { %332 = vmatpush3.msra.mxu0 %v59_v14 }
  0x12   :  { %333 = vmatprep.subr.mxu0 %v58_v15 }
  0x13   :  { %334 = vmatpush3.msra.mxu0 %v58_v15 }
  0x14   :  { %335 = vmatprep.subr.mxu0 %v57_v16 }
  0x15   :  { %336 = vmatpush3.msra.mxu0 %v57_v16 }
  0x16   :  { %337 = vmatprep.subr.mxu0 %v56_v17 }
  0x17   :  { %338 = vmatpush3.msra.mxu0 %v56_v17 }
  0x18   :  { %339 = vmatprep.subr.mxu0 %v55_v18 }
  0x19   :  { %340 = vmatpush3.msra.mxu0 %v55_v18 }
  0x1a   :  { %341 = vmatprep.subr.mxu0 %v54_v19 }
  0x1b   :  { %342 = vmatpush3.msra.mxu0 %v54_v19 }
  0x1c   :  { %343 = vmatprep.subr.mxu0 %v53_v20 }
  0x1d   :  { %344 = vmatpush3.msra.mxu0 %v53_v20 }
  0x1e   :  { %345 = vmatprep.subr.mxu0 %v52_v21 }
  0x1f   :  { %346 = vmatpush3.msra.mxu0 %v52_v21 }
  0x20   :  { %347 = vmatprep.subr.mxu0 %v51_v22 }
  0x21   :  { %348 = vmatpush3.msra.mxu0 %v51_v22 }
  0x22   :  { %350 = vmatmul.mubr.f32.vlgmr.msra.gmra.mxu0 %v50_v23 }
  0xca   :  { %v220_v24 = vpop.f32.mrf.mxu1 }
  0xcb   :  { %v509_v44 = vadd.f32 %v290_v42, %v220_v24 }
  0xcc   :  { %v358_v25 = vpop.f32.mrf.mxu1 }
  0xcd   :  { %v238_v54 = vmul.f32 %v237_v47, %v509_v44 }
  0xce   :  { %v223_v26 = vpop.f32.mrf.mxu1 }
  0xcf   :  { %v511_v48 = vadd.f32 %v290_v42, %v223_v26  ;;  %v31_v26 = vmul.f32 0.999995, %v29_v6 }
  0xd0   :  { %v359_v27 = vpop.f32.mrf.mxu1 }
  0xd1   :  { %v239_v57 = vmul.f32 %v237_v47, %v511_v48 }
  0xe2   :  { %v351_v28 = vpop.f32.mrf.mxu0 }
  0xe3   :  { %v289_v29 = vmul.f32 -0.999995, %v351_v28  ;;  %v143_v46 = vmul.f32 0.999995, %v351_v28 }
  0xe4   :  { %v133_v30 = vpop.f32.mrf.mxu0 }
  0xe5   :  { %v148_v31 = vmul.f32 1.442695, %v289_v29  ;;  %v288_v32 = vmul.f32 -0.999995, %v133_v30  ;;  %v142_v52 = vmul.f32 0.999995, %v133_v30 }
  0xe6   :  { %v32_v29 = vmul.f32 0.999995, %v30_v7 }
  0xe7   :  { %364 = vpow2.f32 %v148_v31  ;;  %v146_v33 = vmul.f32 1.442695, %v288_v32 }
  0xe9   :  { %366 = vpow2.f32 %v146_v33 }
  0xf4   :  { %v365_v34 = vpop.eup %364 }
  0xf5   :  { %v151_v35 = vadd.f32 1.0, %v365_v34 }
  0xf6   :  { %v367_v36 = vpop.eup %366 }
  0xf7   :  { %368 = vrcp.f32 %v151_v35  ;;  %v150_v37 = vadd.f32 1.0, %v367_v36 }
  0xf9   :  { %370 = vrcp.f32 %v150_v37 }
  0xfa   :  { %372 = vpow2.f32 %v35_v12 }
  0xfb   :  { %374 = vpow2.f32 %v37_v13 }
 0x104   :  { %v369_v50 = vpop.eup %368 }
 0x105   :  { %v513_v51 = vmul.f32 %v369_v50, %v143_v46 }
 0x106   :  { %v371_v53 = vpop.eup %370 }
 0x107   :  { %v156_v56 = vmul.f32 %v371_v53, %v142_v52  ;;  %v243_v58 = vsub.f32 %v513_v51, %v511_v48  ;;  %v233_v59 = vmul.f32 %v231_v49, %v513_v51  ;;  %v373_v18 = vpop.eup %372 }
 0x108   :  { %v375_v19 = vpop.eup %374  ;;  %v39_v20 = vadd.f32 1.0, %v373_v18 }
 0x109   :  { %v242_v60 = vsub.f32 %v156_v56, %v509_v44  ;;  %v232_v61 = vmul.f32 %v231_v49, %v156_v56  ;;  %v241_v0 = vadd.f32 %v239_v57, %v233_v59  ;;  %v249_v1 = vmul.f32 %v247_v55, %v243_v58 }
 0x10a   :  { %v40_v21 = vadd.f32 1.0, %v375_v19 }
 0x10b   :  { %v240_v62 = vadd.f32 %v238_v54, %v232_v61  ;;  %v248_v63 = vmul.f32 %v247_v55, %v242_v60  ;;  %v251_v4 = vadd.f32 %v249_v1, %v241_v0 }
 0x10d   :  { %v250_v2 = vadd.f32 %v248_v63, %v240_v62  ;;  %v255_v5 = vsel %vm182_vm1, %v251_v4, 0.0 }
 0x10f   :  { %v252_v3 = vsel %vm182_vm1, %v250_v2, 0.0 }
 0x110   :  { %253 = vadd.xlane.f32.xlu0 %v252_v3 }
 0x114   :  { %256 = vadd.xlane.f32.xlu0 %v255_v5 }
 0x199   :  { %v254_v14 = vpop.xlane.xlu0 %253 }
 0x19a   :  { %v294_v15 = vmul.f32 -1.442695, %v254_v14 }
 0x19c   :  { %376 = vpow2.f32 %v294_v15 }
 0x19d   :  { %v257_v16 = vpop.xlane.xlu0 %256 }
 0x19e   :  { %v295_v17 = vmul.f32 -1.442695, %v257_v16 }
 0x1a0   :  { %378 = vpow2.f32 %v295_v17 }
 0x1a1   :  { %380 = vrcp.f32 %v39_v20 }
 0x1a2   :  { %382 = vrcp.f32 %v40_v21 }
 0x1a9   :  { %v377_v22 = vpop.eup %376 }
 0x1aa   :  { %v264_v23 = vadd.f32 1.0, %v377_v22 }
 0x1ac   :  { %384 = vrcp.f32 %v264_v23 }
 0x1ad   :  { %v379_v24 = vpop.eup %378 }
 0x1ae   :  { %v265_v25 = vadd.f32 1.0, %v379_v24  ;;  %v381_v27 = vpop.eup %380 }
 0x1af   :  { %v383_v28 = vpop.eup %382  ;;  %v45_v30 = vmul.f32 %v381_v27, %v31_v26 }
 0x1b0   :  { %386 = vrcp.f32 %v265_v25  ;;  %v46_v33 = vmul.f32 %v383_v28, %v32_v29 }
 0x1b1   :  { %v47_v34 = vadd.f32 %v45_v30, %v460_v10 }
 0x1b2   :  { %v48_v40 = vadd.f32 %v46_v33, %v465_v11 }
 0x1b9   :  { %v385_v31 = vpop.eup %384 }
 0x1ba   :  { %v272_v32 = vsub.f32 1.0, %v385_v31  ;;  %v270_v35 = vmul.f32 %v385_v31, %v509_v44 }
 0x1bc   :  { %v274_v36 = vmul.f32 %v272_v32, %v156_v56 }
 0x1bd   :  { %v387_v37 = vpop.eup %386 }
 0x1be   :  { %v276_v38 = vadd.f32 %v274_v36, %v270_v35  ;;  %v273_v39 = vsub.f32 1.0, %v387_v37  ;;  %v271_v42 = vmul.f32 %v387_v37, %v511_v48 }
 0x1c0   :  { %v278_v41 = vadd.f32 %v276_v38, %v47_v34  ;;  %v275_v43 = vmul.f32 %v273_v39, %v513_v51 }
 0x1c2   :  { %280 = vst.msk [vmem:[%s549_s7] sm:$0xff] %vm182_vm1, %v278_v41  ;;  %v277_v45 = vadd.f32 %v275_v43, %v271_v42 }
 0x1c4   :  { %v279_v10 = vadd.f32 %v277_v45, %v48_v40 }
 0x1c6   :  { %281 = vst.msk [vmem:[%s549_s7 + $0x8] sm:$0xff] %vm182_vm1, %v279_v10 }

// kernel: _lambda_.16
= control target key start
LH: loop header
LB: loop body
LE: loop exit
PB: predicated region body
PF: predicated region fallthrough
CT: control target
= control target key end

     0   :  { %v253_v0 = vmov 0.0   ;;  %vm254_vm0 = vmmov 0   ;;  %vm47_vm1 = vcmask 261120   ;;  %vm146_vm2 = vcmask 523264   ;;  %s324_s1 = inlined_call_operand.vmem [shape: bf16[32,64], index: 1, kind: input, shape index: {}]   ;;  %s325_s0 = inlined_call_operand.vmem [shape: f32[16,32], index: 0, kind: input, shape index: {}]   ;;  %s326_s3 = inlined_call_operand.vmem [shape: bf16[64,32], index: 3, kind: input, shape index: {}]   ;;  %s327_s2 = inlined_call_operand.vmem [shape: f32[1,64], index: 2, kind: input, shape index: {}]   ;;  %s328_s4 = inlined_call_operand.vmem [shape: f32[1,32], index: 4, kind: input, shape index: {}]   ;;  %s329_s5 = inlined_call_operand.vmem [shape: f32[16,32], index: 5, kind: output, shape index: {}]  }
   0x1   :  { %217 = vmatprep.subr.bf16.mxu0 %v253_v0  ;;  %v239_v1 = vld [vmem:[%s324_s1 + $0x8] sm:$0xff]   ;;  %221 = vmatprep.mubr.msk.bf16.mxu0 %vm254_vm0, %v253_v0  ;;  %v240_v2 = vld [vmem:[%s324_s1] sm:$0xff]   ;;  %v241_v6 = vld [vmem:[%s326_s3 + $0x18] sm:$0xff]  }
   0x2   :  { %225 = vmatprep.subr.bf16.mxu1 %v253_v0  ;;  %233 = vmatprep.mubr.msk.bf16.mxu1 %vm254_vm0, %v253_v0  ;;  %v21_v3 = vld [vmem:[%s325_s0] sm:$0xff]  ;;  %v22_v4 = vld [vmem:[%s325_s0 + $0x8] sm:$0xff]  ;;  %v242_v7 = vld [vmem:[%s326_s3 + $0x10] sm:$0xff]  }
   0x3   :  { %218 = vmatpush3.bf16.msra.mxu0 %v239_v1  ;;  %v27_v5 = vpack.c.bf16 %v22_v4, %v21_v3  ;;  %226 = vmatpush3.bf16.msra.mxu1 %v241_v6  ;;  %v243_v8 = vld [vmem:[%s326_s3 + $0x8] sm:$0xff]   ;;  %v244_v9 = vld [vmem:[%s326_s3] sm:$0xff]  }
   0x4   :  { %219 = vmatprep.subr.bf16.mxu0 %v253_v0  ;;  %227 = vmatprep.subr.bf16.mxu1 %v253_v0  ;;  %v197_v10 = vld [vmem:[%s327_s2] ss:$0 sm:$0xff] }
   0x5   :  { %v203_v28 = vld [vmem:[%s328_s4] ss:$0 sm:$0xff] }
   0x7   :  { %220 = vmatpush3.bf16.msra.mxu0 %v240_v2  ;;  %228 = vmatpush3.bf16.msra.mxu1 %v242_v7 }
   0x8   :  { %229 = vmatprep.subr.bf16.mxu1 %v253_v0 }
   0xa   :  { %222 = vmatmul.mubr.msk.bf16.vlgmr.msra.gmra.mxu0 %vm47_vm1, %v27_v5 }
   0xb   :  { %230 = vmatpush3.bf16.msra.mxu1 %v243_v8 }
   0xc   :  { %231 = vmatprep.subr.bf16.mxu1 %v253_v0 }
   0xf   :  { %232 = vmatpush3.bf16.msra.mxu1 %v244_v9 }
  0xca   :  { %v85_v11 = vpop.f32.mrf.mxu0 }
  0xcb   :  { %v86_v12 = vadd.f32 %v197_v10, %v85_v11 }
  0xcc   :  { %v223_v13 = vpop.f32.mrf.mxu0 }
  0xcd   :  { %v201_v14 = vmul.f32 -1.442695, %v86_v12 }
  0xce   :  { %v88_v15 = vpop.f32.mrf.mxu0 }
  0xcf   :  { %245 = vpow2.f32 %v201_v14  ;;  %v89_v16 = vadd.f32 %v197_v10, %v88_v15 }
  0xd0   :  { %v224_v17 = vpop.f32.mrf.mxu0 }
  0xd1   :  { %v202_v18 = vmul.f32 -1.442695, %v89_v16 }
  0xd3   :  { %247 = vpow2.f32 %v202_v18 }
  0xdc   :  { %v246_v19 = vpop.eup %245 }
  0xdd   :  { %v98_v20 = vadd.f32 1.0, %v246_v19 }
  0xdf   :  { %249 = vrcp.f32 %v98_v20 }
  0xe0   :  { %v248_v21 = vpop.eup %247 }
  0xe1   :  { %v99_v22 = vadd.f32 1.0, %v248_v21 }
  0xe3   :  { %251 = vrcp.f32 %v99_v22 }
  0xec   :  { %v250_v23 = vpop.eup %249 }
  0xed   :  { %v104_v25 = vmul.f32 %v250_v23, %v86_v12 }
  0xf0   :  { %v252_v24 = vpop.eup %251 }
  0xf1   :  { %v105_v26 = vmul.f32 %v252_v24, %v89_v16 }
  0xf3   :  { %v114_v27 = vpack.c.bf16 %v105_v26, %v104_v25 }
  0xf5   :  { %234 = vmatmul.mubr.msk.bf16.vlgmr.msra.gmra.mxu1 %vm146_vm2, %v114_v27 }
 0x1b5   :  { %v184_v29 = vpop.f32.mrf.mxu1 }
 0x1b6   :  { %v185_v30 = vadd.f32 %v203_v28, %v184_v29 }
 0x1b7   :  { %v235_v31 = vpop.f32.mrf.mxu1 }
 0x1b8   :  { %191 = vst.msk [vmem:[%s329_s5] sm:$0xff] %vm47_vm1, %v185_v30 }
 0x1b9   :  { %v187_v32 = vpop.f32.mrf.mxu1 }
 0x1ba   :  { %v188_v33 = vadd.f32 %v203_v28, %v187_v32 }
 0x1bb   :  { %v236_v34 = vpop.f32.mrf.mxu1 }
 0x1bc   :  { %192 = vst.msk [vmem:[%s329_s5 + $0x8] sm:$0xff] %vm47_vm1, %v188_v33 }

// kernel: _lambda_.14
= control target key start
LH: loop header
LB: loop body
LE: loop exit
PB: predicated region body
PF: predicated region fallthrough
CT: control target
= control target key end

     0   :  { %v4316_v0 = vmov 0.0   ;;  %vm4317_vm0 = vmmov 0   ;;  %vm124_vm1 = vcmask 785408   ;;  %v4318_v33 = vmov 2102212464   ;;  %s4325_s17 = smov 96   ;;  %s6101_s2 = inlined_call_operand.vmem [shape: bf16[96,64], index: 2, kind: input, shape index: {}]   ;;  %s6102_s0 = inlined_call_operand.vmem [shape: bf16[48,96], index: 0, kind: input, shape index: {}]   ;;  %s6103_s3 = inlined_call_operand.vmem [shape: bf16[64,64], index: 3, kind: input, shape index: {}]   ;;  %s6104_s1 = inlined_call_operand.vmem [shape: f32[48,1], index: 1, kind: input, shape index: {}]   ;;  %s6105_s7 = inlined_call_operand.vmem [shape: bf16[32,128], index: 7, kind: input, shape index: {}]   ;;  %s6106_s4 = inlined_call_operand.vmem [shape: f32[2,64], index: 4, kind: input, shape index: {}]   ;;  %s6107_s12 = inlined_call_operand.vmem [shape: f32[128,128], index: 12, kind: input, shape index: {}]   ;;  %s6108_s6 = inlined_call_operand.vmem [shape: bf16[48,384], index: 6, kind: input, shape index: {}]   ;;  %s6109_s5 = inlined_call_operand.vmem [shape: bf16[48,384], index: 5, kind: input, shape index: {}]   ;;  %s6110_s8 = inlined_call_operand.vmem [shape: bf16[384,384], index: 8, kind: input, shape index: {}]   ;;  %s6111_s11 = inlined_call_operand.vmem [shape: f32[10,128], index: 11, kind: input, shape index: {}]   ;;  %s6112_s14 = inlined_call_operand.vmem [shape: bf16[48,32], index: 14, kind: output, shape index: {0}]   ;;  %s6113_s10 = inlined_call_operand.vmem [shape: bf16[384,128], index: 10, kind: input, shape index: {}]   ;;  %s6114_s9 = inlined_call_operand.vmem [shape: f32[1,384], index: 9, kind: input, shape index: {}]   ;;  %s6115_s13 = inlined_call_operand.vmem [shape: f32[128,128], index: 13, kind: input, shape index: {}]   ;;  %s6116_s15 = inlined_call_operand.vmem [shape: bf16[48,128], index: 15, kind: output, shape index: {1}]  }
   0x1   :  { %3684 = vmatprep.subr.bf16.mxu0 %v4316_v0  ;;  %v4000_v1 = vld [vmem:[%s6101_s2 + $0x28] sm:$0xff]   ;;  %3696 = vmatprep.mubr.msk.bf16.mxu0 %vm4317_vm0, %v4316_v0  ;;  %v4001_v2 = vld [vmem:[%s6101_s2 + $0x20] sm:$0xff]   ;;  %v4002_v3 = vld [vmem:[%s6101_s2 + $0x18] sm:$0xff]   ;;  %v4319_v37 = vmov 683565275  }
   0x2   :  { %3708 = vmatprep.subr.bf16.mxu1 %v4316_v0  ;;  %3716 = vmatprep.mubr.msk.bf16.mxu1 %vm4317_vm0, %v4316_v0  ;;  %v4003_v4 = vld [vmem:[%s6101_s2 + $0x10] sm:$0xff]   ;;  %v4004_v5 = vld [vmem:[%s6101_s2 + $0x8] sm:$0xff]   ;;  %v4005_v6 = vld [vmem:[%s6101_s2] sm:$0xff]   ;;  %v4320_v39 = vmov 2475754826  }
   0x3   :  { %3685 = vmatpush3.bf16.msra.mxu0 %v4000_v1  ;;  %v4006_v7 = vld [vmem:[%s6102_s0] sm:$0xff]   ;;  %v4007_v8 = vld [vmem:[%s6102_s0 + $0x8] sm:$0xff]   ;;  %v4008_v9 = vld [vmem:[%s6102_s0 + $0x10] sm:$0xff]   ;;  %v4321_v42 = vmov 2131351028  }
   0x4   :  { %3686 = vmatprep.subr.bf16.mxu0 %v4316_v0  ;;  %v4009_v10 = vld [vmem:[%s6103_s3 + $0x18] sm:$0xff]   ;;  %v4010_v11 = vld [vmem:[%s6103_s3 + $0x10] sm:$0xff]   ;;  %v4011_v12 = vld [vmem:[%s6103_s3 + $0x8] sm:$0xff]   ;;  %v4322_v48 = vmov 920167782  }
   0x5   :  { %3709 = vmatpush3.bf16.msra.mxu1 %v4009_v10  ;;  %v4012_v13 = vld [vmem:[%s6103_s3] sm:$0xff]   ;;  %v4476_v18 = vld [vmem:[%s6104_s1 + $0x8] sm:$0xff]  ;;  %v4485_v27 = vld [vmem:[%s6104_s1 + $0x10] sm:$0xff]  ;;  %v4323_v54 = vmov 1326507024  }
   0x6   :  { %3710 = vmatprep.subr.bf16.mxu1 %v4316_v0  ;;  %v4467_v14 = vld [vmem:[%s6104_s1] sm:$0xff]  ;;  %v352_v20 = vmul.f32 3.1415927, %v4476_v18  ;;  %v353_v31 = vmul.f32 3.1415927, %v4485_v27 }
   0x7   :  { %3687 = vmatpush3.bf16.msra.mxu0 %v4001_v2  ;;  %v351_v15 = vmul.f32 3.1415927, %v4467_v14  ;;  %vm994_vm13 = vcmp.le.f32.partialorder %v4467_v14, 8.0 }
   0x8   :  { %3688 = vmatprep.subr.bf16.mxu0 %v4316_v0  ;;  %v4479_v22 = vmul.f32 0.125, %v352_v20  ;;  %v4502_v58 = vmul.f32 0.125, %v353_v31  ;;  %v4589_v14 = vsel %vm994_vm13, 1.0, %v4316_v0 }
   0x9   :  { %3711 = vmatpush3.bf16.msra.mxu1 %v4010_v11  ;;  %v4470_v16 = vmul.f32 0.125, %v351_v15 }
   0xa   :  { %3712 = vmatprep.subr.bf16.mxu1 %v4316_v0  ;;  %v470_v24 = vand.u32 2139095040, %v4479_v22  ;;  %v467_v2 = vand.u32 2147483647, %v4479_v22 }
   0xb   :  { %3689 = vmatpush3.bf16.msra.mxu0 %v4002_v3  ;;  %v367_v17 = vand.u32 2139095040, %v4470_v16  ;;  %v364_v32 = vand.u32 2147483647, %v4470_v16 }
   0xc   :  { %3690 = vmatprep.subr.bf16.mxu0 %v4316_v0  ;;  %v471_v25 = vshrl.u32 %v470_v24, 23  ;;  %v348_v24 = vld [vmem:[%s6104_s1 + $0x18] sm:$0xff]  ;;  %vm4690_vm13 = vcmp.le.f32.partialorder %v467_v2, 0.7853982 }
   0xd   :  { %3713 = vmatpush3.bf16.msra.mxu1 %v4011_v12  ;;  %v368_v19 = vshrl.u32 %v367_v17, 23  ;;  %v371_v35 = vand.u32 8388607, %v364_v32 }
   0xe   :  { %3714 = vmatprep.subr.bf16.mxu1 %v4316_v0  ;;  %v3287_v30 = vadd.s32 4294967169, %v471_v25 }
   0xf   :  { %3691 = vmatpush3.bf16.msra.mxu0 %v4003_v4  ;;  %v3283_v21 = vadd.s32 4294967169, %v368_v19  ;;  %v372_v46 = vor.u32 8388608, %v371_v35  ;;  %v474_v19 = vand.u32 8388607, %v467_v2  ;;  %v354_v35 = vmul.f32 3.1415927, %v348_v24 }
  0x10   :  { %3692 = vmatprep.subr.bf16.mxu0 %v4316_v0  ;;  %v477_v56 = vadd.s32 1, %v3287_v30  ;;  %v56_v24 = vld [vmem:[%s6106_s4] sm:$0x3] }
  0x11   :  { %3715 = vmatpush3.bf16.msra.mxu1 %v4012_v13  ;;  %v374_v23 = vadd.s32 1, %v3283_v21  ;;  %v412_v61 = vshll.u32 %v372_v46, 8  ;;  %v475_v31 = vor.u32 8388608, %v474_v19 }
  0x12   :  { %3728 = vmatprep.subr.bf16.mxu1 %v4316_v0  ;;  %vm478_vm7 = vcmp.gt.s32.totalorder %v477_v56, 0 }
  0x13   :  { %3693 = vmatpush3.bf16.msra.mxu0 %v4004_v5  ;;  %vm375_vm2 = vcmp.gt.s32.totalorder %v374_v23, 0  ;;  %v479_v20 = vsel %vm478_vm7, %v477_v56, 0 }
  0x14   :  { %3694 = vmatprep.subr.bf16.mxu0 %v4316_v0  ;;  %v376_v26 = vsel %vm375_vm2, %v374_v23, 0  ;;  %v480_v25 = vshrl.u32 %v479_v20, 5  ;;  %vm366_vm2 = vcmp.lt.s32.totalorder %v4470_v16, 0 }
  0x15   :  { %v378_v28 = vand.u32 31, %v376_v26  ;;  %v377_v36 = vshrl.u32 %v376_v26, 5 }
  0x16   :  { %vm499_vm9 = vcmp.lt.s32.totalorder %v480_v25, 1  ;;  %vm501_vm10 = vcmp.lt.s32.totalorder %v480_v25, 3  ;;  %vm502_vm11 = vcmp.lt.s32.totalorder %v480_v25, 4  ;;  %vm500_vm12 = vcmp.lt.s32.totalorder %v480_v25, 2 }
  0x17   :  { %3695 = vmatpush3.bf16.msra.mxu0 %v4005_v6  ;;  %v379_v29 = vsub.s32 32, %v378_v28  ;;  %v390_v34 = vshll.u32 %v4318_v33, %v378_v28  ;;  %v381_v38 = vshll.u32 %v4319_v37, %v378_v28  ;;  %v384_v41 = vshll.u32 %v4320_v39, %v378_v28 }
  0x18   :  { %v387_v44 = vshll.u32 %v4321_v42, %v378_v28  ;;  %v393_v50 = vshll.u32 %v4322_v48, %v378_v28  ;;  %vm396_vm3 = vcmp.lt.s32.totalorder %v377_v36, 1  ;;  %vm398_vm4 = vcmp.lt.s32.totalorder %v377_v36, 3 }
  0x19   :  { %v382_v40 = vshrl.u32 %v4320_v39, %v379_v29  ;;  %v385_v43 = vshrl.u32 %v4321_v42, %v379_v29  ;;  %v388_v45 = vshrl.u32 %v4318_v33, %v379_v29  ;;  %v391_v49 = vshrl.u32 %v4322_v48, %v379_v29 }
  0x1a   :  { %3697 = vmatmul.mubr.msk.bf16.vlgmr.msra.gmra.mxu0 %vm124_vm1, %v4006_v7  ;;  %v394_v55 = vshrl.u32 %v4323_v54, %v379_v29  ;;  %vm397_vm5 = vcmp.lt.s32.totalorder %v377_v36, 2  ;;  %vm399_vm6 = vcmp.lt.s32.totalorder %v377_v36, 4  ;;  %v380_v62 = vshrl.u32 %v4319_v37, %v379_v29 }
  0x1b   :  { %3700 = vmatprep.mubr.msk.bf16.mxu0 %vm4317_vm0, %v4316_v0  ;;  %v383_v47 = vor.u32 %v382_v40, %v381_v38  ;;  %v386_v51 = vor.u32 %v385_v43, %v384_v41  ;;  %v389_v52 = vor.u32 %v388_v45, %v387_v44  ;;  %v392_v53 = vor.u32 %v391_v49, %v390_v34 }
  0x1c   :  { %v395_v59 = vor.u32 %v394_v55, %v393_v50  ;;  %v69_v6 = vlaneseq  ;;  %v481_v29 = vand.u32 31, %v479_v20 }
  0x1d   :  { %v404_v57 = vsel %vm396_vm3, %v383_v47, %v386_v51  ;;  %v405_v60 = vsel %vm399_vm6, %v392_v53, 920167782  ;;  %v408_v1 = vsel %vm396_vm3, %v386_v51, %v389_v52  ;;  %v401_v3 = vsel %vm399_vm6, %v389_v52, 2102212464 }
  0x1e   :  { %v406_v63 = vsel %vm398_vm4, %v389_v52, %v405_v60  ;;  %v409_v5 = vsel %vm399_vm6, %v395_v59, 1326507024  ;;  %v400_v7 = vsel %vm396_vm3, %v380_v62, %v383_v47  ;;  %v402_v10 = vsel %vm398_vm4, %v386_v51, %v401_v3 }
  0x1f   :  { %v407_v4 = vsel %vm397_vm5, %v404_v57, %v406_v63  ;;  %v410_v11 = vsel %vm398_vm4, %v392_v53, %v409_v5  ;;  %v403_v15 = vsel %vm397_vm5, %v400_v7, %v402_v10  ;;  %v4530_v30 = vshrl.u32 %v69_v6, 7 }
  0x20   :  { %v4514_v12 = vmul.u32.u64.low %v412_v61, %v407_v4  ;;  %v4515_v13 = vmul.u32.u64.high %v412_v61, %v407_v4, %v4514_v12  ;;  %v411_v17 = vsel %vm397_vm5, %v408_v1, %v410_v11  ;;  %v419_v26 = vmul.u32 %v412_v61, %v403_v15 }
  0x21   :  { %v4523_v21 = vmul.u32.u64.low %v412_v61, %v411_v17  ;;  %v4524_v23 = vmul.u32.u64.high %v412_v61, %v411_v17, %v4523_v21  ;;  %v482_v36 = vsub.s32 32, %v481_v29  ;;  %v484_v38 = vshll.u32 %v4319_v37, %v481_v29 }
  0x22   :  { %3701 = vmatmul.mubr.msk.bf16.gmra.mxu0 %vm124_vm1, %v4007_v8  ;;  %v573_v8 = vand.u32 2139095040, %v4502_v58  ;;  %v422_v28 = vadd.s32 1, %v4515_v13  ;;  %v487_v41 = vshll.u32 %v4320_v39, %v481_v29  ;;  %v490_v43 = vshll.u32 %v4321_v42, %v481_v29 }
  0x23   :  { %3704 = vmatprep.mubr.msk.bf16.mxu0 %vm4317_vm0, %v4316_v0  ;;  %vm421_vm8 = vc.u32 %v4524_v23, %v4514_v12  ;;  %v493_v44 = vshll.u32 %v4318_v33, %v481_v29  ;;  %v485_v46 = vshrl.u32 %v4320_v39, %v482_v36  ;;  %v488_v47 = vshrl.u32 %v4321_v42, %v482_v36 }
  0x24   :  { %v574_v34 = vshrl.u32 %v573_v8, 23  ;;  %v423_v40 = vsel %vm421_vm8, %v422_v28, %v4515_v13  ;;  %v491_v49 = vshrl.u32 %v4318_v33, %v482_v36  ;;  %v494_v50 = vshrl.u32 %v4322_v48, %v482_v36 }
  0x25   :  { %v424_v45 = vadd.s32 %v423_v40, %v419_v26  ;;  %v496_v51 = vshll.u32 %v4322_v48, %v481_v29  ;;  %v497_v52 = vshrl.u32 %v4323_v54, %v482_v36  ;;  %v486_v55 = vor.u32 %v485_v46, %v484_v38 }
  0x26   :  { %v489_v56 = vor.u32 %v488_v47, %v487_v41  ;;  %v483_v57 = vshrl.u32 %v4319_v37, %v482_v36  ;;  %v492_v59 = vor.u32 %v491_v49, %v490_v43  ;;  %v495_v60 = vor.u32 %v494_v50, %v493_v44 }
  0x27   :  { %v425_v53 = vadd.s32 536870912, %v424_v45  ;;  %v498_v61 = vor.u32 %v497_v52, %v496_v51  ;;  %v515_v1 = vshll.u32 %v475_v31, 8  ;;  %v3291_v10 = vadd.s32 4294967169, %v574_v34 }
  0x28   :  { %v507_v63 = vsel %vm499_vm9, %v486_v55, %v489_v56  ;;  %v504_v3 = vsel %vm502_vm11, %v492_v59, 2102212464  ;;  %v508_v4 = vsel %vm502_vm11, %v495_v60, 920167782  ;;  %v511_v5 = vsel %vm499_vm9, %v489_v56, %v492_v59 }
  0x29   :  { %v426_v62 = vshrl.u32 %v425_v53, 30  ;;  %v512_v6 = vsel %vm502_vm11, %v498_v61, 1326507024  ;;  %v509_v8 = vsel %vm501_vm10, %v492_v59, %v508_v4  ;;  %v503_v11 = vsel %vm499_vm9, %v483_v57, %v486_v55 }
  0x2a   :  { %3705 = vmatmul.mubr.msk.bf16.gmra.mxu0 %vm124_vm1, %v4008_v9  ;;  %v4324_v9 = vmov 0   ;;  %v505_v13 = vsel %vm501_vm10, %v489_v56, %v504_v3  ;;  %v510_v15 = vsel %vm500_vm12, %v507_v63, %v509_v8  ;;  %v513_v17 = vsel %vm501_vm10, %v495_v60, %v512_v6 }
  0x2b   :  { %3998 = vset.pattern.permute.xlu0 %v4324_v9  ;;  %3999 = vset.pattern.permute.xlu1 %v4324_v9  ;;  %v427_v7 = vshll.u32 %v426_v62, 30  ;;  %v4554_v19 = vsub.s32 0, %v4530_v30  ;;  %v514_v21 = vsel %vm500_vm12, %v511_v5, %v513_v17  ;;  %v570_v29 = vand.u32 2147483647, %v4502_v58 }
  0x2c   :  { %v4560_v26 = vmul.u32.u64.low %v515_v1, %v514_v21  ;;  %v4561_v28 = vmul.u32.u64.high %v515_v1, %v514_v21, %v4560_v26  ;;  %v4564_v31 = vmul.f32 0.125, %v354_v35  ;;  %v506_v36 = vsel %vm500_vm12, %v503_v11, %v505_v13 }
  0x2d   :  { %v428_v20 = vsub.s32 %v424_v45, %v427_v7  ;;  %v4567_v38 = vmul.u32.u64.low %v515_v1, %v510_v15  ;;  %v4568_v40 = vmul.u32.u64.high %v515_v1, %v510_v15, %v4567_v38  ;;  %v580_v41 = vadd.s32 1, %v3291_v10 }
  0x2e   :  { %v4572_v43 = vrot.slane %v56_v24, %v4554_v19  ;;  %v450_v45 = vsub.s32 4, %v426_v62  ;;  %v522_v46 = vmul.u32 %v515_v1, %v506_v36  ;;  %v577_v25 = vand.u32 8388607, %v570_v29 }
  0x2f   :  { %v430_v34 = vsub.s32 0, %v428_v20  ;;  %vm524_vm14 = vc.u32 %v4561_v28, %v4567_v38  ;;  %vm581_vm15 = vcmp.gt.s32.totalorder %v580_v41, 0  ;;  %v525_v47 = vadd.s32 1, %v4568_v40 }
  0x30   :  { %v582_v49 = vsel %vm581_vm15, %v580_v41, 0  ;;  %v676_v50 = vand.u32 2139095040, %v4564_v31  ;;  %vm4583_vm1 = vcmp.le.f32.partialorder %v364_v32, 0.7853982  ;;  %v420_v53 = vadd.s32 %v4514_v12, %v4524_v23 }
  0x31   :  { %v3284_v44 = vmin.u32 %v430_v34, %v428_v20  ;;  %v584_v52 = vand.u32 31, %v582_v49  ;;  %v451_v56 = vsel %vm366_vm2, %v450_v45, %v426_v62  ;;  %v526_v57 = vsel %vm524_vm14, %v525_v47, %v4568_v40 }
  0x32   :  { %v527_v59 = vadd.s32 %v526_v57, %v522_v46  ;;  %v578_v32 = vor.u32 8388608, %v577_v25  ;;  %v4596_v60 = vshrl.u32 %v582_v49, 5  ;;  %v453_v24 = vsel %vm4583_vm1, 0, %v451_v56 }
  0x33   :  { %v432_v35 = vclz %v3284_v44  ;;  %v585_v61 = vsub.s32 32, %v584_v52  ;;  %v587_v63 = vshll.u32 %v4319_v37, %v584_v52  ;;  %v590_v1 = vshll.u32 %v4320_v39, %v584_v52 }
  0x34   :  { %v593_v3 = vshll.u32 %v4321_v42, %v584_v52  ;;  %v528_v12 = vadd.s32 536870912, %v527_v59  ;;  %v596_v62 = vshll.u32 %v4318_v33, %v584_v52  ;;  %v599_v15 = vshll.u32 %v4322_v48, %v584_v52 }
  0x35   :  { %v3285_v55 = vadd.s32 4294967294, %v432_v35  ;;  %v588_v23 = vshrl.u32 %v4320_v39, %v585_v61  ;;  %v591_v8 = vshrl.u32 %v4321_v42, %v585_v61  ;;  %v594_v11 = vshrl.u32 %v4318_v33, %v585_v61 }
  0x36   :  { %v4604_v10 = vshrl.u32 %v528_v12, 30  ;;  %v597_v13 = vshrl.u32 %v4322_v48, %v585_v61  ;;  %v600_v26 = vshrl.u32 %v4323_v54, %v585_v61  ;;  %v586_v34 = vshrl.u32 %v4319_v37, %v585_v61 }
  0x37   :  { %vm3286_vm3 = vcmp.lt.s32.totalorder %v3285_v55, 0  ;;  %v589_v36 = vor.u32 %v588_v23, %v587_v63  ;;  %v4614_v40 = vshll.u32 %v578_v32, 8  ;;  %v592_v45 = vor.u32 %v591_v8, %v590_v1 }
  0x38   :  { %v435_v4 = vsel %vm3286_vm3, 0, %v3285_v55  ;;  %v598_v46 = vor.u32 %v597_v13, %v596_v62  ;;  %v595_v35 = vor.u32 %v594_v11, %v593_v3  ;;  %v601_v47 = vor.u32 %v600_v26, %v599_v15 }
  0x39   :  { %v436_v5 = vsub.s32 32, %v435_v4  ;;  %v437_v6 = vshll.u32 %v428_v20, %v435_v4  ;;  %v440_v7 = vsub.s32 4294967266, %v435_v4  ;;  %v530_v20 = vshll.u32 %v4604_v10, 30 }
  0x3a   :  { %vm602_vm4 = vcmp.lt.s32.totalorder %v4596_v60, 1  ;;  %vm603_vm5 = vcmp.lt.s32.totalorder %v4596_v60, 2  ;;  %vm605_vm6 = vcmp.lt.s32.totalorder %v4596_v60, 4  ;;  %vm604_vm7 = vcmp.lt.s32.totalorder %v4596_v60, 3 }
  0x3b   :  { %v438_v17 = vshrl.u32 %v420_v53, %v436_v5  ;;  %v441_v21 = vadd.s32 127, %v440_v7  ;;  %v4616_v25 = vsub.s32 %v527_v59, %v530_v20  ;;  %v606_v55 = vsel %vm602_vm4, %v586_v34, %v589_v36 }
  0x3c   :  { %v607_v56 = vsel %vm605_vm6, %v595_v35, 2102212464  ;;  %v610_v32 = vsel %vm602_vm4, %v589_v36, %v592_v45  ;;  %v611_v61 = vsel %vm605_vm6, %v598_v46, 920167782  ;;  %v4633_v63 = vand.u32 3, %v453_v24 }
  0x3d   :  { %v439_v41 = vor.u32 %v438_v17, %v437_v6  ;;  %v442_v44 = vshll.u32 %v441_v21, 23  ;;  %v533_v53 = vsub.s32 0, %v4616_v25  ;;  %v608_v59 = vsel %vm604_vm7, %v592_v45, %v607_v56 }
  0x3e   :  { %vm469_vm8 = vcmp.lt.s32.totalorder %v4479_v22, 0  ;;  %v677_v3 = vshrl.u32 %v676_v50, 23  ;;  %v523_v12 = vadd.s32 %v4567_v38, %v4561_v28  ;;  %v612_v23 = vsel %vm604_vm7, %v595_v35, %v611_v61 }
  0x3f   :  { %v443_v49 = vor.u32 4788187, %v442_v44  ;;  %v446_v52 = vcvt.s32.f32 %v439_v41  ;;  %v3288_v1 = vmin.u32 %v533_v53, %v4616_v25  ;;  %v614_v62 = vsel %vm602_vm4, %v592_v45, %v595_v35 }
  0x40   :  { %vm995_vm9 = vcmp.le.f32.partialorder %v4476_v18, 8.0  ;;  %v609_v6 = vsel %vm603_vm5, %v606_v55, %v608_v59  ;;  %v613_v7 = vsel %vm603_vm5, %v610_v32, %v612_v23  ;;  %v615_v50 = vsel %vm605_vm6, %v601_v47, 1326507024 }
  0x41   :  { %v444_v57 = vand.u32 2147483647, %v443_v49  ;;  %v535_v5 = vclz %v3288_v1  ;;  %v616_v28 = vsel %vm604_vm7, %v598_v46, %v615_v50  ;;  %v673_v17 = vand.u32 2147483647, %v4564_v31 }
  0x42   :  { %v4653_v38 = vmul.u32.u64.low %v4614_v40, %v613_v7  ;;  %v4654_v11 = vmul.u32.u64.high %v4614_v40, %v613_v7, %v4653_v38  ;;  %v617_v15 = vsel %vm603_vm5, %v614_v62, %v616_v28  ;;  %v3295_v21 = vadd.s32 4294967169, %v677_v3 }
  0x43   :  { %v447_v4 = vmul.f32 %v446_v52, %v444_v57  ;;  %v3289_v13 = vadd.s32 4294967294, %v535_v5  ;;  %v553_v26 = vsub.s32 4, %v4604_v10  ;;  %v625_v60 = vmul.u32 %v4614_v40, %v609_v6 }
  0x44   :  { %v4664_v20 = vmul.u32.u64.low %v4614_v40, %v617_v15  ;;  %v4665_v34 = vmul.u32.u64.high %v4614_v40, %v617_v15, %v4664_v20  ;;  %v683_v44 = vadd.s32 1, %v3295_v21  ;;  %v628_v35 = vadd.s32 1, %v4654_v11 }
  0x45   :  { %v448_v8 = vxor.u32 2147483648, %v447_v4  ;;  %vm3290_vm10 = vcmp.lt.s32.totalorder %v3289_v13, 0  ;;  %v554_v40 = vsel %vm469_vm8, %v553_v26, %v4604_v10  ;;  %v680_v55 = vand.u32 8388607, %v673_v17 }
  0x46   :  { %v538_v46 = vsel %vm3290_vm10, 0, %v3289_v13  ;;  %vm627_vm11 = vc.u32 %v4665_v34, %v4653_v38  ;;  %vm684_vm12 = vcmp.gt.s32.totalorder %v683_v44, 0  ;;  %v556_v5 = vsel %vm4690_vm13, 0, %v554_v40 }
  0x47   :  { %v449_v24 = vsel %vm366_vm2, %v448_v8, %v447_v4  ;;  %v539_v49 = vsub.s32 32, %v538_v46  ;;  %v540_v52 = vshll.u32 %v4616_v25, %v538_v46  ;;  %v543_v53 = vsub.s32 4294967266, %v538_v46 }
  0x48   :  { %v452_v41 = vsel %vm4583_vm1, %v4470_v16, %v449_v24  ;;  %v629_v32 = vsel %vm627_vm11, %v628_v35, %v4654_v11  ;;  %v685_v1 = vsel %vm684_vm12, %v683_v44, 0  ;;  %v4702_v6 = vsel %vm995_vm9, 1.0, %v4316_v0 }
  0x49   :  { %4141 = vcosq.f32 %v452_v41  ;;  %v541_v57 = vshrl.u32 %v523_v12, %v539_v49  ;;  %v544_v59 = vadd.s32 127, %v543_v53  ;;  %v630_v61 = vadd.s32 %v629_v32, %v625_v60 }
  0x4a   :  { %4143 = vsinq.f32 %v452_v41  ;;  %v4694_v12 = vand.u32 31, %v685_v1  ;;  %vm458_vm14 = vcmp.lt.s32.totalorder %v4633_v63, 2  ;;  %v681_v28 = vor.u32 8388608, %v680_v55 }
  0x4b   :  { %v542_v4 = vor.u32 %v541_v57, %v540_v52  ;;  %v545_v23 = vshll.u32 %v544_v59, 23  ;;  %v631_v7 = vadd.s32 536870912, %v630_v61  ;;  %vm456_vm15 = vweird.f32 %v4470_v16 }
  0x4c   :  { %v4706_v11 = vsub.s32 32, %v4694_v12  ;;  %vm459_vm1 = vcmp.eq.s32.totalorder %v4633_v63, 0  ;;  %vm462_vm2 = vcmp.eq.s32.totalorder %v4633_v63, 2  ;;  %v690_v24 = vshll.u32 %v4319_v37, %v4694_v12 }
  0x4d   :  { %v546_v2 = vor.u32 4788187, %v545_v23  ;;  %v549_v8 = vcvt.s32.f32 %v542_v4  ;;  %v4713_v18 = vshrl.u32 %v631_v7, 30  ;;  %v4725_v41 = vadd.s32 %v4653_v38, %v4665_v34 }
  0x4e   :  { %v691_v26 = vshrl.u32 %v4320_v39, %v4706_v11  ;;  %v4728_v35 = vshrl.u32 %v685_v1, 5  ;;  %v4732_v49 = vshll.u32 %v681_v28, 8  ;;  %v689_v38 = vshrl.u32 %v4319_v37, %v4706_v11 }
  0x4f   :  { %v547_v21 = vand.u32 2147483647, %v546_v2  ;;  %v633_v60 = vshll.u32 %v4713_v18, 30  ;;  %v696_v57 = vshll.u32 %v4321_v42, %v4694_v12  ;;  %v700_v7 = vshrl.u32 %v4322_v48, %v4706_v11 }
  0x50   :  { %v4741_v55 = vor.u32 %v691_v26, %v690_v24  ;;  %vm705_vm3 = vcmp.lt.s32.totalorder %v4728_v35, 1  ;;  %vm706_vm5 = vcmp.lt.s32.totalorder %v4728_v35, 2  ;;  %vm708_vm9 = vcmp.lt.s32.totalorder %v4728_v35, 4 }
  0x51   :  { %v550_v46 = vmul.f32 %v549_v8, %v547_v21  ;;  %v4737_v53 = vsub.s32 %v630_v61, %v633_v60  ;;  %vm559_vm11 = vweird.f32 %v4479_v22  ;;  %vm272_vm12 = vcmask 523264  }
  0x53   :  { %v551_v40 = vxor.u32 2147483648, %v550_v46  ;;  %v636_v61 = vsub.s32 0, %v4737_v53 }
  0x55   :  { %v3292_v24 = vmin.u32 %v636_v61, %v4737_v53  ;;  %v703_v61 = vshrl.u32 %v4323_v54, %v4706_v11 }
  0x56   :  { %v4142_v34 = vpop.eup %4141 }
  0x57   :  { %v4144_v59 = vpop.eup %4143  ;;  %v463_v1 = vxor.u32 2147483648, %v4142_v34 }
  0x58   :  { %v460_v23 = vxor.u32 2147483648, %v4144_v59 }
  0x59   :  { %v464_v2 = vsel %vm462_vm2, %v463_v1, %v4144_v59 }
  0x5a   :  { %v461_v21 = vsel %vm459_vm1, %v4142_v34, %v460_v23  ;;  %v702_v34 = vshll.u32 %v4322_v48, %v4694_v12  ;;  %vm996_vm1 = vcmp.le.f32.partialorder %v4485_v27, 8.0 }
  0x5b   :  { %v4906_v27 = vsel %vm996_vm1, 1.0, %v4316_v0 }
  0xda   :  { %v168_v36 = vpop.f32.mrf.mxu0 }
  0xdb   :  { %v4672_v45 = vadd.f32 %v168_v36, %v4572_v43  ;;  %v4721_v36 = vand.u32 3, %v556_v5  ;;  %v699_v5 = vshll.u32 %v4318_v33, %v4694_v12 }
  0xdc   :  { %v3698_v47 = vpop.f32.mrf.mxu0 }
  0xdd   :  { %v3270_v51 = vmul.f32 -1.442695, %v4672_v45  ;;  %v693_v47 = vshll.u32 %v4320_v39, %v4694_v12  ;;  %vm565_vm4 = vcmp.eq.s32.totalorder %v4721_v36, 2  ;;  %vm562_vm6 = vcmp.eq.s32.totalorder %v4721_v36, 0 }
  0xde   :  { %v171_v56 = vpop.f32.mrf.mxu0  ;;  %vm561_vm10 = vcmp.lt.s32.totalorder %v4721_v36, 2 }
  0xdf   :  { %4145 = vpow2.f32 %v3270_v51  ;;  %v4686_v25 = vadd.f32 %v171_v56, %v4572_v43  ;;  %v694_v56 = vshrl.u32 %v4321_v42, %v4706_v11 }
  0xe0   :  { %v3699_v3 = vpop.f32.mrf.mxu0 }
  0xe1   :  { %v3271_v62 = vmul.f32 -1.442695, %v4686_v25  ;;  %v697_v3 = vshrl.u32 %v4318_v33, %v4706_v11  ;;  %v695_v26 = vor.u32 %v694_v56, %v693_v47  ;;  %v701_v56 = vor.u32 %v700_v7, %v699_v5 }
  0xe2   :  { %v176_v50 = vpop.f32.mrf.mxu0 }
  0xe3   :  { %4147 = vpow2.f32 %v3271_v62  ;;  %v4709_v13 = vadd.f32 %v176_v50, %v4572_v43  ;;  %v552_v62 = vsel %vm469_vm8, %v551_v40, %v550_v46  ;;  %v698_v40 = vor.u32 %v697_v3, %v696_v57 }
  0xe4   :  { %v3702_v15 = vpop.f32.mrf.mxu0  ;;  %v555_v8 = vsel %vm4690_vm13, %v4479_v22, %v552_v62  ;;  %vm707_vm8 = vcmp.lt.s32.totalorder %v4728_v35, 3  ;;  %vm4837_vm13 = vcmp.le.f32.partialorder %v570_v29, 0.7853982 }
  0xe5   :  { %v3272_v20 = vmul.f32 -1.442695, %v4709_v13 }
  0xe6   :  { %v179_v44 = vpop.f32.mrf.mxu0 }
  0xe7   :  { %4149 = vpow2.f32 %v3272_v20  ;;  %v4735_v52 = vadd.f32 %v179_v44, %v4572_v43  ;;  %v465_v44 = vsel %vm458_vm14, %v461_v21, %v464_v2  ;;  %vm572_vm14 = vcmp.lt.s32.totalorder %v4502_v58, 0 }
  0xe8   :  { %v3703_v51 = vpop.f32.mrf.mxu0  ;;  %v466_v10 = vsel %vm456_vm15, nan, %v465_v44 }
  0xe9   :  { %v3273_v32 = vmul.f32 -1.442695, %v4735_v52  ;;  %v638_v51 = vclz %v3292_v24  ;;  %v982_v47 = vadd.f32 1.0, %v466_v10  ;;  %v656_v24 = vsub.s32 4, %v4713_v18 }
  0xea   :  { %v184_v4 = vpop.f32.mrf.mxu0 }
  0xeb   :  { %4151 = vpow2.f32 %v3273_v32  ;;  %v4758_v50 = vadd.f32 %v184_v4, %v4572_v43  ;;  %v3293_v1 = vadd.s32 4294967294, %v638_v51  ;;  %v988_v3 = vmul.f32 0.5, %v982_v47 }
  0xec   :  { %v4146_v28 = vpop.eup %4145  ;;  %v3706_v15 = vpop.f32.mrf.mxu0  ;;  %4153 = vcosq.f32 %v555_v8  ;;  %v709_v4 = vsel %vm705_vm3, %v689_v38, %v4741_v55  ;;  %v714_v38 = vsel %vm708_vm9, %v701_v56, 920167782 }
  0xed   :  { %v209_v20 = vadd.f32 1.0, %v4146_v28  ;;  %v3274_v60 = vmul.f32 -1.442695, %v4758_v50  ;;  %4155 = vsinq.f32 %v555_v8  ;;  %vm3294_vm7 = vcmp.lt.s32.totalorder %v3293_v1, 0 }
  0xee   :  { %v187_v46 = vpop.f32.mrf.mxu0  ;;  %v1012_v12 = vmul.f32 %v4589_v14, %v988_v3  ;;  %v641_v11 = vsel %vm3294_vm7, 0, %v3293_v1  ;;  %v710_v14 = vsel %vm708_vm9, %v698_v40, 2102212464  ;;  %v713_v8 = vsel %vm705_vm3, %v4741_v55, %v695_v26 }
  0xef   :  { %4157 = vrcp.f32 %v209_v20  ;;  %v4776_v59 = vadd.f32 %v187_v46, %v4572_v43  ;;  %v704_v43 = vor.u32 %v703_v61, %v702_v34  ;;  %v642_v62 = vsub.s32 32, %v641_v11 }
  0xf0   :  { %v4148_v32 = vpop.eup %4147  ;;  %4159 = vpow2.f32 %v3274_v60  ;;  %v3707_v63 = vpop.f32.mrf.mxu0  ;;  %v643_v5 = vshll.u32 %v4737_v53, %v641_v11  ;;  %v646_v7 = vsub.s32 4294967266, %v641_v11  ;;  %1056 = vperm.xlu0 %3998, %v1012_v12   ;;  %v711_v21 = vsel %vm707_vm8, %v695_v26, %v710_v14 }
  0xf1   :  { %v210_v16 = vadd.f32 1.0, %v4148_v32  ;;  %v3275_v57 = vmul.f32 -1.442695, %v4776_v59  ;;  %v644_v28 = vshrl.u32 %v4725_v41, %v642_v62  ;;  %v715_v53 = vsel %vm707_vm8, %v698_v40, %v714_v38 }
  0xf2   :  { %v647_v15 = vadd.s32 127, %v646_v7  ;;  %v716_v20 = vsel %vm706_vm5, %v713_v8, %v715_v53  ;;  %v717_v55 = vsel %vm705_vm3, %v695_v26, %v698_v40  ;;  %v712_v41 = vsel %vm706_vm5, %v709_v4, %v711_v21  ;;  %v4825_v26 = vld [vmem:[%s6104_s1 + $0x20] sm:$0xff] }
  0xf3   :  { %4161 = vrcp.f32 %v210_v16  ;;  %v645_v44 = vor.u32 %v644_v28, %v643_v5  ;;  %v718_v10 = vsel %vm708_vm9, %v704_v43, 1326507024  ;;  %v355_v35 = vmul.f32 3.1415927, %v4825_v26  ;;  %v4854_v28 = vld [vmem:[%s6104_s1 + $0x28] sm:$0xff] }
  0xf4   :  { %v4150_v23 = vpop.eup %4149  ;;  %4163 = vpow2.f32 %v3275_v57  ;;  %v648_v46 = vshll.u32 %v647_v15, 23  ;;  %v719_v47 = vsel %vm707_vm8, %v701_v56, %v718_v10  ;;  %v728_v7 = vmul.u32 %v4732_v49, %v712_v41 }
  0xf5   :  { %v211_v2 = vadd.f32 1.0, %v4150_v23  ;;  %v4818_v32 = vmul.u32.u64.low %v4732_v49, %v716_v20  ;;  %v4819_v63 = vmul.u32.u64.high %v4732_v49, %v716_v20, %v4818_v32  ;;  %v652_v16 = vcvt.s32.f32 %v645_v44 }
  0xf6   :  { %v649_v61 = vor.u32 4788187, %v648_v46  ;;  %v720_v57 = vsel %vm706_vm5, %v717_v55, %v719_v47  ;;  %v4849_v38 = vmul.f32 0.125, %v355_v35  ;;  %v356_v46 = vmul.f32 3.1415927, %v4854_v28 }
  0xf7   :  { %4165 = vrcp.f32 %v211_v2  ;;  %v4830_v3 = vmul.u32.u64.low %v4732_v49, %v720_v57  ;;  %v4831_v43 = vmul.u32.u64.high %v4732_v49, %v720_v57, %v4830_v3  ;;  %v731_v2 = vadd.s32 1, %v4819_v63 }
  0xf8   :  { %v4152_v60 = vpop.eup %4151  ;;  %v650_v23 = vand.u32 2147483647, %v649_v61  ;;  %v657_v49 = vsel %vm572_vm14, %v656_v24, %v4713_v18  ;;  %v776_v22 = vand.u32 2147483647, %v4849_v38  ;;  %v4013_v18 = vld [vmem:[%s6105_s7 + $0x8] sm:$0xff]   ;;  %v4890_v3 = vmul.f32 0.125, %v356_v46 }
  0xf9   :  { %v4154_v51 = vpop.eup %4153  ;;  %v212_v34 = vadd.f32 1.0, %v4152_v60  ;;  %vm730_vm15 = vc.u32 %v4831_v43, %v4818_v32  ;;  %v659_v61 = vsel %vm4837_vm13, 0, %v657_v49  ;;  %vm662_vm5 = vweird.f32 %v4502_v58 }
  0xfa   :  { %v4156_v40 = vpop.eup %4155  ;;  %v566_v1 = vxor.u32 2147483648, %v4154_v51  ;;  %v653_v8 = vmul.f32 %v652_v16, %v650_v23  ;;  %v732_v55 = vsel %vm730_vm15, %v731_v2, %v4819_v63  ;;  %v783_v57 = vand.u32 8388607, %v776_v22 }
  0xfb   :  { %4167 = vrcp.f32 %v212_v34  ;;  %v563_v56 = vxor.u32 2147483648, %v4156_v40  ;;  %v4894_v4 = vand.u32 3, %v659_v61  ;;  %v882_v2 = vand.u32 2139095040, %v4890_v3 }
  0xfc   :  { %v4158_v12 = vpop.eup %4157  ;;  %v567_v11 = vsel %vm565_vm4, %v566_v1, %v4156_v40  ;;  %v654_v20 = vxor.u32 2147483648, %v653_v8  ;;  %vm1197_vm8 = vcmask 261120   ;;  %vm4996_vm15 = vcmp.le.f32.partialorder %v673_v17, 0.7853982 }
  0xfd   :  { %v4160_v62 = vpop.eup %4159  ;;  %v564_v5 = vsel %vm562_vm6, %v4154_v51, %v563_v56  ;;  %v227_v15 = vmul.f32 %v4158_v12, %v4672_v45  ;;  %v733_v45 = vadd.s32 %v732_v55, %v728_v7  ;;  %v779_v51 = vand.u32 2139095040, %v4849_v38 }
  0xfe   :  { %v213_v14 = vadd.f32 1.0, %v4160_v62  ;;  %v568_v29 = vsel %vm561_vm10, %v564_v5, %v567_v11  ;;  %v655_v10 = vsel %vm572_vm14, %v654_v20, %v653_v8  ;;  %v784_v7 = vor.u32 8388608, %v783_v57 }
  0xff   :  { %v569_v21 = vsel %vm559_vm11, nan, %v568_v29  ;;  %v734_v47 = vadd.s32 536870912, %v733_v45  ;;  %v780_v1 = vshrl.u32 %v779_v51, 23  ;;  %vm664_vm3 = vcmp.lt.s32.totalorder %v4894_v4, 2 }
 0x100   :  { %v4162_v36 = vpop.eup %4161  ;;  %4169 = vrcp.f32 %v213_v14  ;;  %v983_v53 = vadd.f32 1.0, %v569_v21  ;;  %vm665_vm4 = vcmp.eq.s32.totalorder %v4894_v4, 0  ;;  %vm668_vm6 = vcmp.eq.s32.totalorder %v4894_v4, 2 }
 0x101   :  { %v4164_v60 = vpop.eup %4163  ;;  %v228_v44 = vmul.f32 %v4162_v36, %v4686_v25  ;;  %v658_v25 = vsel %vm4837_vm13, %v4502_v58, %v655_v10  ;;  %v4881_v16 = vshrl.u32 %v734_v47, 30  ;;  %v3299_v56 = vadd.s32 4294967169, %v780_v1 }
 0x102   :  { %v214_v41 = vadd.f32 1.0, %v4164_v60  ;;  %v989_v24 = vmul.f32 0.5, %v983_v53  ;;  %v4914_v49 = vshll.u32 %v784_v7, 8  ;;  %v883_v55 = vshrl.u32 %v882_v2, 23 }
 0x103   :  { %v241_v34 = vpack.c.bf16 %v228_v44, %v227_v15  ;;  %v736_v12 = vshll.u32 %v4881_v16, 30  ;;  %v786_v23 = vadd.s32 1, %v3299_v56  ;;  %v729_v15 = vadd.s32 %v4818_v32, %v4831_v43 }
 0x104   :  { %v4166_v63 = vpop.eup %4165  ;;  %4171 = vrcp.f32 %v214_v41  ;;  %v1013_v40 = vmul.f32 %v4702_v6, %v989_v24  ;;  %v4014_v6 = vld [vmem:[%s6105_s7] sm:$0xff]   ;;  %vm675_vm13 = vcmp.lt.s32.totalorder %v4564_v31, 0 }
 0x105   :  { %3717 = vmatmul.mubr.msk.bf16.vlgmr.msra.gmra.mxu1 %vm272_vm12, %v241_v34  ;;  %4173 = vcosq.f32 %v658_v25  ;;  %v229_v35 = vmul.f32 %v4166_v63, %v4709_v13  ;;  %v4899_v5 = vsub.s32 %v733_v45, %v736_v12  ;;  %vm787_vm2 = vcmp.gt.s32.totalorder %v786_v23, 0 }
 0x106   :  { %3729 = vmatpush3.bf16.msra.mxu1 %v4013_v18  ;;  %3720 = vmatprep.mubr.msk.bf16.mxu1 %vm4317_vm0, %v4316_v0  ;;  %4175 = vsinq.f32 %v658_v25  ;;  %v788_v8 = vsel %vm787_vm2, %v786_v23, 0 }
 0x107   :  { %3730 = vmatprep.subr.bf16.mxu1 %v4316_v0  ;;  %1061 = vperm.xlu0 %3998, %v1013_v40   ;;  %v739_v29 = vsub.s32 0, %v4899_v5  ;;  %v790_v13 = vand.u32 31, %v788_v8  ;;  %v4918_v36 = vshrl.u32 %v788_v8, 5 }
 0x108   :  { %v4168_v11 = vpop.eup %4167 }
 0x109   :  { %v230_v62 = vmul.f32 %v4168_v11, %v4735_v52  ;;  %v3296_v21 = vmin.u32 %v739_v29, %v4899_v5  ;;  %v791_v53 = vsub.s32 32, %v790_v13  ;;  %v793_v20 = vshll.u32 %v4319_v37, %v790_v13 }
 0x10a   :  { %3731 = vmatpush3.bf16.msra.mxu1 %v4014_v6  ;;  %v796_v45 = vshll.u32 %v4320_v39, %v790_v13  ;;  %v799_v32 = vshll.u32 %v4321_v42, %v790_v13  ;;  %v802_v18 = vshll.u32 %v4318_v33, %v790_v13  ;;  %vm808_vm7 = vcmp.lt.s32.totalorder %v4918_v36, 1 }
 0x10b   :  { %v242_v14 = vpack.c.bf16 %v230_v62, %v229_v35  ;;  %v741_v44 = vclz %v3296_v21  ;;  %v794_v43 = vshrl.u32 %v4320_v39, %v791_v53  ;;  %v797_v46 = vshrl.u32 %v4321_v42, %v791_v53 }
 0x10c   :  { %v800_v41 = vshrl.u32 %v4318_v33, %v791_v53  ;;  %v792_v51 = vshrl.u32 %v4319_v37, %v791_v53  ;;  %v803_v34 = vshrl.u32 %v4322_v48, %v791_v53  ;;  %v806_v40 = vshrl.u32 %v4323_v54, %v791_v53 }
 0x10d   :  { %v4170_v52 = vpop.eup %4169  ;;  %3721 = vmatmul.mubr.msk.bf16.gmra.mxu1 %vm272_vm12, %v242_v14  ;;  %v3297_v10 = vadd.s32 4294967294, %v741_v44  ;;  %v795_v63 = vor.u32 %v794_v43, %v793_v20  ;;  %v798_v57 = vor.u32 %v797_v46, %v796_v45  ;;  %vm810_vm10 = vcmp.lt.s32.totalorder %v4918_v36, 3 }
 0x10e   :  { %3724 = vmatprep.mubr.msk.bf16.mxu1 %vm4317_vm0, %v4316_v0  ;;  %v231_v60 = vmul.f32 %v4170_v52, %v4758_v50  ;;  %v805_v50 = vshll.u32 %v4322_v48, %v790_v13  ;;  %v801_v6 = vor.u32 %v800_v41, %v799_v32  ;;  %v804_v23 = vor.u32 %v803_v34, %v802_v18 }
 0x10f   :  { %vm3298_vm9 = vcmp.lt.s32.totalorder %v3297_v10, 0  ;;  %vm811_vm11 = vcmp.lt.s32.totalorder %v4918_v36, 4  ;;  %v816_v21 = vsel %vm808_vm7, %v795_v63, %v798_v57  ;;  %v3303_v34 = vadd.s32 4294967169, %v883_v55 }
 0x110   :  { %v744_v11 = vsel %vm3298_vm9, 0, %v3297_v10  ;;  %v807_v14 = vor.u32 %v806_v40, %v805_v50  ;;  %v817_v53 = vsel %vm811_vm11, %v804_v23, 920167782  ;;  %v820_v45 = vsel %vm808_vm7, %v798_v57, %v801_v6  ;;  %v4309_v40 = vld [vmem:[%s6102_s0] sm:$0xff]  }
 0x111   :  { %v4172_v24 = vpop.eup %4171  ;;  %v745_v62 = vsub.s32 32, %v744_v11  ;;  %v749_v7 = vsub.s32 4294967266, %v744_v11  ;;  %v818_v58 = vsel %vm810_vm10, %v801_v6, %v817_v53  ;;  %v879_v55 = vand.u32 2147483647, %v4890_v3 }
 0x112   :  { %v4174_v25 = vpop.eup %4173  ;;  %v232_v47 = vmul.f32 %v4172_v24, %v4776_v59  ;;  %v746_v59 = vshll.u32 %v4899_v5, %v744_v11  ;;  %v813_v5 = vsel %vm811_vm11, %v801_v6, 2102212464  ;;  %v821_v32 = vsel %vm811_vm11, %v807_v14, 1326507024 }
 0x113   :  { %v4176_v1 = vpop.eup %4175  ;;  %v669_v61 = vxor.u32 2147483648, %v4174_v25  ;;  %v747_v8 = vshrl.u32 %v729_v15, %v745_v62  ;;  %v750_v13 = vadd.s32 127, %v749_v7  ;;  %v812_v15 = vsel %vm808_vm7, %v792_v51, %v795_v63 }
 0x114   :  { %v243_v56 = vpack.c.bf16 %v232_v47, %v231_v60  ;;  %v666_v12 = vxor.u32 2147483648, %v4176_v1  ;;  %v814_v44 = vsel %vm810_vm10, %v798_v57, %v813_v5  ;;  %v822_v24 = vsel %vm810_vm10, %v804_v23, %v821_v32 }
 0x115   :  { %v670_v35 = vsel %vm668_vm6, %v669_v61, %v4176_v1  ;;  %v748_v60 = vor.u32 %v747_v8, %v746_v59  ;;  %v751_v4 = vshll.u32 %v750_v13, 23  ;;  %vm765_vm9 = vweird.f32 %v4564_v31 }
 0x116   :  { %3725 = vmatmul.mubr.msk.bf16.gmra.mxu1 %vm272_vm12, %v243_v56  ;;  %v667_v2 = vsel %vm665_vm4, %v4174_v25, %v666_v12  ;;  %vm809_vm12 = vcmp.lt.s32.totalorder %v4918_v36, 2  ;;  %v759_v36 = vsub.s32 4, %v4881_v16 }
 0x117   :  { %3732 = vmatprep.mubr.msk.bf16.mxu1 %vm4317_vm0, %v4316_v0  ;;  %v671_v29 = vsel %vm664_vm3, %v667_v2, %v670_v35  ;;  %v752_v46 = vor.u32 4788187, %v751_v4  ;;  %v755_v41 = vcvt.s32.f32 %v748_v60  ;;  %v819_v18 = vsel %vm809_vm12, %v816_v21, %v818_v58 }
 0x118   :  { %v672_v52 = vsel %vm662_vm5, nan, %v671_v29  ;;  %v4970_v10 = vmul.u32.u64.low %v4914_v49, %v819_v18  ;;  %v4971_v51 = vmul.u32.u64.high %v4914_v49, %v819_v18, %v4970_v10  ;;  %v815_v47 = vsel %vm809_vm12, %v812_v15, %v814_v44 }
 0x119   :  { %v984_v20 = vadd.f32 1.0, %v672_v52  ;;  %v753_v25 = vand.u32 2147483647, %v752_v46  ;;  %v823_v63 = vsel %vm809_vm12, %v820_v45, %v822_v24  ;;  %v831_v6 = vmul.u32 %v4914_v49, %v815_v47 }
 0x11a   :  { %v4984_v1 = vmul.u32.u64.low %v4914_v49, %v823_v63  ;;  %v4985_v61 = vmul.u32.u64.high %v4914_v49, %v823_v63, %v4984_v1  ;;  %v834_v56 = vadd.s32 1, %v4971_v51  ;;  %v886_v35 = vand.u32 8388607, %v879_v55  ;;  %v4311_v63 = vld [vmem:[%s6102_s0 + $0x10] sm:$0xff]  }
 0x11b   :  { %v990_v43 = vmul.f32 0.5, %v984_v20  ;;  %v756_v57 = vmul.f32 %v755_v41, %v753_v25  ;;  %v760_v49 = vsel %vm675_vm13, %v759_v36, %v4881_v16  ;;  %v4310_v16 = vld [vmem:[%s6102_s0 + $0x8] sm:$0xff]  }
 0x11c   :  { %vm833_vm1 = vc.u32 %v4985_v61, %v4970_v10  ;;  %v887_v53 = vor.u32 8388608, %v886_v35 }
 0x11d   :  { %v1014_v50 = vmul.f32 %v4906_v27, %v990_v43  ;;  %v889_v27 = vadd.s32 1, %v3303_v34  ;;  %v757_v11 = vxor.u32 2147483648, %v756_v57  ;;  %v835_v7 = vsel %vm833_vm1, %v834_v56, %v4971_v51 }
 0x11e   :  { %3733 = vmatmul.mubr.msk.bf16.vlgmr.msra.gmra.mxu1 %vm1197_vm8, %v4309_v40  ;;  %v836_v14 = vadd.s32 %v835_v7, %v831_v6  ;;  %v927_v24 = vshll.u32 %v887_v53, 8 }
 0x11f   :  { %3736 = vmatprep.mubr.msk.bf16.mxu1 %vm4317_vm0, %v4316_v0  ;;  %1066 = vperm.xlu1 %3999, %v1014_v50   ;;  %vm890_vm14 = vcmp.gt.s32.totalorder %v889_v27, 0  ;;  %v758_v59 = vsel %vm675_vm13, %v757_v11, %v756_v57  ;;  %vm778_vm13 = vcmp.lt.s32.totalorder %v4849_v38, 0 }
 0x120   :  { %v891_v23 = vsel %vm890_vm14, %v889_v27, 0  ;;  %v761_v17 = vsel %vm4996_vm15, %v4564_v31, %v758_v59  ;;  %v837_v21 = vadd.s32 536870912, %v836_v14  ;;  %vm5069_vm14 = vcmp.le.f32.partialorder %v776_v22, 0.7853982  ;;  %v1408_v22 = vld [vmem:[%s6107_s12 + $0x78] sm:$0xff] }
 0x121   :  { %v893_v62 = vand.u32 31, %v891_v23  ;;  %v892_v2 = vshrl.u32 %v891_v23, 5  ;;  %4177 = vcosq.f32 %v761_v17  ;;  %3744 = vmatprep.subr.mxu0 %v1408_v22  ;;  %3785 = vmatprep.subr.mxu1 %v1408_v22 }
 0x122   :  { %4179 = vsinq.f32 %v761_v17  ;;  %v5024_v58 = vshrl.u32 %v837_v21, 30  ;;  %v4312_v21 = vld [vmem:[%s6104_s1 + $0x18] sm:$0xff]  ;;  %3745 = vmatpush3.msra.mxu0 %v1408_v22  ;;  %3786 = vmatpush3.msra.mxu1 %v1408_v22 }
 0x123   :  { %v894_v29 = vsub.s32 32, %v893_v62  ;;  %v896_v8 = vshll.u32 %v4319_v37, %v893_v62  ;;  %v899_v13 = vshll.u32 %v4320_v39, %v893_v62  ;;  %v902_v5 = vshll.u32 %v4321_v42, %v893_v62 }
 0x124   :  { %v905_v52 = vshll.u32 %v4318_v33, %v893_v62  ;;  %v908_v44 = vshll.u32 %v4322_v48, %v893_v62  ;;  %vm911_vm2 = vcmp.lt.s32.totalorder %v892_v2, 1  ;;  %vm913_vm3 = vcmp.lt.s32.totalorder %v892_v2, 3 }
 0x125   :  { %v897_v20 = vshrl.u32 %v4320_v39, %v894_v29  ;;  %v900_v60 = vshrl.u32 %v4321_v42, %v894_v29  ;;  %v903_v4 = vshrl.u32 %v4318_v33, %v894_v29  ;;  %v906_v15 = vshrl.u32 %v4322_v48, %v894_v29 }
 0x126   :  { %3737 = vmatmul.mubr.msk.bf16.gmra.mxu1 %vm1197_vm8, %v4310_v16  ;;  %v909_v32 = vshrl.u32 %v4323_v54, %v894_v29  ;;  %v762_v39 = vsel %vm4996_vm15, 0, %v760_v49  ;;  %v839_v42 = vshll.u32 %v5024_v58, 30  ;;  %v895_v33 = vshrl.u32 %v4319_v37, %v894_v29 }
 0x127   :  { %3740 = vmatprep.mubr.msk.bf16.mxu1 %vm4317_vm0, %v4316_v0  ;;  %v898_v45 = vor.u32 %v897_v20, %v896_v8  ;;  %v901_v43 = vor.u32 %v900_v60, %v899_v13  ;;  %v904_v46 = vor.u32 %v903_v4, %v902_v5  ;;  %v907_v41 = vor.u32 %v906_v15, %v905_v52 }
 0x128   :  { %v910_v18 = vor.u32 %v909_v32, %v908_v44  ;;  %vm912_vm4 = vcmp.lt.s32.totalorder %v892_v2, 2  ;;  %vm914_vm5 = vcmp.lt.s32.totalorder %v892_v2, 4  ;;  %v840_v51 = vsub.s32 %v836_v14, %v839_v42 }
 0x129   :  { %v919_v48 = vsel %vm911_vm2, %v898_v45, %v901_v43  ;;  %v916_v54 = vsel %vm914_vm5, %v904_v46, 2102212464  ;;  %v920_v34 = vsel %vm914_vm5, %v907_v41, 920167782  ;;  %v766_v50 = vand.u32 3, %v762_v39 }
 0x12a   :  { %v921_v25 = vsel %vm913_vm3, %v904_v46, %v920_v34  ;;  %v924_v47 = vsel %vm914_vm5, %v910_v18, 1326507024  ;;  %v842_v37 = vsub.s32 0, %v840_v51  ;;  %v915_v40 = vsel %vm911_vm2, %v895_v33, %v898_v45 }
 0x12b   :  { %v922_v1 = vsel %vm912_vm4, %v919_v48, %v921_v25  ;;  %v923_v27 = vsel %vm911_vm2, %v901_v43, %v904_v46  ;;  %v917_v57 = vsel %vm913_vm3, %v901_v43, %v916_v54  ;;  %v925_v36 = vsel %vm913_vm3, %v907_v41, %v924_v47 }
 0x12c   :  { %v5042_v6 = vmul.u32.u64.low %v927_v24, %v922_v1  ;;  %v5043_v56 = vmul.u32.u64.high %v927_v24, %v922_v1, %v5042_v6  ;;  %v3300_v12 = vmin.u32 %v842_v37, %v840_v51  ;;  %vm771_vm6 = vcmp.eq.s32.totalorder %v766_v50, 2 }
 0x12d   :  { %v926_v11 = vsel %vm912_vm4, %v923_v27, %v925_v36  ;;  %v918_v62 = vsel %vm912_vm4, %v915_v40, %v917_v57  ;;  %vm768_vm7 = vcmp.eq.s32.totalorder %v766_v50, 0  ;;  %v832_v2 = vadd.s32 %v4970_v10, %v4985_v61 }
 0x12e   :  { %3741 = vmatmul.mubr.msk.bf16.gmra.mxu1 %vm1197_vm8, %v4311_v63  ;;  %v4178_v23 = vpop.eup %4177  ;;  %v844_v35 = vclz %v3300_v12  ;;  %v5048_v59 = vmul.u32.u64.low %v927_v24, %v926_v11  ;;  %v5049_v49 = vmul.u32.u64.high %v927_v24, %v926_v11, %v5048_v59  ;;  %v937_v14 = vadd.s32 1, %v5043_v56  ;;  %v1407_v12 = vld [vmem:[%s6107_s12 + $0x70] sm:$0xff] }
 0x12f   :  { %v4180_v7 = vpop.eup %4179  ;;  %v772_v17 = vxor.u32 2147483648, %v4178_v23  ;;  %vm767_vm8 = vcmp.lt.s32.totalorder %v766_v50, 2  ;;  %v934_v5 = vmul.u32 %v927_v24, %v918_v62  ;;  %vm997_vm12 = vcmp.le.f32.partialorder %v4312_v21, 8.0  ;;  %3746 = vmatprep.subr.mxu0 %v1407_v12  ;;  %3787 = vmatprep.subr.mxu1 %v1407_v12  ;;  %v1402_v21 = vld [vmem:[%s6107_s12 + $0x48] sm:$0xff] }
 0x130   :  { %v769_v29 = vxor.u32 2147483648, %v4180_v7  ;;  %v3301_v8 = vadd.s32 4294967294, %v844_v35  ;;  %vm936_vm11 = vc.u32 %v5049_v49, %v5042_v6  ;;  %v3310_v10 = vsel %vm997_vm12, 1.0, %v4316_v0  ;;  %3747 = vmatpush3.msra.mxu0 %v1407_v12  ;;  %3788 = vmatpush3.msra.mxu1 %v1407_v12 }
 0x131   :  { %v773_v13 = vsel %vm771_vm6, %v772_v17, %v4180_v7  ;;  %v938_v31 = vsel %vm936_vm11, %v937_v14, %v5043_v56  ;;  %v862_v40 = vsub.s32 4, %v5024_v58  ;;  %v935_v56 = vadd.s32 %v5042_v6, %v5049_v49  ;;  %v1405_v7 = vld [vmem:[%s6107_s12 + $0x60] sm:$0xff] }
 0x132   :  { %v770_v52 = vsel %vm768_vm7, %v4178_v23, %v769_v29  ;;  %vm3302_vm10 = vcmp.lt.s32.totalorder %v3301_v8, 0  ;;  %v939_v45 = vadd.s32 %v938_v31, %v934_v5  ;;  %vm868_vm4 = vweird.f32 %v4849_v38 }
 0x133   :  { %v774_v16 = vsel %vm767_vm8, %v770_v52, %v773_v13  ;;  %v847_v53 = vsel %vm3302_vm10, 0, %v3301_v8  ;;  %v863_v36 = vsel %vm778_vm13, %v862_v40, %v5024_v58  ;;  %v1406_v58 = vld [vmem:[%s6107_s12 + $0x68] sm:$0xff]  ;;  %v1404_v8 = vld [vmem:[%s6107_s12 + $0x58] sm:$0xff]  ;;  %v1403_v52 = vld [vmem:[%s6107_s12 + $0x50] sm:$0xff]  ;;  %vm881_vm5 = vcmp.lt.s32.totalorder %v4890_v3, 0 }
 0x134   :  { %v775_v20 = vsel %vm765_vm9, nan, %v774_v16  ;;  %v848_v60 = vsub.s32 32, %v847_v53  ;;  %v849_v4 = vshll.u32 %v840_v51, %v847_v53  ;;  %v852_v15 = vsub.s32 4294967266, %v847_v53  ;;  %3748 = vmatprep.subr.mxu0 %v1406_v58  ;;  %3789 = vmatprep.subr.mxu1 %v1406_v58 }
 0x135   :  { %v985_v44 = vadd.f32 1.0, %v775_v20  ;;  %v940_v43 = vadd.s32 536870912, %v939_v45  ;;  %v865_v6 = vsel %vm5069_vm14, 0, %v863_v36  ;;  %3749 = vmatpush3.msra.mxu0 %v1406_v58  ;;  %3790 = vmatpush3.msra.mxu1 %v1406_v58  ;;  %vm5115_vm6 = vcmp.le.f32.partialorder %v879_v55, 0.7853982 }
 0x136   :  { %v850_v61 = vshrl.u32 %v832_v2, %v848_v60  ;;  %v853_v32 = vadd.s32 127, %v852_v15  ;;  %3750 = vmatprep.subr.mxu0 %v1405_v7  ;;  %3791 = vmatprep.subr.mxu1 %v1405_v7  ;;  %v869_v17 = vand.u32 3, %v865_v6  ;;  %vm998_vm7 = vcmp.le.f32.partialorder %v4825_v26, 8.0 }
 0x137   :  { %v991_v39 = vmul.f32 0.5, %v985_v44  ;;  %v5063_v33 = vshrl.u32 %v940_v43, 30  ;;  %3751 = vmatpush3.msra.mxu0 %v1405_v7  ;;  %3792 = vmatpush3.msra.mxu1 %v1405_v7  ;;  %v1399_v43 = vld [vmem:[%s6107_s12 + $0x30] sm:$0xff]  ;;  %vm971_vm11 = vweird.f32 %v4890_v3  ;;  %vm999_vm12 = vcmp.le.f32.partialorder %v4854_v28, 8.0 }
 0x138   :  { %v851_v46 = vor.u32 %v850_v61, %v849_v4  ;;  %v854_v41 = vshll.u32 %v853_v32, 23  ;;  %3752 = vmatprep.subr.mxu0 %v1404_v8  ;;  %3793 = vmatprep.subr.mxu1 %v1404_v8  ;;  %vm874_vm1 = vcmp.eq.s32.totalorder %v869_v17, 2  ;;  %vm871_vm2 = vcmp.eq.s32.totalorder %v869_v17, 0  ;;  %v1401_v4 = vld [vmem:[%s6107_s12 + $0x40] sm:$0xff]  ;;  %v1400_v61 = vld [vmem:[%s6107_s12 + $0x38] sm:$0xff] }
 0x139   :  { %v1015_v42 = vmul.f32 %v3310_v10, %v991_v39  ;;  %v942_v24 = vshll.u32 %v5063_v33, 30  ;;  %3753 = vmatpush3.msra.mxu0 %v1404_v8  ;;  %3794 = vmatpush3.msra.mxu1 %v1404_v8  ;;  %vm870_vm3 = vcmp.lt.s32.totalorder %v869_v17, 2  ;;  %v5169_v58 = vsub.s32 1, %v4530_v30  ;;  %v1153_v17 = vld [vmem:[%s6109_s5] sm:$0xff] }
 0x13a   :  { %v855_v18 = vor.u32 4788187, %v854_v41  ;;  %v858_v48 = vcvt.s32.f32 %v851_v46  ;;  %3754 = vmatprep.subr.mxu0 %v1403_v52  ;;  %3795 = vmatprep.subr.mxu1 %v1403_v52  ;;  %v965_v41 = vsub.s32 4, %v5063_v33 }
 0x13b   :  { %1071 = vperm.xlu1 %3999, %v1015_v42   ;;  %v943_v54 = vsub.s32 %v939_v45, %v942_v24  ;;  %3755 = vmatpush3.msra.mxu0 %v1403_v52  ;;  %v1398_v42 = vld [vmem:[%s6107_s12 + $0x28] sm:$0xff] }
 0x13c   :  { %v856_v51 = vand.u32 2147483647, %v855_v18  ;;  %3796 = vmatpush3.msra.mxu1 %v1403_v52  ;;  %3756 = vmatprep.subr.mxu0 %v1402_v21 }
 0x13d   :  { %v945_v50 = vsub.s32 0, %v943_v54  ;;  %3797 = vmatprep.subr.mxu1 %v1402_v21  ;;  %3757 = vmatpush3.msra.mxu0 %v1402_v21 }
 0x13e   :  { %v859_v34 = vmul.f32 %v858_v48, %v856_v51  ;;  %3798 = vmatpush3.msra.mxu1 %v1402_v21  ;;  %3758 = vmatprep.subr.mxu0 %v1401_v4  ;;  %v1397_v48 = vld [vmem:[%s6107_s12 + $0x20] sm:$0xff]  ;;  %v966_v51 = vsel %vm881_vm5, %v965_v41, %v5063_v33  ;;  %v1394_v33 = vld [vmem:[%s6107_s12 + $0x8] sm:$0xff]  ;;  %v1169_v41 = vld [vmem:[%s6108_s6 + $0x18] sm:$0xff] }
 0x13f   :  { %v3304_v63 = vmin.u32 %v945_v50, %v943_v54  ;;  %3799 = vmatprep.subr.mxu1 %v1401_v4  ;;  %3759 = vmatpush3.msra.mxu0 %v1401_v4  ;;  %v1395_v50 = vld [vmem:[%s6107_s12 + $0x10] sm:$0xff] }
 0x140   :  { %v860_v47 = vxor.u32 2147483648, %v859_v34  ;;  %3800 = vmatpush3.msra.mxu1 %v1401_v4  ;;  %3760 = vmatprep.subr.mxu0 %v1400_v61  ;;  %v1167_v21 = vld [vmem:[%s6108_s6 + $0xc] sm:$0xff] }
 0x141   :  { %v947_v27 = vclz %v3304_v63  ;;  %3801 = vmatprep.subr.mxu1 %v1400_v61  ;;  %3761 = vmatpush3.msra.mxu0 %v1400_v61  ;;  %v4017_v63 = vld [vmem:[%s6110_s8 + $0xac] ss:$12 sps:$4 sm:$0xff]  }
 0x142   :  { %v861_v37 = vsel %vm778_vm13, %v860_v47, %v859_v34  ;;  %3802 = vmatpush3.msra.mxu1 %v1400_v61  ;;  %3762 = vmatprep.subr.mxu0 %v1399_v43  ;;  %v968_v34 = vsel %vm5115_vm6, 0, %v966_v51  ;;  %v1393_v47 = vld [vmem:[%s6107_s12] sm:$0xff]  ;;  %v1157_v61 = vld [vmem:[%s6109_s5 + $0x18] sm:$0xff]  ;;  %v1152_v51 = vld [vmem:[%s6111_s11 + $0x8] sm:$0x3]  ;;  %vm1144_vm13 = vcmask 257024  }
 0x143   :  { %v864_v1 = vsel %vm5069_vm14, %v4849_v38, %v861_v37  ;;  %v3305_v57 = vadd.s32 4294967294, %v947_v27  ;;  %3803 = vmatprep.subr.mxu1 %v1399_v43  ;;  %v3311_v38 = vsel %vm998_vm7, 1.0, %v4316_v0  ;;  %3763 = vmatpush3.msra.mxu0 %v1399_v43  ;;  %v972_v25 = vand.u32 3, %v968_v34  ;;  %v4020_v27 = vld [vmem:[%s6110_s8 + $0x22c] ss:$12 sps:$4 sm:$0xff]  }
 0x144   :  { %4181 = vcosq.f32 %v864_v1  ;;  %3804 = vmatpush3.msra.mxu1 %v1399_v43  ;;  %3764 = vmatprep.subr.mxu0 %v1398_v42 }
 0x145   :  { %4183 = vsinq.f32 %v864_v1  ;;  %vm3306_vm15 = vcmp.lt.s32.totalorder %v3305_v57, 0  ;;  %3805 = vmatprep.subr.mxu1 %v1398_v42  ;;  %3765 = vmatpush3.msra.mxu0 %v1398_v42  ;;  %vm977_vm8 = vcmp.eq.s32.totalorder %v972_v25, 2  ;;  %vm974_vm9 = vcmp.eq.s32.totalorder %v972_v25, 0 }
 0x146   :  { %v950_v11 = vsel %vm3306_vm15, 0, %v3305_v57  ;;  %3806 = vmatpush3.msra.mxu1 %v1398_v42  ;;  %3766 = vmatprep.subr.mxu0 %v1397_v48  ;;  %vm973_vm10 = vcmp.lt.s32.totalorder %v972_v25, 2  ;;  %v1275_v42 = vrot.slane %v1157_v61, 4 }
 0x147   :  { %v951_v23 = vsub.s32 32, %v950_v11  ;;  %v952_v35 = vshll.u32 %v943_v54, %v950_v11  ;;  %v955_v62 = vsub.s32 4294967266, %v950_v11  ;;  %3807 = vmatprep.subr.mxu1 %v1397_v48  ;;  %3767 = vmatpush3.msra.mxu0 %v1397_v48  ;;  %v1396_v54 = vld [vmem:[%s6107_s12 + $0x18] sm:$0xff] }
 0x148   :  { %3808 = vmatpush3.msra.mxu1 %v1397_v48  ;;  %3768 = vmatprep.subr.mxu0 %v1396_v54  ;;  %v1171_v48 = vld [vmem:[%s6108_s6 + $0x24] sm:$0xff] }
 0x149   :  { %v953_v59 = vshrl.u32 %v935_v56, %v951_v23  ;;  %v956_v49 = vadd.s32 127, %v955_v62  ;;  %3769 = vmatpush3.msra.mxu0 %v1396_v54  ;;  %3809 = vmatprep.subr.mxu1 %v1396_v54  ;;  %v3312_v23 = vsel %vm999_vm12, 1.0, %v4316_v0 }
 0x14a   :  { %3770 = vmatprep.subr.mxu0 %v1395_v50  ;;  %3810 = vmatpush3.msra.mxu1 %v1396_v54  ;;  %v1299_v54 = vrot.slane %v1169_v41, 4 }
 0x14b   :  { %v954_v14 = vor.u32 %v953_v59, %v952_v35  ;;  %v957_v29 = vshll.u32 %v956_v49, 23  ;;  %3771 = vmatpush3.msra.mxu0 %v1395_v50  ;;  %3811 = vmatprep.subr.mxu1 %v1395_v50 }
 0x14c   :  { %3772 = vmatprep.subr.mxu0 %v1394_v33  ;;  %3812 = vmatpush3.msra.mxu1 %v1395_v50 }
 0x14d   :  { %v958_v13 = vor.u32 4788187, %v957_v29  ;;  %v961_v5 = vcvt.s32.f32 %v954_v14  ;;  %3773 = vmatpush3.msra.mxu0 %v1394_v33  ;;  %3813 = vmatprep.subr.mxu1 %v1394_v33  ;;  %v1165_v29 = vld [vmem:[%s6108_s6] sm:$0xff] }
 0x14e   :  { %3774 = vmatprep.subr.mxu0 %v1393_v47  ;;  %3814 = vmatpush3.msra.mxu1 %v1394_v33  ;;  %v1297_v52 = vrot.slane %v1165_v29, 4 }
 0x14f   :  { %v959_v16 = vand.u32 2147483647, %v958_v13  ;;  %3775 = vmatpush3.msra.mxu0 %v1393_v47  ;;  %3815 = vmatprep.subr.mxu1 %v1393_v47  ;;  %v1273_v13 = vrot.slane %v1153_v17, 4 }
 0x150   :  { %2369 = vmatprep.subr.bf16.mxu0 %v4017_v63  ;;  %3816 = vmatpush3.msra.mxu1 %v1393_v47 }
 0x151   :  { %v4182_v2 = vpop.eup %4181  ;;  %v962_v60 = vmul.f32 %v961_v5, %v959_v16  ;;  %2432 = vmatprep.subr.bf16.mxu1 %v4020_v27  ;;  %v1155_v16 = vld [vmem:[%s6109_s5 + $0xc] sm:$0xff]  ;;  %v5235_v27 = vunpack.c.l.bf16 %v1157_v61 }
 0x152   :  { %v4184_v53 = vpop.eup %4183  ;;  %v875_v31 = vxor.u32 2147483648, %v4182_v2  ;;  %v1274_v4 = vrot.slane %v1155_v16, 4 }
 0x153   :  { %v872_v20 = vxor.u32 2147483648, %v4184_v53  ;;  %v963_v10 = vxor.u32 2147483648, %v962_v60 }
 0x154   :  { %v876_v15 = vsel %vm874_vm1, %v875_v31, %v4184_v53  ;;  %v1261_v31 = vunpack.c.l.bf16 %v1153_v17  ;;  %v1163_v17 = vld [vmem:[%s6109_s5 + $0x3c] sm:$0xff] }
 0x155   :  { %v873_v44 = vsel %vm871_vm2, %v4182_v2, %v872_v20  ;;  %v964_v55 = vsel %vm881_vm5, %v963_v10, %v962_v60  ;;  %v1285_v20 = vunpack.c.l.bf16 %v1273_v13 }
 0x156   :  { %v877_v32 = vsel %vm870_vm3, %v873_v44, %v876_v15  ;;  %v967_v26 = vsel %vm5115_vm6, %v4890_v3, %v964_v55  ;;  %v4313_v3 = vld [vmem:[%s6106_s4] sm:$0x3]  ;;  %v1298_v15 = vrot.slane %v1167_v21, 4  ;;  %v1309_v44 = vunpack.c.l.bf16 %v1297_v52 }
 0x157   :  { %v878_v39 = vsel %vm868_vm4, nan, %v877_v32  ;;  %4185 = vcosq.f32 %v967_v26  ;;  %v247_v6 = vrot.slane %v4313_v3, %v5169_v58  ;;  %v1315_v32 = vmul.f32 %v1285_v20, %v1261_v31  ;;  %v1175_v21 = vld [vmem:[%s6108_s6 + $0x3c] sm:$0xff] }
 0x158   :  { %v986_v46 = vadd.f32 1.0, %v878_v39  ;;  %4187 = vsinq.f32 %v967_v26  ;;  %v5206_v39 = vunpack.c.l.bf16 %v1155_v16  ;;  %v1286_v55 = vunpack.c.l.bf16 %v1274_v4 }
 0x159   :  { %v1310_v43 = vunpack.c.l.bf16 %v1298_v15  ;;  %v5226_v33 = vmul.f32 0.10206208, %v1315_v32 }
 0x15a   :  { %v992_v18 = vmul.f32 0.5, %v986_v46  ;;  %v1327_v46 = vmul.f32 %v1309_v44, %v1261_v31  ;;  %v1316_v34 = vmul.f32 %v1286_v55, %v5206_v39 }
 0x15b   :  { %v1328_v50 = vmul.f32 %v1310_v43, %v5206_v39 }
 0x15c   :  { %v1016_v24 = vmul.f32 %v3311_v38, %v992_v18  ;;  %v1159_v18 = vld [vmem:[%s6109_s5 + $0x24] sm:$0xff]  ;;  %v5228_v25 = vmul.f32 0.10206208, %v1327_v46  ;;  %v1302_v46 = vrot.slane %v1175_v21, 4 }
 0x15d   :  { %v1276_v63 = vrot.slane %v1159_v18, 4 }
 0x15e   :  { %1076 = vperm.xlu0 %3998, %v1016_v24   ;;  %v1351_v13 = vadd.f32 %v5228_v25, %v5226_v33 }
 0x164   :  { %v4186_v37 = vpop.eup %4185 }
 0x165   :  { %v4188_v40 = vpop.eup %4187  ;;  %v978_v1 = vxor.u32 2147483648, %v4186_v37 }
 0x166   :  { %v975_v57 = vxor.u32 2147483648, %v4188_v40 }
 0x167   :  { %v979_v22 = vsel %vm977_vm8, %v978_v1, %v4188_v40  ;;  %v5233_v1 = vrot.slane %v1152_v51, %v4554_v19 }
 0x168   :  { %v976_v36 = vsel %vm974_vm9, %v4186_v37, %v975_v57  ;;  %v1300_v37 = vrot.slane %v1171_v48, 4  ;;  %v1287_v57 = vunpack.c.l.bf16 %v1275_v42 }
 0x169   :  { %v980_v56 = vsel %vm973_vm10, %v976_v36, %v979_v22  ;;  %v1311_v36 = vunpack.c.l.bf16 %v1299_v54 }
 0x16a   :  { %v981_v12 = vsel %vm971_vm11, nan, %v980_v56  ;;  %v5239_v56 = vmul.f32 0.10206208, %v1316_v34  ;;  %v1317_v29 = vmul.f32 %v1287_v57, %v5235_v27 }
 0x16b   :  { %v987_v11 = vadd.f32 1.0, %v981_v12  ;;  %v5241_v12 = vmul.f32 0.10206208, %v1328_v50  ;;  %v1329_v52 = vmul.f32 %v1311_v36, %v5235_v27 }
 0x16c   :  { %v1364_v20 = vmul.f32 %v5239_v56, %v5239_v56  ;;  %v5282_v43 = vmul.f32 0.10206208, %v1317_v29 }
 0x16d   :  { %v993_v35 = vmul.f32 0.5, %v987_v11  ;;  %v1363_v11 = vmul.f32 %v5226_v33, %v5226_v33  ;;  %v1352_v44 = vadd.f32 %v5241_v12, %v5239_v56 }
 0x16f   :  { %v1017_v62 = vmul.f32 %v3312_v23, %v993_v35  ;;  %v1369_v23 = vmul.f32 %v5228_v25, %v5228_v25  ;;  %v1161_v35 = vld [vmem:[%s6109_s5 + $0x30] sm:$0xff] }
 0x171   :  { %1081 = vperm.xlu1 %3999, %v1017_v62   ;;  %v1173_v62 = vld [vmem:[%s6108_s6 + $0x30] sm:$0xff]  ;;  %v1375_v4 = vadd.f32 %v1369_v23, %v1363_v11  ;;  %v1314_v11 = vunpack.c.l.bf16 %v1302_v46 }
 0x172   :  { %v1301_v16 = vrot.slane %v1173_v62, 4  ;;  %v1365_v62 = vmul.f32 %v5282_v43, %v5282_v43 }
 0x174   :  { %v1313_v48 = vunpack.c.l.bf16 %v1301_v16  ;;  %v4018_v16 = vld [vmem:[%s6110_s8 + $0x228] ss:$12 sps:$4 sm:$0xff]  }
 0x1c5   :  { %v316_v59 = vpop.f32.mrf.mxu1 }
 0x1c6   :  { %v5175_v49 = vadd.f32 %v316_v59, %v247_v6  ;;  %v1288_v59 = vunpack.c.l.bf16 %v1276_v63 }
 0x1c7   :  { %v3718_v28 = vpop.f32.mrf.mxu1 }
 0x1c8   :  { %1096 = vrot.lane.b32.xlu0 %v5175_v49, %s4325_s17  ;;  %v1312_v28 = vunpack.c.l.bf16 %v1300_v37 }
 0x1c9   :  { %v319_v7 = vpop.f32.mrf.mxu1 }
 0x1ca   :  { %v5182_v14 = vadd.f32 %v319_v7, %v247_v6 }
 0x1cb   :  { %v3719_v8 = vpop.f32.mrf.mxu1 }
 0x1cc   :  { %1098 = vrot.lane.b32.xlu1 %v5182_v14, %s4325_s17 }
 0x1cd   :  { %v324_v5 = vpop.f32.mrf.mxu1 }
 0x1ce   :  { %v5189_v2 = vadd.f32 %v324_v5, %v247_v6  ;;  %v1277_v5 = vrot.slane %v1161_v35, 4 }
 0x1cf   :  { %v3722_v53 = vpop.f32.mrf.mxu1 }
 0x1d0   :  { %1100 = vrot.lane.b32.xlu0 %v5189_v2, %s4325_s17  ;;  %v1289_v42 = vunpack.c.l.bf16 %v1277_v5 }
 0x1d1   :  { %v327_v60 = vpop.f32.mrf.mxu1 }
 0x1d2   :  { %v5199_v45 = vadd.f32 %v327_v60, %v247_v6  ;;  %v1370_v60 = vmul.f32 %v5241_v12, %v5241_v12 }
 0x1d3   :  { %v3723_v10 = vpop.f32.mrf.mxu1 }
 0x1d4   :  { %1102 = vrot.lane.b32.xlu1 %v5199_v45, %s4325_s17  ;;  %v1278_v10 = vrot.slane %v1163_v17, 4  ;;  %v1376_v51 = vadd.f32 %v1370_v60, %v1364_v20 }
 0x1d6   :  { %v332_v26 = vpop.f32.mrf.mxu1  ;;  %v1290_v63 = vunpack.c.l.bf16 %v1278_v10 }
 0x1d7   :  { %v5211_v38 = vadd.f32 %v332_v26, %v247_v6  ;;  %v5284_v26 = vunpack.c.l.bf16 %v1161_v35  ;;  %v4015_v35 = vld [vmem:[%s6110_s8 + $0xa8] ss:$12 sps:$4 sm:$0xff]  }
 0x1d8   :  { %v3726_v24 = vpop.f32.mrf.mxu1 }
 0x1d9   :  { %1104 = vrot.lane.b32.xlu0 %v5211_v38, %s4325_s17 }
 0x1da   :  { %v335_v47 = vpop.f32.mrf.mxu1 }
 0x1db   :  { %v5230_v40 = vadd.f32 %v335_v47, %v247_v6  ;;  %v5253_v6 = vunpack.c.l.bf16 %v1159_v18  ;;  %v5286_v18 = vmul.f32 0.10206208, %v1329_v52  ;;  %v5293_v47 = vunpack.c.l.bf16 %v1163_v17 }
 0x1dc   :  { %v3727_v22 = vpop.f32.mrf.mxu1 }
 0x1dd   :  { %1106 = vrot.lane.b32.xlu1 %v5230_v40, %s4325_s17  ;;  %v1318_v61 = vmul.f32 %v1288_v59, %v5253_v6  ;;  %v1330_v32 = vmul.f32 %v1312_v28, %v5253_v6  ;;  %v1319_v59 = vmul.f32 %v1289_v42, %v5284_v26  ;;  %v1331_v28 = vmul.f32 %v1313_v48, %v5284_v26 }
 0x1de   :  { %v1238_v3 = vpop.f32.mrf.mxu1  ;;  %v1353_v5 = vadd.f32 %v5286_v18, %v5282_v43 }
 0x1df   :  { %v5256_v7 = vadd.f32 %v1238_v3, %v5233_v1  ;;  %v5295_v37 = vmul.f32 0.10206208, %v1318_v61  ;;  %v5297_v57 = vmul.f32 0.10206208, %v1330_v32  ;;  %v1371_v3 = vmul.f32 %v5286_v18, %v5286_v18  ;;  %v4021_v61 = vld [vmem:[%s6110_s8 + $0x90] ss:$12 sps:$4 sm:$0xff]  }
 0x1e0   :  { %v3734_v8 = vpop.f32.mrf.mxu1  ;;  %v5343_v46 = vmul.f32 0.10206208, %v1319_v59 }
 0x1e1   :  { %v1339_v53 = vmul.f32 %v1261_v31, %v5256_v7  ;;  %v1366_v21 = vmul.f32 %v5295_v37, %v5295_v37  ;;  %v1377_v32 = vadd.f32 %v1371_v3, %v1365_v62  ;;  %v4027_v3 = vld [vmem:[%s6110_s8 + $0x78] ss:$12 sps:$4 sm:$0xff]  }
 0x1e2   :  { %v1241_v15 = vpop.f32.mrf.mxu1 }
 0x1e3   :  { %v5277_v55 = vmul.f32 0.10206208, %v1339_v53  ;;  %v5280_v31 = vadd.f32 %v1241_v15, %v5233_v1  ;;  %v1372_v53 = vmul.f32 %v5297_v57, %v5297_v57  ;;  %v4026_v15 = vld [vmem:[%s6110_s8 + $0x214] ss:$12 sps:$4 sm:$0xff]  }
 0x1e4   :  { %v3735_v41 = vpop.f32.mrf.mxu1 }
 0x1e5   :  { %v1340_v24 = vmul.f32 %v5206_v39, %v5280_v31  ;;  %v1357_v54 = vadd.f32 %v1351_v13, %v5277_v55  ;;  %v1381_v34 = vmul.f32 %v5277_v55, %v5277_v55  ;;  %v4023_v13 = vld [vmem:[%s6110_s8 + $0x94] ss:$12 sps:$4 sm:$0xff]   ;;  %v5345_v41 = vmul.f32 0.10206208, %v1331_v28 }
 0x1e6   :  { %v1246_v50 = vpop.f32.mrf.mxu1  ;;  %v1367_v28 = vmul.f32 %v5343_v46, %v5343_v46 }
 0x1e7   :  { %v5299_v22 = vmul.f32 0.10206208, %v1340_v24  ;;  %v5302_v36 = vadd.f32 %v1246_v50, %v5233_v1  ;;  %3776 = vmatprep.mubr.f32.mxu0 %v1357_v54  ;;  %v1387_v39 = vadd.f32 %v1381_v34, %v1375_v4  ;;  %v4029_v24 = vld [vmem:[%s6110_s8 + $0x7c] ss:$12 sps:$4 sm:$0xff]  }
 0x1e8   :  { %v3738_v23 = vpop.f32.mrf.mxu1  ;;  %v4024_v34 = vld [vmem:[%s6110_s8 + $0x210] ss:$12 sps:$4 sm:$0xff]  }
 0x1e9   :  { %v1358_v17 = vadd.f32 %v1352_v44, %v5299_v22  ;;  %v1382_v29 = vmul.f32 %v5299_v22, %v5299_v22  ;;  %v1341_v8 = vmul.f32 %v5235_v27, %v5302_v36  ;;  %3817 = vmatprep.mubr.f32.mxu1 %v1387_v39  ;;  %v1320_v27 = vmul.f32 %v1290_v63, %v5293_v47 }
 0x1ea   :  { %v1249_v52 = vpop.f32.mrf.mxu1  ;;  %v1332_v44 = vmul.f32 %v1314_v11, %v5293_v47  ;;  %v4032_v11 = vld [vmem:[%s6110_s8 + $0x1fc] ss:$12 sps:$4 sm:$0xff]   ;;  %v1378_v23 = vadd.f32 %v1372_v53, %v1366_v21 }
 0x1eb   :  { %v1388_v20 = vadd.f32 %v1382_v29, %v1376_v51  ;;  %v5331_v60 = vmul.f32 0.10206208, %v1341_v8  ;;  %v5334_v4 = vadd.f32 %v1249_v52, %v5233_v1  ;;  %3777 = vmatmul.mubr.f32.vlgmr.msra.gmra.mxu0 %v1358_v17  ;;  %v1354_v51 = vadd.f32 %v5297_v57, %v5295_v37 }
 0x1ec   :  { %2370 = vmatpush1.bf16.msra.mxu0 %v4015_v35  ;;  %v3739_v10 = vpop.f32.mrf.mxu1  ;;  %v5360_v50 = vmul.f32 0.10206208, %v1320_v27  ;;  %v5370_v35 = vmul.f32 0.10206208, %v1332_v44  ;;  %v1373_v17 = vmul.f32 %v5345_v41, %v5345_v41  ;;  %v1355_v52 = vadd.f32 %v5345_v41, %v5343_v46 }
 0x1ed   :  { %v1342_v42 = vmul.f32 %v5253_v6, %v5334_v4  ;;  %3818 = vmatmul.mubr.f32.vlgmr.msra.gmra.mxu1 %v1388_v20  ;;  %2371 = vmatprep.subr.bf16.mxu0 %v4023_v13  ;;  %v1359_v48 = vadd.f32 %v1353_v5, %v5331_v60  ;;  %v1383_v6 = vmul.f32 %v5331_v60, %v5331_v60  ;;  %v4035_v5 = vld [vmem:[%s6110_s8 + $0x64] ss:$12 sps:$4 sm:$0xff]   ;;  %v4033_v10 = vld [vmem:[%s6110_s8 + $0x60] ss:$12 sps:$4 sm:$0xff]  }
 0x1ee   :  { %2433 = vmatpush1.bf16.msra.mxu1 %v4018_v16  ;;  %v1254_v54 = vpop.f32.mrf.mxu1  ;;  %v1368_v21 = vmul.f32 %v5360_v50, %v5360_v50  ;;  %v1374_v44 = vmul.f32 %v5370_v35, %v5370_v35 }
 0x1ef   :  { %v5362_v63 = vmul.f32 0.10206208, %v1342_v42  ;;  %v5365_v39 = vadd.f32 %v1254_v54, %v5233_v1  ;;  %2434 = vmatprep.subr.bf16.mxu1 %v4026_v15  ;;  %3779 = vmatprep.mubr.f32.mxu0 %v1359_v48  ;;  %v1389_v59 = vadd.f32 %v1383_v6, %v1377_v32  ;;  %v4038_v15 = vld [vmem:[%s6110_s8 + $0x1e4] ss:$12 sps:$4 sm:$0xff]   ;;  %v4041_v48 = vld [vmem:[%s6110_s8 + $0x4c] ss:$12 sps:$4 sm:$0xff]  }
 0x1f0   :  { %2372 = vmatpush1.bf16.msra.mxu0 %v4021_v61  ;;  %v3742_v62 = vpop.f32.mrf.mxu1  ;;  %v1379_v61 = vadd.f32 %v1373_v17, %v1367_v28  ;;  %v1380_v6 = vadd.f32 %v1374_v44, %v1368_v21  ;;  %v4047_v28 = vld [vmem:[%s6110_s8 + $0x34] ss:$12 sps:$4 sm:$0xff]   ;;  %v4059_v21 = vld [vmem:[%s6110_s8 + $0x4] ss:$12 sps:$4 sm:$0xff]  }
 0x1f1   :  { %v1343_v29 = vmul.f32 %v5284_v26, %v5365_v39  ;;  %2373 = vmatprep.subr.bf16.mxu0 %v4029_v24  ;;  %v1360_v8 = vadd.f32 %v1354_v51, %v5362_v63  ;;  %v1384_v13 = vmul.f32 %v5362_v63, %v5362_v63  ;;  %3820 = vmatprep.mubr.f32.mxu1 %v1389_v59  ;;  %v4030_v26 = vld [vmem:[%s6110_s8 + $0x1f8] ss:$12 sps:$4 sm:$0xff]   ;;  %v4036_v51 = vld [vmem:[%s6110_s8 + $0x1e0] ss:$12 sps:$4 sm:$0xff]   ;;  %v5431_v62 = vld [vmem:[%s6108_s6 + $0x8] ss:$12 sps:$4 sm:$0xff]  }
 0x1f2   :  { %2435 = vmatpush1.bf16.msra.mxu1 %v4024_v34  ;;  %v1257_v16 = vpop.f32.mrf.mxu1  ;;  %v1356_v24 = vadd.f32 %v5370_v35, %v5360_v50  ;;  %v4044_v34 = vld [vmem:[%s6110_s8 + $0x1cc] ss:$12 sps:$4 sm:$0xff]   ;;  %v4042_v17 = vld [vmem:[%s6110_s8 + $0x1c8] ss:$12 sps:$4 sm:$0xff]  }
 0x1f3   :  { %v5394_v53 = vmul.f32 0.10206208, %v1343_v29  ;;  %v5397_v27 = vadd.f32 %v1257_v16, %v5233_v1  ;;  %3780 = vmatmul.mubr.f32.gmra.mxu0 %v1360_v8  ;;  %2436 = vmatprep.subr.bf16.mxu1 %v4032_v11  ;;  %v1390_v20 = vadd.f32 %v1384_v13, %v1378_v23  ;;  %v4039_v11 = vld [vmem:[%s6110_s8 + $0x48] ss:$12 sps:$4 sm:$0xff]   ;;  %v4045_v13 = vld [vmem:[%s6110_s8 + $0x30] ss:$12 sps:$4 sm:$0xff]  }
 0x1f4   :  { %2374 = vmatpush1.bf16.msra.mxu0 %v4027_v3  ;;  %v3743_v32 = vpop.f32.mrf.mxu1  ;;  %v4050_v8 = vld [vmem:[%s6110_s8 + $0x1b4] ss:$12 sps:$4 sm:$0xff]   ;;  %v4056_v16 = vld [vmem:[%s6110_s8 + $0x19c] ss:$12 sps:$4 sm:$0xff]  }
 0x1f5   :  { %v1344_v1 = vmul.f32 %v5293_v47, %v5397_v27  ;;  %3821 = vmatmul.mubr.f32.gmra.mxu1 %v1390_v20  ;;  %2375 = vmatprep.subr.bf16.mxu0 %v4035_v5  ;;  %v1361_v42 = vadd.f32 %v1355_v52, %v5394_v53  ;;  %v1385_v54 = vmul.f32 %v5394_v53, %v5394_v53  ;;  %v4053_v5 = vld [vmem:[%s6110_s8 + $0x1c] ss:$12 sps:$4 sm:$0xff]   ;;  %v4054_v20 = vld [vmem:[%s6110_s8 + $0x198] ss:$12 sps:$4 sm:$0xff]   ;;  %v4057_v44 = vld [vmem:[%s6110_s8] ss:$12 sps:$4 sm:$0xff]  }
 0x1f6   :  { %2437 = vmatpush1.bf16.msra.mxu1 %v4030_v26  ;;  %v4048_v52 = vld [vmem:[%s6110_s8 + $0x1b0] ss:$12 sps:$4 sm:$0xff]   ;;  %v4051_v26 = vld [vmem:[%s6110_s8 + $0x18] ss:$12 sps:$4 sm:$0xff]  }
 0x1f7   :  { %v5420_v47 = vmul.f32 0.10206208, %v1344_v1  ;;  %2438 = vmatprep.subr.bf16.mxu1 %v4038_v15  ;;  %3782 = vmatprep.mubr.f32.mxu0 %v1361_v42  ;;  %v1391_v23 = vadd.f32 %v1385_v54, %v1379_v61  ;;  %v4062_v15 = vld [vmem:[%s6110_s8 + $0x184] ss:$12 sps:$4 sm:$0xff]   ;;  %v4060_v61 = vld [vmem:[%s6110_s8 + $0x180] ss:$12 sps:$4 sm:$0xff]  }
 0x1f8   :  { %2376 = vmatpush1.bf16.msra.mxu0 %v4033_v10  ;;  %v4065_v10 = vld [vmem:[%s6110_s8 + $0x16c] ss:$12 sps:$4 sm:$0xff]   ;;  %v4081_v32 = vld [vmem:[%s6110_s8 + $0x170] ss:$12 sps:$4 sm:$0xff]   ;;  %v4063_v1 = vld [vmem:[%s6110_s8 + $0x168] ss:$12 sps:$4 sm:$0xff]  }
 0x1f9   :  { %2377 = vmatprep.subr.bf16.mxu0 %v4041_v48  ;;  %v1362_v3 = vadd.f32 %v1356_v24, %v5420_v47  ;;  %v1386_v59 = vmul.f32 %v5420_v47, %v5420_v47  ;;  %3823 = vmatprep.mubr.f32.mxu1 %v1391_v23  ;;  %v4068_v42 = vld [vmem:[%s6110_s8 + $0x154] ss:$12 sps:$4 sm:$0xff]   ;;  %v4082_v48 = vld [vmem:[%s6110_s8 + $0xb0] ss:$12 sps:$4 sm:$0xff]   ;;  %v5494_v24 = vpack.c.bf16 %v5280_v31, %v5256_v7  ;;  %v4087_v31 = vld [vmem:[%s6110_s8 + $0x98] ss:$12 sps:$4 sm:$0xff]  }
 0x1fa   :  { %2439 = vmatpush1.bf16.msra.mxu1 %v4036_v51  ;;  %v4086_v51 = vld [vmem:[%s6110_s8 + $0x158] ss:$12 sps:$4 sm:$0xff]   ;;  %v4066_v54 = vld [vmem:[%s6110_s8 + $0x150] ss:$12 sps:$4 sm:$0xff]   ;;  %v3314_v23 = vmul.f32 -0.999995, %v5182_v14 }
 0x1fb   :  { %3783 = vmatmul.mubr.f32.gmra.mxu0 %v1362_v3  ;;  %2440 = vmatprep.subr.bf16.mxu1 %v4044_v34  ;;  %v1392_v29 = vadd.f32 %v1386_v59, %v1380_v6  ;;  %v3313_v34 = vmul.f32 -0.999995, %v5175_v49  ;;  %v4071_v7 = vld [vmem:[%s6110_s8 + $0x13c] ss:$12 sps:$4 sm:$0xff]   ;;  %v4091_v6 = vld [vmem:[%s6110_s8 + $0x140] ss:$12 sps:$4 sm:$0xff]  }
 0x1fc   :  { %2378 = vmatpush1.bf16.msra.mxu0 %v4039_v11  ;;  %2401 = vmatprep.mubr.bf16.mxu0 %v5431_v62  ;;  %v4069_v49 = vld [vmem:[%s6110_s8 + $0x138] ss:$12 sps:$4 sm:$0xff]   ;;  %v4092_v59 = vld [vmem:[%s6110_s8 + $0x80] ss:$12 sps:$4 sm:$0xff]  }
 0x1fd   :  { %3824 = vmatmul.mubr.f32.gmra.mxu1 %v1392_v29  ;;  %2379 = vmatprep.subr.bf16.mxu0 %v4047_v28  ;;  %v1024_v11 = vmul.f32 1.442695, %v3313_v34  ;;  %v4074_v3 = vld [vmem:[%s6110_s8 + $0x124] ss:$12 sps:$4 sm:$0xff]   ;;  %v5526_v28 = vpack.c.bf16 %v5334_v4, %v5302_v36  ;;  %v4072_v14 = vld [vmem:[%s6110_s8 + $0x120] ss:$12 sps:$4 sm:$0xff]  }
 0x1fe   :  { %2441 = vmatpush1.bf16.msra.mxu1 %v4042_v17  ;;  %2464 = vmatprep.mubr.bf16.mxu1 %v4324_v9  ;;  %v4095_v17 = vld [vmem:[%s6110_s8 + $0x128] ss:$12 sps:$4 sm:$0xff]   ;;  %v1026_v29 = vmul.f32 1.442695, %v3314_v23  ;;  %v4077_v36 = vld [vmem:[%s6110_s8 + $0x10c] ss:$12 sps:$4 sm:$0xff]   ;;  %v1057_v23 = vpop.permute.xlu0 %1056 }
 0x1ff   :  { %2442 = vmatprep.subr.bf16.mxu1 %v4050_v8  ;;  %4189 = vpow2.f32 %v1024_v11  ;;  %v3315_v8 = vmul.f32 -0.999995, %v5189_v2  ;;  %v4096_v4 = vld [vmem:[%s6110_s8 + $0x68] ss:$12 sps:$4 sm:$0xff]  }
 0x200   :  { %2380 = vmatpush1.bf16.msra.mxu0 %v4045_v13  ;;  %v4098_v13 = vld [vmem:[%s6110_s8 + $0x110] ss:$12 sps:$4 sm:$0xff]   ;;  %v4075_v2 = vld [vmem:[%s6110_s8 + $0x108] ss:$12 sps:$4 sm:$0xff]   ;;  %4191 = vpow2.f32 %v1026_v29  ;;  %v1067_v29 = vpop.permute.xlu1 %1066 }
 0x201   :  { %2381 = vmatprep.subr.bf16.mxu0 %v4053_v5  ;;  %v1028_v5 = vmul.f32 1.442695, %v3315_v8  ;;  %v4112_v34 = vld [vmem:[%s6110_s8 + $0x8] ss:$12 sps:$4 sm:$0xff]   ;;  %v4105_v8 = vld [vmem:[%s6110_s8 + $0x200] ss:$12 sps:$4 sm:$0xff]  }
 0x202   :  { %2443 = vmatpush1.bf16.msra.mxu1 %v4048_v52  ;;  %v3316_v52 = vmul.f32 -0.999995, %v5199_v45  ;;  %v4078_v45 = vld [vmem:[%s6110_s8 + $0xf0] ss:$12 sps:$4 sm:$0xff]  }
 0x203   :  { %2444 = vmatprep.subr.bf16.mxu1 %v4056_v16  ;;  %v4099_v16 = vld [vmem:[%s6110_s8 + $0x50] ss:$12 sps:$4 sm:$0xff]   ;;  %4193 = vpow2.f32 %v1028_v5  ;;  %v4108_v5 = vld [vmem:[%s6110_s8 + $0x1e8] ss:$12 sps:$4 sm:$0xff]  }
 0x204   :  { %2382 = vmatpush1.bf16.msra.mxu0 %v4051_v26  ;;  %v5558_v26 = vpack.c.bf16 %v5397_v27, %v5365_v39  ;;  %v4085_v39 = vld [vmem:[%s6110_s8 + $0xdc] ss:$12 sps:$4 sm:$0xff]   ;;  %v3317_v27 = vmul.f32 -0.999995, %v5211_v38  ;;  %v4090_v38 = vld [vmem:[%s6110_s8 + $0xc4] ss:$12 sps:$4 sm:$0xff]  }
 0x205   :  { %2383 = vmatprep.subr.bf16.mxu0 %v4059_v21  ;;  %v4103_v21 = vld [vmem:[%s6110_s8 + $0xf8] ss:$12 sps:$4 sm:$0xff]  }
 0x206   :  { %2445 = vmatpush1.bf16.msra.mxu1 %v4054_v20  ;;  %v1030_v20 = vmul.f32 1.442695, %v3316_v52 }
 0x207   :  { %2446 = vmatprep.subr.bf16.mxu1 %v4062_v15  ;;  %v4104_v15 = vld [vmem:[%s6110_s8 + $0x38] ss:$12 sps:$4 sm:$0xff]  }
 0x208   :  { %2384 = vmatpush1.bf16.msra.mxu0 %v4057_v44  ;;  %v4106_v44 = vld [vmem:[%s6110_s8 + $0xe0] ss:$12 sps:$4 sm:$0xff]   ;;  %4195 = vpow2.f32 %v1030_v20  ;;  %v4110_v20 = vld [vmem:[%s6109_s5 + $0x38] ss:$12 sps:$4 sm:$0xff]  }
 0x209   :  { %2385 = vmatprep.subr.bf16.mxu0 %v4065_v10  ;;  %v4083_v10 = vld [vmem:[%s6110_s8 + $0xd8] ss:$12 sps:$4 sm:$0xff]  }
 0x20a   :  { %2447 = vmatpush1.bf16.msra.mxu1 %v4060_v61 }
 0x20b   :  { %3550 = vmatprep.subr.bf16.mxu1 %v4081_v32  ;;  %v1032_v32 = vmul.f32 1.442695, %v3317_v27 }
 0x20c   :  { %2386 = vmatpush2.bf16.msra.mxu0 %v4063_v1  ;;  %v4190_v61 = vpop.eup %4189  ;;  %v4107_v1 = vld [vmem:[%s6110_s8 + $0x20] ss:$12 sps:$4 sm:$0xff]  }
 0x20d   :  { %2465 = vmatmul.mubr.bf16.vlgmr.msra.gmra.mxu1 %v5494_v24  ;;  %2387 = vmatprep.subr.bf16.mxu0 %v4068_v42  ;;  %v4111_v42 = vld [vmem:[%s6110_s8 + $0xc8] ss:$12 sps:$4 sm:$0xff]   ;;  %4197 = vpow2.f32 %v1032_v32  ;;  %v4114_v32 = vld [vmem:[%s6110_s8 + $0x1b8] ss:$12 sps:$4 sm:$0xff]  }
 0x20e   :  { %2474 = vmatprep.mubr.bf16.mxu1 %v4324_v9  ;;  %3551 = vmatpush3.bf16.msra.mxu1 %v4082_v48  ;;  %v4088_v48 = vld [vmem:[%s6110_s8 + $0xc0] ss:$12 sps:$4 sm:$0xff]  }
 0x20f   :  { %3552 = vmatprep.subr.bf16.mxu1 %v4086_v51  ;;  %v1036_v51 = vadd.f32 1.0, %v4190_v61 }
 0x210   :  { %2388 = vmatpush2.bf16.msra.mxu0 %v4066_v54  ;;  %v4192_v54 = vpop.eup %4191 }
 0x211   :  { %2389 = vmatprep.subr.bf16.mxu0 %v4071_v7  ;;  %v4094_v7 = vld [vmem:[%s6109_s5 + $0x8] ss:$12 sps:$4 sm:$0xff]   ;;  %4199 = vrcp.f32 %v1036_v51  ;;  %v4194_v11 = vpop.eup %4193 }
 0x212   :  { %3553 = vmatpush3.bf16.msra.mxu1 %v4087_v31  ;;  %v4097_v31 = vld [vmem:[%s6110_s8 + $0x230] ss:$12 sps:$4 sm:$0xff]  }
 0x213   :  { %3554 = vmatprep.subr.bf16.mxu1 %v4091_v6  ;;  %v4101_v6 = vld [vmem:[%s6108_s6 + $0x20] ss:$12 sps:$4 sm:$0xff]  }
 0x214   :  { %2390 = vmatpush2.bf16.msra.mxu0 %v4069_v49  ;;  %v1037_v49 = vadd.f32 1.0, %v4192_v54  ;;  %v4115_v54 = vld [vmem:[%s6110_s8 + $0x1a0] ss:$12 sps:$4 sm:$0xff]  }
 0x215   :  { %2475 = vmatmul.mubr.bf16.gmra.mxu1 %v5526_v28  ;;  %2391 = vmatprep.subr.bf16.mxu0 %v4074_v3  ;;  %v4100_v3 = vld [vmem:[%s6110_s8 + $0x218] ss:$12 sps:$4 sm:$0xff]  }
 0x216   :  { %2484 = vmatprep.mubr.bf16.mxu1 %v4324_v9  ;;  %3555 = vmatpush3.bf16.msra.mxu1 %v4092_v59  ;;  %v4080_v9 = vld [vmem:[%s6110_s8 + $0xf4] ss:$12 sps:$4 sm:$0xff]   ;;  %v1038_v59 = vadd.f32 1.0, %v4194_v11 }
 0x217   :  { %3556 = vmatprep.subr.bf16.mxu1 %v4095_v17  ;;  %v4196_v17 = vpop.eup %4195 }
 0x218   :  { %2392 = vmatpush2.bf16.msra.mxu0 %v4072_v14  ;;  %v4102_v14 = vld [vmem:[%s6109_s5 + $0x20] ss:$12 sps:$4 sm:$0xff]  }
 0x219   :  { %2393 = vmatprep.subr.bf16.mxu0 %v4077_v36  ;;  %v4109_v36 = vld [vmem:[%s6108_s6 + $0x38] ss:$12 sps:$4 sm:$0xff]  }
 0x21a   :  { %3557 = vmatpush3.bf16.msra.mxu1 %v4096_v4  ;;  %v1039_v4 = vadd.f32 1.0, %v4196_v17 }
 0x21b   :  { %3558 = vmatprep.subr.bf16.mxu1 %v4098_v13  ;;  %v1062_v13 = vpop.permute.xlu0 %1061 }
 0x21c   :  { %2394 = vmatpush2.bf16.msra.mxu0 %v4075_v2  ;;  %v4198_v2 = vpop.eup %4197 }
 0x21d   :  { %2485 = vmatmul.mubr.bf16.gmra.mxu1 %v5558_v26  ;;  %2395 = vmatprep.subr.bf16.mxu0 %v4080_v9  ;;  %v1040_v9 = vadd.f32 1.0, %v4198_v2 }
 0x21e   :  { %3559 = vmatpush3.bf16.msra.mxu1 %v4099_v16  ;;  %2527 = vmatprep.mubr.bf16.mxu1 %v5431_v62  ;;  %v3318_v62 = vmul.f32 -0.999995, %v5230_v40  ;;  %v4200_v52 = vpop.eup %4199  ;;  %v1072_v16 = vpop.permute.xlu1 %1071 }
 0x21f   :  { %3560 = vmatprep.subr.bf16.mxu1 %v4103_v21  ;;  %v1077_v21 = vpop.permute.xlu0 %1076  ;;  %v1084_v27 = vmul.f32 %v4200_v52, %v1057_v23 }
 0x220   :  { %2396 = vmatpush2.bf16.msra.mxu0 %v4078_v45  ;;  %v1034_v40 = vmul.f32 1.442695, %v3318_v62 }
 0x221   :  { %2397 = vmatprep.subr.bf16.mxu0 %v4085_v39  ;;  %v4113_v39 = vld [vmem:[%s6110_s8 + $0x1d0] ss:$12 sps:$4 sm:$0xff]  }
 0x222   :  { %3561 = vmatpush3.bf16.msra.mxu1 %v4104_v15  ;;  %4201 = vpow2.f32 %v1034_v40 }
 0x223   :  { %3562 = vmatprep.subr.bf16.mxu1 %v4106_v44  ;;  %4203 = vrcp.f32 %v1037_v49  ;;  %v4116_v49 = vld [vmem:[%s6110_s8 + $0x188] ss:$12 sps:$4 sm:$0xff]  }
 0x224   :  { %2398 = vmatpush2.bf16.msra.mxu0 %v4083_v10  ;;  %4205 = vrcp.f32 %v1038_v59  ;;  %v1082_v10 = vpop.permute.xlu1 %1081 }
 0x225   :  { %2399 = vmatprep.subr.bf16.mxu0 %v4090_v38  ;;  %4207 = vrcp.f32 %v1039_v4 }
 0x226   :  { %3563 = vmatpush3.bf16.msra.mxu1 %v4107_v1  ;;  %4209 = vrcp.f32 %v1040_v9 }
 0x227   :  { %3564 = vmatprep.subr.bf16.mxu1 %v4111_v42 }
 0x228   :  { %2400 = vmatpush2.bf16.msra.mxu0 %v4088_v48 }
 0x229   :  { %3826 = vmatprep.subr.bf16.mxu0 %v4316_v0 }
 0x22a   :  { %3565 = vmatpush3.bf16.msra.mxu1 %v4112_v34 }
 0x22b   :  { %2402 = vmatmul.mubr.bf16.vlgmr.msra.gmra.mxu0 %v4094_v7 }
 0x22c   :  { %3827 = vmatpush3.bf16.msra.mxu0 %v4097_v31  ;;  %2411 = vmatprep.mubr.bf16.mxu0 %v4101_v6 }
 0x22d   :  { %3828 = vmatprep.subr.bf16.mxu0 %v4316_v0  ;;  %2528 = vmatmul.mubr.bf16.vlgmr.msra.gmra.mxu1 %v4094_v7 }
 0x22e   :  { %2535 = vmatprep.mubr.bf16.mxu1 %v4101_v6 }
 0x22f   :  { %v4202_v45 = vpop.eup %4201 }
 0x230   :  { %3829 = vmatpush3.bf16.msra.mxu0 %v4100_v3  ;;  %v4204_v15 = vpop.eup %4203  ;;  %v1041_v44 = vadd.f32 1.0, %v4202_v45  ;;  %v4121_v45 = vld [vmem:[%s6113_s10 + $0x68] sm:$0xff]  }
 0x231   :  { %3830 = vmatprep.subr.bf16.mxu0 %v4316_v0  ;;  %v1085_v62 = vmul.f32 %v4204_v15, %v1062_v13  ;;  %v4206_v42 = vpop.eup %4205  ;;  %v4126_v15 = vld [vmem:[%s6113_s10 + $0x18] sm:$0xff]  }
 0x232   :  { %4211 = vrcp.f32 %v1041_v44  ;;  %v1086_v40 = vmul.f32 %v4206_v42, %v1067_v29  ;;  %v4208_v7 = vpop.eup %4207  ;;  %v4127_v44 = vld [vmem:[%s6113_s10 + $0x50] sm:$0xff]  }
 0x233   :  { %2412 = vmatmul.mubr.bf16.gmra.mxu0 %v4102_v14  ;;  %v1087_v11 = vmul.f32 %v4208_v7, %v1072_v16  ;;  %v4210_v59 = vpop.eup %4209  ;;  %v4118_v16 = vld [vmem:[%s6113_s10 + $0x38] sm:$0xff]   ;;  %v4134_v42 = vld [vmem:[%s6113_s10 + $0xb0] sm:$0xff]   ;;  %v4140_v7 = vld [vmem:[%s6113_s10 + $0x80] sm:$0xff]  }
 0x234   :  { %3831 = vmatpush3.bf16.msra.mxu0 %v4105_v8  ;;  %2421 = vmatprep.mubr.bf16.mxu0 %v4109_v36  ;;  %v1088_v29 = vmul.f32 %v4210_v59, %v1077_v21  ;;  %v4120_v21 = vld [vmem:[%s6113_s10 + $0x30] sm:$0xff]  }
 0x235   :  { %3832 = vmatprep.subr.bf16.mxu0 %v4316_v0  ;;  %2536 = vmatmul.mubr.bf16.gmra.mxu1 %v4102_v14 }
 0x236   :  { %2543 = vmatprep.mubr.bf16.mxu1 %v4109_v36 }
 0x238   :  { %3833 = vmatpush3.bf16.msra.mxu0 %v4108_v5 }
 0x239   :  { %3834 = vmatprep.subr.bf16.mxu0 %v4316_v0 }
 0x23a   :  { %v1097_v38 = vpop.permute.xlu0 %1096 }
 0x23b   :  { %2422 = vmatmul.mubr.bf16.gmra.mxu0 %v4110_v20  ;;  %v1114_v61 = vmul.f32 %v1097_v38, %v1084_v27  ;;  %v4125_v27 = vld [vmem:[%s6113_s10 + $0x58] sm:$0xff]   ;;  %v4129_v38 = vld [vmem:[%s6113_s10 + $0x48] sm:$0xff]  }
 0x23c   :  { %3835 = vmatpush3.bf16.msra.mxu0 %v4113_v39  ;;  %3842 = vmatprep.mubr.msk.bf16.mxu0 %vm4317_vm0, %v4316_v0  ;;  %v4124_v39 = vld [vmem:[%s6113_s10 + $0x20] sm:$0xff]  }
 0x23d   :  { %v3456_v1 = vpack.c.bf16 %v1114_v61, %v1114_v61  ;;  %3836 = vmatprep.subr.bf16.mxu0 %v4316_v0  ;;  %2544 = vmatmul.mubr.bf16.gmra.mxu1 %v4110_v20  ;;  %v4123_v20 = vld [vmem:[%s6113_s10 + $0x60] sm:$0xff]   ;;  %v4130_v61 = vld [vmem:[%s6113_s10 + $0x8] sm:$0xff]  }
 0x23e   :  { %v1099_v48 = vpop.permute.xlu1 %1098 }
 0x23f   :  { %1145 = vst.msk [vmem:[%s6112_s14] sm:$0xf] %vm1144_vm13, %v3456_v1  ;;  %v1115_v51 = vmul.f32 %v1099_v48, %v1085_v62  ;;  %v4212_v8 = vpop.eup %4211  ;;  %v4132_v62 = vld [vmem:[%s6113_s10 + $0xb8] sm:$0xff]   ;;  %v4133_v1 = vld [vmem:[%s6113_s10] sm:$0xff]   ;;  %v4135_v48 = vld [vmem:[%s6113_s10 + $0xa8] sm:$0xff]  }
 0x240   :  { %3837 = vmatpush3.bf16.msra.mxu0 %v4114_v32  ;;  %v1089_v13 = vmul.f32 %v4212_v8, %v1082_v10  ;;  %v4128_v10 = vld [vmem:[%s6113_s10 + $0x10] sm:$0xff]   ;;  %v4131_v32 = vld [vmem:[%s6113_s10 + $0x40] sm:$0xff]  }
 0x241   :  { %v3457_v34 = vpack.c.bf16 %v1115_v51, %v1115_v51  ;;  %3838 = vmatprep.subr.bf16.mxu0 %v4316_v0  ;;  %v4136_v51 = vld [vmem:[%s6113_s10 + $0xa0] sm:$0xff]  }
 0x242   :  { %v1101_v31 = vpop.permute.xlu0 %1100 }
 0x243   :  { %1146 = vst.msk [vmem:[%s6112_s14 + $0x4] sm:$0xf] %vm1144_vm13, %v3457_v34  ;;  %v1116_v6 = vmul.f32 %v1101_v31, %v1086_v40  ;;  %v4138_v40 = vld [vmem:[%s6113_s10 + $0x90] sm:$0xff]   ;;  %v4139_v34 = vld [vmem:[%s6113_s10 + $0x88] sm:$0xff]  }
 0x244   :  { %3839 = vmatpush3.bf16.msra.mxu0 %v4115_v54  ;;  %v4137_v54 = vld [vmem:[%s6113_s10 + $0x98] sm:$0xff]  }
 0x245   :  { %v3458_v23 = vpack.c.bf16 %v1116_v6, %v1116_v6  ;;  %3840 = vmatprep.subr.bf16.mxu0 %v4316_v0 }
 0x246   :  { %v1103_v3 = vpop.permute.xlu1 %1102 }
 0x247   :  { %1147 = vst.msk [vmem:[%s6112_s14 + $0x8] sm:$0xf] %vm1144_vm13, %v3458_v23  ;;  %v1117_v17 = vmul.f32 %v1103_v3, %v1087_v11 }
 0x248   :  { %3841 = vmatpush3.bf16.msra.mxu0 %v4116_v49 }
 0x249   :  { %v3459_v14 = vpack.c.bf16 %v1117_v17, %v1117_v17  ;;  %3854 = vmatprep.subr.bf16.mxu0 %v4316_v0 }
 0x24b   :  { %1148 = vst.msk [vmem:[%s6112_s14 + $0xc] sm:$0xf] %vm1144_vm13, %v3459_v14  ;;  %3843 = vmatmul.mubr.bf16.vlgmr.msra.gmra.mxu0 %v5494_v24  ;;  %v1105_v36 = vpop.permute.xlu0 %1104  ;;  %v4117_v24 = vld [vmem:[%s6113_s10 + $0x78] sm:$0xff]  }
 0x24c   :  { %v1118_v4 = vmul.f32 %v1105_v36, %v1088_v29  ;;  %3846 = vmatprep.mubr.msk.bf16.mxu0 %vm4317_vm0, %v4316_v0  ;;  %3595 = vmatprep.subr.bf16.mxu1 %v4117_v24 }
 0x24d   :  { %3596 = vmatpush3.bf16.msra.mxu1 %v4118_v16  ;;  %3855 = vmatpush3.bf16.msra.mxu0 %v4132_v62 }
 0x24e   :  { %v3460_v2 = vpack.c.bf16 %v1118_v4, %v1118_v4  ;;  %3856 = vmatprep.subr.bf16.mxu0 %v4316_v0 }
 0x24f   :  { %v1107_v5 = vpop.permute.xlu1 %1106 }
 0x250   :  { %1149 = vst.msk [vmem:[%s6112_s14 + $0x10] sm:$0xf] %vm1144_vm13, %v3460_v2  ;;  %v1119_v52 = vmul.f32 %v1107_v5, %v1089_v13 }
 0x251   :  { %3857 = vmatpush3.bf16.msra.mxu0 %v4134_v42  ;;  %v1653_v42 = vsub.s32 3, %v4530_v30 }
 0x252   :  { %v3461_v9 = vpack.c.bf16 %v1119_v52, %v1119_v52  ;;  %3858 = vmatprep.subr.bf16.mxu0 %v4316_v0 }
 0x253   :  { %3847 = vmatmul.mubr.bf16.gmra.mxu0 %v5526_v28  ;;  %v4119_v28 = vld [vmem:[%s6113_s10 + $0x70] sm:$0xff]  }
 0x254   :  { %1150 = vst.msk [vmem:[%s6112_s14 + $0x14] sm:$0xf] %vm1144_vm13, %v3461_v9  ;;  %3850 = vmatprep.mubr.msk.bf16.mxu0 %vm4317_vm0, %v4316_v0  ;;  %3597 = vmatprep.subr.bf16.mxu1 %v4119_v28 }
 0x255   :  { %3598 = vmatpush3.bf16.msra.mxu1 %v4120_v21  ;;  %3859 = vmatpush3.bf16.msra.mxu0 %v4135_v48 }
 0x256   :  { %3599 = vmatprep.subr.bf16.mxu1 %v4121_v45  ;;  %3860 = vmatprep.subr.bf16.mxu0 %v4316_v0 }
 0x259   :  { %3861 = vmatpush3.bf16.msra.mxu0 %v4136_v51 }
 0x25a   :  { %3862 = vmatprep.subr.bf16.mxu0 %v4316_v0 }
 0x25b   :  { %3851 = vmatmul.mubr.bf16.gmra.mxu0 %v5558_v26  ;;  %v4122_v26 = vld [vmem:[%s6113_s10 + $0x28] sm:$0xff]  }
 0x25c   :  { %3870 = vmatprep.mubr.msk.bf16.mxu0 %vm4317_vm0, %v4316_v0  ;;  %3600 = vmatpush3.bf16.msra.mxu1 %v4122_v26 }
 0x25d   :  { %3601 = vmatprep.subr.bf16.mxu1 %v4123_v20  ;;  %3863 = vmatpush3.bf16.msra.mxu0 %v4137_v54 }
 0x25e   :  { %3864 = vmatprep.subr.bf16.mxu0 %v4316_v0 }
 0x260   :  { %3602 = vmatpush3.bf16.msra.mxu1 %v4124_v39  ;;  %v5780_v39 = vld [vmem:[%s6111_s11] sm:$0xff] }
 0x261   :  { %3603 = vmatprep.subr.bf16.mxu1 %v4125_v27  ;;  %3865 = vmatpush3.bf16.msra.mxu0 %v4138_v40  ;;  %v5801_v40 = vrot.slane %v5780_v39, %v5169_v58 }
 0x262   :  { %3866 = vmatprep.subr.bf16.mxu0 %v4316_v0 }
 0x264   :  { %3604 = vmatpush3.bf16.msra.mxu1 %v4126_v15 }
 0x265   :  { %3605 = vmatprep.subr.bf16.mxu1 %v4127_v44  ;;  %3867 = vmatpush3.bf16.msra.mxu0 %v4139_v34  ;;  %v1721_v34 = vsub.s32 4, %v4530_v30 }
 0x266   :  { %3868 = vmatprep.subr.bf16.mxu0 %v4316_v0 }
 0x268   :  { %3606 = vmatpush3.bf16.msra.mxu1 %v4128_v10 }
 0x269   :  { %3607 = vmatprep.subr.bf16.mxu1 %v4129_v38  ;;  %3869 = vmatpush3.bf16.msra.mxu0 %v4140_v7 }
 0x26c   :  { %3608 = vmatpush3.bf16.msra.mxu1 %v4130_v61 }
 0x26d   :  { %3609 = vmatprep.subr.bf16.mxu1 %v4131_v32  ;;  %v5790_v32 = vrot.slane %v5780_v39, %v4554_v19 }
 0x270   :  { %3610 = vmatpush3.bf16.msra.mxu1 %v4133_v1 }
 0x2ab   :  { %v5759_v31 = vpop.f32.mrf.mxu0 }
 0x2ac   :  { %v1600_v6 = vmul.f32 %v5759_v31, %v5759_v31  ;;  %v1630_v62 = vsub.f32 %v5239_v56, %v5759_v31  ;;  %v1698_v1 = vsub.f32 %v5241_v12, %v5759_v31 }
 0x2ad   :  { %v5763_v49 = vpop.f32.mrf.mxu0  ;;  %v3819_v11 = vpop.f32.mrf.mxu1 }
 0x2ae   :  { %v1606_v23 = vsub.f32 %v3819_v11, %v1600_v6  ;;  %v1599_v59 = vmul.f32 %v5763_v49, %v5763_v49  ;;  %v1629_v56 = vsub.f32 %v5226_v33, %v5763_v49  ;;  %v1697_v12 = vsub.f32 %v5228_v25, %v5763_v49 }
 0x2af   :  { %v1570_v3 = vpop.f32.mrf.mxu1  ;;  %v5819_v33 = vrot.slane %v5780_v39, %v1721_v34 }
 0x2b0   :  { %v1612_v17 = vmax.f32 %v1606_v23, 0.0  ;;  %v1605_v14 = vsub.f32 %v1570_v3, %v1599_v59  ;;  %v5813_v59 = vrot.slane %v5780_v39, %v1653_v42 }
 0x2b2   :  { %v1618_v29 = vadd.f32 1e-05, %v1612_v17  ;;  %v1611_v8 = vmax.f32 %v1605_v14, 0.0 }
 0x2b3   :  { %v5767_v36 = vpop.f32.mrf.mxu0 }
 0x2b4   :  { %4213 = vrsqrt.f32 %v1618_v29  ;;  %v1617_v4 = vadd.f32 1e-05, %v1611_v8  ;;  %v1602_v5 = vmul.f32 %v5767_v36, %v5767_v36 }
 0x2b5   :  { %v5769_v13 = vpop.f32.mrf.mxu0  ;;  %v3822_v2 = vpop.f32.mrf.mxu1 }
 0x2b6   :  { %v1601_v52 = vmul.f32 %v5769_v13, %v5769_v13  ;;  %4215 = vrsqrt.f32 %v1617_v4  ;;  %v1608_v9 = vsub.f32 %v3822_v2, %v1602_v5  ;;  %v1632_v4 = vsub.f32 %v5295_v37, %v5767_v36 }
 0x2b7   :  { %v1580_v24 = vpop.f32.mrf.mxu1  ;;  %v1700_v5 = vsub.f32 %v5297_v57, %v5767_v36 }
 0x2b8   :  { %v1607_v16 = vsub.f32 %v1580_v24, %v1601_v52  ;;  %v1614_v28 = vmax.f32 %v1608_v9, 0.0  ;;  %v1631_v52 = vsub.f32 %v5282_v43, %v5769_v13  ;;  %v1699_v9 = vsub.f32 %v5286_v18, %v5769_v13 }
 0x2ba   :  { %v1613_v21 = vmax.f32 %v1607_v16, 0.0  ;;  %v1620_v45 = vadd.f32 1e-05, %v1614_v28 }
 0x2bb   :  { %v5775_v26 = vpop.f32.mrf.mxu0 }
 0x2bc   :  { %v1619_v20 = vadd.f32 1e-05, %v1613_v21  ;;  %4217 = vrsqrt.f32 %v1620_v45  ;;  %v1604_v44 = vmul.f32 %v5775_v26, %v5775_v26  ;;  %v1702_v34 = vsub.f32 %v5370_v35, %v5775_v26 }
 0x2bd   :  { %v5782_v27 = vpop.f32.mrf.mxu0  ;;  %v3825_v15 = vpop.f32.mrf.mxu1 }
 0x2be   :  { %4219 = vrsqrt.f32 %v1619_v20  ;;  %v1610_v10 = vsub.f32 %v3825_v15, %v1604_v44  ;;  %v1603_v61 = vmul.f32 %v5782_v27, %v5782_v27 }
 0x2bf   :  { %v1590_v38 = vpop.f32.mrf.mxu1 }
 0x2c0   :  { %v1616_v51 = vmax.f32 %v1610_v10, 0.0  ;;  %v1609_v54 = vsub.f32 %v1590_v38, %v1603_v61 }
 0x2c1   :  { %v5797_v48 = vpop.eup %4213 }
 0x2c2   :  { %v1636_v7 = vmul.f32 %v5797_v48, %v1630_v62  ;;  %v1704_v6 = vmul.f32 %v5797_v48, %v1698_v1  ;;  %v1622_v11 = vadd.f32 1e-05, %v1616_v51  ;;  %v1615_v23 = vmax.f32 %v1609_v54, 0.0 }
 0x2c3   :  { %v5810_v3 = vpop.eup %4215  ;;  %v1634_v1 = vsub.f32 %v5360_v50, %v5775_v26 }
 0x2c4   :  { %v1646_v17 = vmul.f32 %v5790_v32, %v1636_v7  ;;  %4221 = vrsqrt.f32 %v1622_v11  ;;  %v1621_v14 = vadd.f32 1e-05, %v1615_v23  ;;  %v1635_v29 = vmul.f32 %v5810_v3, %v1629_v56 }
 0x2c5   :  { %v1703_v8 = vmul.f32 %v5810_v3, %v1697_v12  ;;  %v1714_v25 = vmul.f32 %v5801_v40, %v1704_v6  ;;  %v1633_v56 = vsub.f32 %v5343_v46, %v5782_v27  ;;  %v1701_v12 = vsub.f32 %v5345_v41, %v5782_v27 }
 0x2c6   :  { %4223 = vrsqrt.f32 %v1621_v14  ;;  %v1645_v2 = vmul.f32 %v5790_v32, %v1635_v29  ;;  %v1656_v16 = vadd.f32 %v5813_v59, %v1646_v17 }
 0x2c7   :  { %v1713_v24 = vmul.f32 %v5801_v40, %v1703_v8  ;;  %v1724_v37 = vadd.f32 %v5819_v33, %v1714_v25 }
 0x2c8   :  { %v1655_v45 = vadd.f32 %v5813_v59, %v1645_v2  ;;  %v3331_v10 = vmul.f32 -1.442695, %v1656_v16 }
 0x2c9   :  { %v5833_v28 = vpop.eup %4217  ;;  %v1723_v20 = vadd.f32 %v5819_v33, %v1713_v24  ;;  %v3337_v61 = vmul.f32 -1.442695, %v1724_v37 }
 0x2ca   :  { %v1638_v57 = vmul.f32 %v5833_v28, %v1632_v4  ;;  %v1706_v15 = vmul.f32 %v5833_v28, %v1700_v5  ;;  %v3330_v51 = vmul.f32 -1.442695, %v1655_v45  ;;  %4225 = vpow2.f32 %v3331_v10 }
 0x2cb   :  { %v5836_v21 = vpop.eup %4219  ;;  %v3336_v7 = vmul.f32 -1.442695, %v1723_v20  ;;  %4227 = vpow2.f32 %v3337_v61 }
 0x2cc   :  { %v1637_v43 = vmul.f32 %v5836_v21, %v1631_v52  ;;  %v1705_v18 = vmul.f32 %v5836_v21, %v1699_v9  ;;  %v1648_v38 = vmul.f32 %v5790_v32, %v1638_v57  ;;  %v1716_v6 = vmul.f32 %v5801_v40, %v1706_v15 }
 0x2cd   :  { %v5844_v44 = vpop.f32.mrf.mxu1  ;;  %4229 = vpow2.f32 %v3330_v51  ;;  %v1779_v57 = vsub.s32 2, %v4530_v30 }
 0x2ce   :  { %v1715_v62 = vmul.f32 %v5801_v40, %v1705_v18  ;;  %v1647_v54 = vmul.f32 %v5790_v32, %v1637_v43  ;;  %v1658_v50 = vadd.f32 %v5813_v59, %v1648_v38  ;;  %4231 = vpow2.f32 %v3336_v7 }
 0x2cf   :  { %v5850_v42 = vpop.f32.mrf.mxu1  ;;  %v1726_v41 = vadd.f32 %v5819_v33, %v1716_v6  ;;  %v1765_v18 = vsub.f32 %v5277_v55, %v5763_v49  ;;  %v1766_v38 = vsub.f32 %v5299_v22, %v5759_v31  ;;  %v5900_v55 = vrot.slane %v5780_v39, %v1779_v57 }
 0x2d0   :  { %v1725_v17 = vadd.f32 %v5819_v33, %v1715_v62  ;;  %v1657_v14 = vadd.f32 %v5813_v59, %v1647_v54  ;;  %v3333_v4 = vmul.f32 -1.442695, %v1658_v50  ;;  %v1789_v22 = vsub.s32 5, %v4530_v30 }
 0x2d1   :  { %v5860_v11 = vpop.f32.mrf.mxu1  ;;  %v5863_v23 = vpop.eup %4221  ;;  %v3339_v20 = vmul.f32 -1.442695, %v1726_v41  ;;  %v1772_v31 = vmul.f32 %v5797_v48, %v1766_v38  ;;  %v1767_v48 = vsub.f32 %v5331_v60, %v5769_v13 }
 0x2d2   :  { %v1640_v46 = vmul.f32 %v5863_v23, %v1634_v1  ;;  %v1708_v8 = vmul.f32 %v5863_v23, %v1702_v34  ;;  %v3338_v9 = vmul.f32 -1.442695, %v1725_v17  ;;  %v3332_v16 = vmul.f32 -1.442695, %v1657_v14 }
 0x2d3   :  { %v5866_v35 = vpop.f32.mrf.mxu1  ;;  %v5870_v29 = vpop.eup %4223  ;;  %4233 = vpow2.f32 %v3333_v4  ;;  %v1768_v17 = vsub.f32 %v5362_v63, %v5767_v36 }
 0x2d4   :  { %v1639_v2 = vmul.f32 %v5870_v29, %v1633_v56  ;;  %v1707_v5 = vmul.f32 %v5870_v29, %v1701_v12  ;;  %v1650_v52 = vmul.f32 %v5790_v32, %v1640_v46  ;;  %v1718_v43 = vmul.f32 %v5801_v40, %v1708_v8 }
 0x2d5   :  { %v5874_v25 = vpop.f32.mrf.mxu1  ;;  %4235 = vpow2.f32 %v3338_v9  ;;  %v5909_v12 = vrot.slane %v5780_v39, %v1789_v22  ;;  %v1773_v39 = vmul.f32 %v5836_v21, %v1767_v48  ;;  %v1774_v60 = vmul.f32 %v5833_v28, %v1768_v17  ;;  %v5928_v21 = vld [vmem:[%s6114_s9] sm:$0x7] }
 0x2d6   :  { %v1649_v37 = vmul.f32 %v5790_v32, %v1639_v2  ;;  %v1717_v45 = vmul.f32 %v5801_v40, %v1707_v5  ;;  %v1660_v10 = vadd.f32 %v5813_v59, %v1650_v52  ;;  %4237 = vpow2.f32 %v3332_v16 }
 0x2d7   :  { %v5879_v24 = vpop.f32.mrf.mxu1  ;;  %v1771_v40 = vmul.f32 %v5810_v3, %v1765_v18  ;;  %4239 = vpow2.f32 %v3339_v20  ;;  %v1728_v49 = vadd.f32 %v5819_v33, %v1718_v43  ;;  %v4226_v51 = vpop.eup %4225  ;;  %v1783_v9 = vmul.f32 %v5900_v55, %v1773_v39 }
 0x2d8   :  { %v1727_v32 = vadd.f32 %v5819_v33, %v1717_v45  ;;  %v1659_v62 = vadd.f32 %v5813_v59, %v1649_v37  ;;  %v3335_v1 = vmul.f32 -1.442695, %v1660_v10  ;;  %v4228_v34 = vpop.eup %4227  ;;  %v1782_v33 = vmul.f32 %v5900_v55, %v1772_v31 }
 0x2d9   :  { %v5887_v15 = vpop.f32.mrf.mxu1  ;;  %v1781_v3 = vmul.f32 %v5900_v55, %v1771_v40  ;;  %v3341_v56 = vmul.f32 -1.442695, %v1728_v49  ;;  %v1680_v14 = vadd.f32 1.0, %v4226_v51  ;;  %v1748_v41 = vadd.f32 1.0, %v4228_v34 }
 0x2da   :  { %v3340_v54 = vmul.f32 -1.442695, %v1727_v32  ;;  %v3334_v59 = vmul.f32 -1.442695, %v1659_v62  ;;  %v4230_v6 = vpop.eup %4229  ;;  %4241 = vpow2.f32 %v3335_v1  ;;  %v1792_v2 = vadd.f32 %v5909_v12, %v1782_v33 }
 0x2db   :  { %v5893_v61 = vpop.f32.mrf.mxu1  ;;  %v4232_v50 = vpop.eup %4231  ;;  %v1791_v8 = vadd.f32 %v5909_v12, %v1781_v3  ;;  %v1679_v13 = vadd.f32 1.0, %v4230_v6  ;;  %v1784_v28 = vmul.f32 %v5900_v55, %v1774_v60  ;;  %v5933_v43 = vrot.slane %v5928_v21, %v5169_v58 }
 0x2dc   :  { %4243 = vpow2.f32 %v3340_v54  ;;  %v1747_v4 = vadd.f32 1.0, %v4232_v50  ;;  %v3343_v37 = vmul.f32 -1.442695, %v1792_v2  ;;  %v5939_v38 = vrot.slane %v5928_v21, %v4554_v19 }
 0x2dd   :  { %v5905_v7 = vpop.f32.mrf.mxu1  ;;  %4245 = vpow2.f32 %v3334_v59  ;;  %v3342_v52 = vmul.f32 -1.442695, %v1791_v8  ;;  %v1793_v40 = vadd.f32 %v5909_v12, %v1783_v9  ;;  %v1794_v22 = vadd.f32 %v5909_v12, %v1784_v28 }
 0x2de   :  { %4247 = vpow2.f32 %v3341_v56  ;;  %v1769_v31 = vsub.f32 %v5394_v53, %v5782_v27  ;;  %v1770_v19 = vsub.f32 %v5420_v47, %v5775_v26 }
 0x2df   :  { %v5916_v46 = vpop.f32.mrf.mxu1  ;;  %4249 = vrcp.f32 %v1680_v14  ;;  %v3344_v33 = vmul.f32 -1.442695, %v1793_v40  ;;  %v3345_v48 = vmul.f32 -1.442695, %v1794_v22 }
 0x2e0   :  { %v4234_v5 = vpop.eup %4233  ;;  %4251 = vrcp.f32 %v1748_v41  ;;  %v1775_v53 = vmul.f32 %v5870_v29, %v1769_v31  ;;  %v1776_v47 = vmul.f32 %v5863_v23, %v1770_v19 }
 0x2e1   :  { %v5922_v36 = vpop.f32.mrf.mxu1  ;;  %4253 = vrcp.f32 %v1747_v4  ;;  %v1682_v20 = vadd.f32 1.0, %v4234_v5 }
 0x2e2   :  { %v4236_v63 = vpop.eup %4235  ;;  %4255 = vrcp.f32 %v1679_v13  ;;  %v1785_v23 = vmul.f32 %v5900_v55, %v1775_v53 }
 0x2e3   :  { %v4238_v16 = vpop.eup %4237  ;;  %v1749_v18 = vadd.f32 1.0, %v4236_v63  ;;  %v5935_v10 = vpop.f32.mrf.mxu1  ;;  %4257 = vpow2.f32 %v3342_v52 }
 0x2e4   :  { %v4240_v45 = vpop.eup %4239  ;;  %v1681_v62 = vadd.f32 1.0, %v4238_v16  ;;  %4259 = vpow2.f32 %v3343_v37  ;;  %v1795_v40 = vadd.f32 %v5909_v12, %v1785_v23 }
 0x2e5   :  { %v1750_v49 = vadd.f32 1.0, %v4240_v45  ;;  %4261 = vrcp.f32 %v1682_v20 }
 0x2e6   :  { %4263 = vrcp.f32 %v1749_v18 }
 0x2e7   :  { %v4242_v54 = vpop.eup %4241  ;;  %4265 = vrcp.f32 %v1681_v62 }
 0x2e8   :  { %4267 = vrcp.f32 %v1750_v49  ;;  %v1684_v14 = vadd.f32 1.0, %v4242_v54 }
 0x2e9   :  { %v4244_v59 = vpop.eup %4243  ;;  %4269 = vpow2.f32 %v3344_v33 }
 0x2ea   :  { %v4246_v27 = vpop.eup %4245  ;;  %v1751_v4 = vadd.f32 1.0, %v4244_v59  ;;  %4271 = vpow2.f32 %v3345_v48  ;;  %v3346_v48 = vmul.f32 -1.442695, %v1795_v40 }
 0x2eb   :  { %v2403_v32 = vpop.f32.mrf.mxu0  ;;  %v4248_v26 = vpop.eup %4247  ;;  %v1683_v13 = vadd.f32 1.0, %v4246_v27  ;;  %4273 = vrcp.f32 %v1684_v14 }
 0x2ec   :  { %v2404_v3 = vadd.f32 %v2403_v32, %v5939_v38  ;;  %v4250_v2 = vpop.eup %4249  ;;  %v1752_v9 = vadd.f32 1.0, %v4248_v26  ;;  %4275 = vrcp.f32 %v1751_v4 }
 0x2ed   :  { %v2405_v1 = vpop.f32.mrf.mxu0  ;;  %v5945_v51 = vpop.f32.mrf.mxu1  ;;  %4277 = vrcp.f32 %v1683_v13 }
 0x2ee   :  { %v2406_v34 = vadd.f32 %v2405_v1, %v5933_v43  ;;  %v2467_v29 = vadd.f32 %v5844_v44, %v2404_v3  ;;  %v4252_v63 = vpop.eup %4251  ;;  %4279 = vrcp.f32 %v1752_v9 }
 0x2ef   :  { %v2407_v6 = vpop.f32.mrf.mxu0  ;;  %v5951_v56 = vpop.f32.mrf.mxu1  ;;  %4281 = vpow2.f32 %v3346_v48 }
 0x2f0   :  { %v2408_v50 = vadd.f32 %v2407_v6, %v5939_v38  ;;  %v2469_v41 = vadd.f32 %v5850_v42, %v2406_v34  ;;  %v1786_v42 = vmul.f32 %v5900_v55, %v1776_v47 }
 0x2f1   :  { %v2409_v17 = vpop.f32.mrf.mxu0  ;;  %v5960_v5 = vpop.f32.mrf.mxu1 }
 0x2f2   :  { %v2471_v8 = vadd.f32 %v5860_v11, %v2408_v50  ;;  %v2410_v39 = vadd.f32 %v2409_v17, %v5933_v43  ;;  %v4254_v11 = vpop.eup %4253  ;;  %v1796_v31 = vadd.f32 %v5909_v12, %v1786_v42 }
 0x2f3   :  { %v2413_v60 = vpop.f32.mrf.mxu0  ;;  %v4256_v28 = vpop.eup %4255  ;;  %v2610_v44 = vmul.f32 %v4254_v11, %v2469_v41 }
 0x2f4   :  { %v2473_v52 = vadd.f32 %v5866_v35, %v2410_v39  ;;  %v2612_v16 = vmul.f32 %v4250_v2, %v2471_v8  ;;  %v2609_v18 = vmul.f32 %v4256_v28, %v2467_v29  ;;  %v2414_v32 = vadd.f32 %v2413_v60, %v5939_v38  ;;  %v5967_v35 = vpop.f32.mrf.mxu1  ;;  %v4258_v55 = vpop.eup %4257 }
 0x2f5   :  { %v2415_v37 = vpop.f32.mrf.mxu0  ;;  %v4260_v1 = vpop.eup %4259  ;;  %v3347_v26 = vmul.f32 -1.442695, %v1796_v31  ;;  %v1815_v29 = vadd.f32 1.0, %v4258_v55 }
 0x2f6   :  { %v2613_v45 = vmul.f32 %v4252_v63, %v2473_v52  ;;  %v2416_v20 = vadd.f32 %v2415_v37, %v5933_v43  ;;  %v2675_v54 = vpack.c.bf16 %v2612_v16, %v2609_v18  ;;  %v4262_v34 = vpop.eup %4261  ;;  %v2477_v53 = vadd.f32 %v5874_v25, %v2414_v32  ;;  %v5976_v50 = vpop.f32.mrf.mxu1 }
 0x2f7   :  { %v2417_v62 = vpop.f32.mrf.mxu0  ;;  %v4264_v33 = vpop.eup %4263  ;;  %4283 = vpow2.f32 %v3347_v26 }
 0x2f8   :  { %v2418_v49 = vadd.f32 %v2417_v62, %v5939_v38  ;;  %v2676_v22 = vpack.c.bf16 %v2613_v45, %v2610_v44  ;;  %v2479_v59 = vadd.f32 %v5879_v24, %v2416_v20  ;;  %v4266_v12 = vpop.eup %4265  ;;  %v3573_v2 = vpop.f32.mrf.mxu1  ;;  %4285 = vrcp.f32 %v1815_v29 }
 0x2f9   :  { %v2419_v19 = vpop.f32.mrf.mxu0  ;;  %v4268_v17 = vpop.eup %4267  ;;  %v2615_v39 = vmul.f32 %v4266_v12, %v2477_v53  ;;  %v3574_v53 = vadd.f32 %v3573_v2, %v5976_v50 }
 0x2fa   :  { %v2481_v3 = vadd.f32 %v5887_v15, %v2418_v49  ;;  %v2420_v6 = vadd.f32 %v2419_v19, %v5933_v43  ;;  %2864 = vmatprep.mubr.bf16.mxu1 %v2676_v22  ;;  %v2616_v41 = vmul.f32 %v4264_v33, %v2479_v59  ;;  %v4270_v60 = vpop.eup %4269  ;;  %v3575_v45 = vpop.f32.mrf.mxu1 }
 0x2fb   :  { %v2423_v27 = vpop.f32.mrf.mxu0  ;;  %2865 = vmatmul.mubr.bf16.vlgmr.msra.gmra.mxu1 %v2675_v54  ;;  %v4272_v63 = vpop.eup %4271 }
 0x2fc   :  { %v2483_v47 = vadd.f32 %v5893_v61, %v2420_v6  ;;  %v2618_v14 = vmul.f32 %v4262_v34, %v2481_v3  ;;  %v2424_v4 = vadd.f32 %v2423_v27, %v5939_v38  ;;  %v1816_v61 = vadd.f32 1.0, %v4260_v1  ;;  %v4274_v42 = vpop.eup %4273  ;;  %v3576_v55 = vpop.f32.mrf.mxu1 }
 0x2fd   :  { %v2425_v24 = vpop.f32.mrf.mxu0  ;;  %v4276_v28 = vpop.eup %4275  ;;  %v1818_v22 = vadd.f32 1.0, %v4272_v63 }
 0x2fe   :  { %v2619_v15 = vmul.f32 %v4268_v17, %v2483_v47  ;;  %v2426_v8 = vadd.f32 %v2425_v24, %v5933_v43  ;;  %v2678_v9 = vpack.c.bf16 %v2618_v14, %v2615_v39  ;;  %v2487_v44 = vadd.f32 %v5905_v7, %v2424_v4  ;;  %v3578_v54 = vpop.f32.mrf.mxu1 }
 0x2ff   :  { %v2427_v25 = vpop.f32.mrf.mxu0  ;;  %4287 = vrcp.f32 %v1816_v61  ;;  %v1981_v7 = vrot.slane %v5928_v21, %v1779_v57  ;;  %v3577_v47 = vadd.f32 %v3576_v55, %v3575_v45  ;;  %v2958_v55 = vld [vmem:[%s6115_s13 + $0x60] sm:$0xff] }
 0x300   :  { %v2428_v13 = vadd.f32 %v2427_v25, %v5939_v38  ;;  %v2679_v23 = vpack.c.bf16 %v2619_v15, %v2616_v41  ;;  %v2489_v11 = vadd.f32 %v5916_v46, %v2426_v8  ;;  %v4278_v38 = vpop.eup %4277  ;;  %v3579_v33 = vpop.f32.mrf.mxu1 }
 0x301   :  { %v2429_v52 = vpop.f32.mrf.mxu0  ;;  %v4280_v18 = vpop.eup %4279  ;;  %v2621_v46 = vmul.f32 %v4278_v38, %v2487_v44  ;;  %v2538_v41 = vadd.f32 %v3574_v53, %v1981_v7  ;;  %v2541_v39 = vadd.f32 %v3577_v47, %v1981_v7  ;;  %v3580_v2 = vadd.f32 %v3579_v33, %v3578_v54  ;;  %v2949_v54 = vld [vmem:[%s6115_s13 + $0x18] sm:$0xff] }
 0x302   :  { %v2491_v16 = vadd.f32 %v5922_v36, %v2428_v13  ;;  %v2430_v37 = vadd.f32 %v2429_v52, %v5933_v43  ;;  %2872 = vmatprep.mubr.bf16.mxu1 %v2679_v23  ;;  %v2622_v62 = vmul.f32 %v4276_v28, %v2489_v11  ;;  %v1817_v36 = vadd.f32 1.0, %v4270_v60  ;;  %v4282_v19 = vpop.eup %4281  ;;  %v3581_v17 = vpop.f32.mrf.mxu1 }
 0x303   :  { %2873 = vmatmul.mubr.bf16.gmra.mxu1 %v2678_v9  ;;  %v3568_v43 = vadd.f32 %v5951_v56, %v5945_v51  ;;  %v1819_v57 = vadd.f32 1.0, %v4282_v19  ;;  %v2546_v9 = vadd.f32 %v3580_v2, %v1981_v7  ;;  %v2948_v19 = vld [vmem:[%s6115_s13 + $0x10] sm:$0xff] }
 0x304   :  { %v2493_v20 = vadd.f32 %v5935_v10, %v2430_v37  ;;  %v2624_v32 = vmul.f32 %v4274_v42, %v2491_v16  ;;  %v3571_v10 = vadd.f32 %v5967_v35, %v5960_v5  ;;  %4289 = vrcp.f32 %v1817_v36  ;;  %v4284_v59 = vpop.eup %4283  ;;  %v3582_v4 = vpop.f32.mrf.mxu1  ;;  %v2957_v36 = vld [vmem:[%s6115_s13 + $0x58] sm:$0xff] }
 0x305   :  { %v2530_v34 = vadd.f32 %v3568_v43, %v1981_v7  ;;  %4291 = vrcp.f32 %v1818_v22  ;;  %v4286_v21 = vpop.eup %4285  ;;  %v1820_v5 = vadd.f32 1.0, %v4284_v59  ;;  %v3583_v61 = vadd.f32 %v3582_v4, %v3581_v17  ;;  %v2956_v43 = vld [vmem:[%s6115_s13 + $0x50] sm:$0xff]  ;;  %v2953_v22 = vld [vmem:[%s6115_s13 + $0x38] sm:$0xff]  ;;  %v2946_v59 = vld [vmem:[%s6115_s13] sm:$0xff] }
 0x306   :  { %v2625_v40 = vmul.f32 %v4280_v18, %v2493_v20  ;;  %v2681_v31 = vpack.c.bf16 %v2624_v32, %v2621_v46  ;;  %v2533_v3 = vadd.f32 %v3571_v10, %v1981_v7  ;;  %4293 = vrcp.f32 %v1819_v57  ;;  %v2960_v46 = vld [vmem:[%s6115_s13 + $0x70] sm:$0xff]  ;;  %v2951_v10 = vld [vmem:[%s6115_s13 + $0x28] sm:$0xff] }
 0x307   :  { %4295 = vrcp.f32 %v1820_v5  ;;  %v2549_v37 = vadd.f32 %v3583_v61, %v1981_v7  ;;  %v2954_v7 = vld [vmem:[%s6115_s13 + $0x40] sm:$0xff] }
 0x308   :  { %v2682_v49 = vpack.c.bf16 %v2625_v40, %v2622_v62  ;;  %v2961_v40 = vld [vmem:[%s6115_s13 + $0x78] sm:$0xff] }
 0x309   :  { %3882 = vmatprep.subr.mxu1 %v2961_v40  ;;  %3923 = vmatprep.subr.mxu0 %v2961_v40 }
 0x30a   :  { %2880 = vmatprep.mubr.bf16.mxu1 %v2682_v49  ;;  %3883 = vmatpush3.msra.mxu1 %v2961_v40  ;;  %v2955_v49 = vld [vmem:[%s6115_s13 + $0x48] sm:$0xff] }
 0x30b   :  { %v2586_v1 = vpop.f32.mrf.mxu0  ;;  %2881 = vmatmul.mubr.bf16.gmra.mxu1 %v2681_v31  ;;  %3884 = vmatprep.subr.mxu1 %v2960_v46  ;;  %v2952_v31 = vld [vmem:[%s6115_s13 + $0x30] sm:$0xff] }
 0x30c   :  { %v2587_v56 = vadd.f32 %v2586_v1, %v2530_v34  ;;  %v4288_v35 = vpop.eup %4287  ;;  %3885 = vmatpush3.msra.mxu1 %v2960_v46  ;;  %v2950_v1 = vld [vmem:[%s6115_s13 + $0x20] sm:$0xff]  ;;  %v2947_v34 = vld [vmem:[%s6115_s13 + $0x8] sm:$0xff] }
 0x30d   :  { %v3844_v51 = vpop.f32.mrf.mxu0 }
 0x30e   :  { %v2611_v12 = vmul.f32 %v4286_v21, %v2587_v56 }
 0x30f   :  { %v2589_v6 = vpop.f32.mrf.mxu0 }
 0x310   :  { %v2590_v27 = vadd.f32 %v2589_v6, %v2533_v3 }
 0x311   :  { %v3845_v48 = vpop.f32.mrf.mxu0  ;;  %v4290_v50 = vpop.eup %4289 }
 0x312   :  { %v2614_v26 = vmul.f32 %v4288_v35, %v2590_v27  ;;  %v4292_v60 = vpop.eup %4291  ;;  %v4314_v27 = vld [vmem:[%s6111_s11 + $0x8] sm:$0x3] }
 0x313   :  { %v2594_v14 = vpop.f32.mrf.mxu0  ;;  %v4294_v44 = vpop.eup %4293  ;;  %v2687_v5 = vrot.slane %v4314_v27, %v5169_v58 }
 0x314   :  { %v2677_v24 = vpack.c.bf16 %v2614_v26, %v2611_v12  ;;  %v2595_v8 = vadd.f32 %v2594_v14, %v2538_v41  ;;  %v4296_v38 = vpop.eup %4295 }
 0x315   :  { %v3848_v15 = vpop.f32.mrf.mxu0 }
 0x316   :  { %3871 = vmatmul.mubr.bf16.vlgmr.msra.gmra.mxu0 %v2677_v24  ;;  %v2617_v23 = vmul.f32 %v4290_v50, %v2595_v8 }
 0x317   :  { %v2597_v25 = vpop.f32.mrf.mxu0  ;;  %3874 = vmatprep.mubr.msk.bf16.mxu0 %vm4317_vm0, %v4316_v0  ;;  %3924 = vmatpush3.msra.mxu0 %v2961_v40 }
 0x318   :  { %v2598_v29 = vadd.f32 %v2597_v25, %v2541_v39  ;;  %3925 = vmatprep.subr.mxu0 %v2960_v46 }
 0x319   :  { %v3849_v13 = vpop.f32.mrf.mxu0  ;;  %3926 = vmatpush3.msra.mxu0 %v2960_v46 }
 0x31a   :  { %v2620_v63 = vmul.f32 %v4292_v60, %v2598_v29 }
 0x31b   :  { %v2602_v52 = vpop.f32.mrf.mxu0 }
 0x31c   :  { %v2680_v42 = vpack.c.bf16 %v2620_v63, %v2617_v23  ;;  %v2603_v16 = vadd.f32 %v2602_v52, %v2546_v9 }
 0x31d   :  { %v3852_v11 = vpop.f32.mrf.mxu0 }
 0x31e   :  { %3875 = vmatmul.mubr.bf16.gmra.mxu0 %v2680_v42  ;;  %v2623_v18 = vmul.f32 %v4294_v44, %v2603_v16 }
 0x31f   :  { %v2605_v28 = vpop.f32.mrf.mxu0  ;;  %3878 = vmatprep.mubr.msk.bf16.mxu0 %vm4317_vm0, %v4316_v0  ;;  %v2959_v0 = vld [vmem:[%s6115_s13 + $0x68] sm:$0xff] }
 0x320   :  { %v2606_v45 = vadd.f32 %v2605_v28, %v2549_v37  ;;  %3886 = vmatprep.subr.mxu1 %v2959_v0  ;;  %3927 = vmatprep.subr.mxu0 %v2959_v0 }
 0x321   :  { %v3853_v20 = vpop.f32.mrf.mxu0  ;;  %3887 = vmatpush3.msra.mxu1 %v2959_v0  ;;  %3928 = vmatpush3.msra.mxu0 %v2959_v0 }
 0x322   :  { %v2626_v32 = vmul.f32 %v4296_v38, %v2606_v45  ;;  %3888 = vmatprep.subr.mxu1 %v2958_v55  ;;  %3929 = vmatprep.subr.mxu0 %v2958_v55 }
 0x323   :  { %3889 = vmatpush3.msra.mxu1 %v2958_v55  ;;  %3930 = vmatpush3.msra.mxu0 %v2958_v55 }
 0x324   :  { %v2683_v62 = vpack.c.bf16 %v2626_v32, %v2623_v18  ;;  %3890 = vmatprep.subr.mxu1 %v2957_v36  ;;  %3931 = vmatprep.subr.mxu0 %v2957_v36 }
 0x325   :  { %3891 = vmatpush3.msra.mxu1 %v2957_v36  ;;  %3932 = vmatpush3.msra.mxu0 %v2957_v36 }
 0x326   :  { %3879 = vmatmul.mubr.bf16.gmra.mxu0 %v2683_v62  ;;  %3892 = vmatprep.subr.mxu1 %v2956_v43 }
 0x327   :  { %3933 = vmatprep.subr.mxu0 %v2956_v43  ;;  %3893 = vmatpush3.msra.mxu1 %v2956_v43 }
 0x328   :  { %3934 = vmatpush3.msra.mxu0 %v2956_v43  ;;  %3894 = vmatprep.subr.mxu1 %v2955_v49 }
 0x329   :  { %3935 = vmatprep.subr.mxu0 %v2955_v49  ;;  %3895 = vmatpush3.msra.mxu1 %v2955_v49 }
 0x32a   :  { %3936 = vmatpush3.msra.mxu0 %v2955_v49  ;;  %3896 = vmatprep.subr.mxu1 %v2954_v7 }
 0x32b   :  { %3937 = vmatprep.subr.mxu0 %v2954_v7  ;;  %3897 = vmatpush3.msra.mxu1 %v2954_v7 }
 0x32c   :  { %3938 = vmatpush3.msra.mxu0 %v2954_v7  ;;  %3898 = vmatprep.subr.mxu1 %v2953_v22 }
 0x32d   :  { %3939 = vmatprep.subr.mxu0 %v2953_v22  ;;  %3899 = vmatpush3.msra.mxu1 %v2953_v22 }
 0x32e   :  { %3940 = vmatpush3.msra.mxu0 %v2953_v22  ;;  %3900 = vmatprep.subr.mxu1 %v2952_v31 }
 0x32f   :  { %3941 = vmatprep.subr.mxu0 %v2952_v31  ;;  %3901 = vmatpush3.msra.mxu1 %v2952_v31 }
 0x330   :  { %3942 = vmatpush3.msra.mxu0 %v2952_v31  ;;  %3902 = vmatprep.subr.mxu1 %v2951_v10 }
 0x331   :  { %3943 = vmatprep.subr.mxu0 %v2951_v10  ;;  %3903 = vmatpush3.msra.mxu1 %v2951_v10 }
 0x332   :  { %3944 = vmatpush3.msra.mxu0 %v2951_v10  ;;  %3904 = vmatprep.subr.mxu1 %v2950_v1 }
 0x333   :  { %3945 = vmatprep.subr.mxu0 %v2950_v1  ;;  %3905 = vmatpush3.msra.mxu1 %v2950_v1 }
 0x334   :  { %3946 = vmatpush3.msra.mxu0 %v2950_v1  ;;  %3906 = vmatprep.subr.mxu1 %v2949_v54 }
 0x335   :  { %3947 = vmatprep.subr.mxu0 %v2949_v54  ;;  %3907 = vmatpush3.msra.mxu1 %v2949_v54 }
 0x336   :  { %3948 = vmatpush3.msra.mxu0 %v2949_v54  ;;  %3908 = vmatprep.subr.mxu1 %v2948_v19 }
 0x337   :  { %3949 = vmatprep.subr.mxu0 %v2948_v19  ;;  %3909 = vmatpush3.msra.mxu1 %v2948_v19 }
 0x338   :  { %3950 = vmatpush3.msra.mxu0 %v2948_v19  ;;  %3910 = vmatprep.subr.mxu1 %v2947_v34 }
 0x339   :  { %3951 = vmatprep.subr.mxu0 %v2947_v34  ;;  %3911 = vmatpush3.msra.mxu1 %v2947_v34 }
 0x33a   :  { %3952 = vmatpush3.msra.mxu0 %v2947_v34  ;;  %3912 = vmatprep.subr.mxu1 %v2946_v59 }
 0x33b   :  { %3953 = vmatprep.subr.mxu0 %v2946_v59  ;;  %3913 = vmatpush3.msra.mxu1 %v2946_v59 }
 0x33c   :  { %3954 = vmatpush3.msra.mxu0 %v2946_v59 }
 0x3bb   :  { %v3611_v51 = vpop.f32.mrf.mxu1 }
 0x3bd   :  { %v3612_v56 = vpop.f32.mrf.mxu1 }
 0x3be   :  { %v3613_v53 = vadd.f32 %v3612_v56, %v3611_v51 }
 0x3bf   :  { %v3614_v3 = vpop.f32.mrf.mxu1 }
 0x3c0   :  { %v2867_v12 = vadd.f32 %v3613_v53, %v2687_v5 }
 0x3c1   :  { %v3615_v6 = vpop.f32.mrf.mxu1 }
 0x3c2   :  { %v3616_v48 = vadd.f32 %v3615_v6, %v3614_v3 }
 0x3c3   :  { %v3617_v33 = vpop.f32.mrf.mxu1 }
 0x3c4   :  { %v2870_v41 = vadd.f32 %v3616_v48, %v2687_v5  ;;  %v3202_v48 = vsub.s32 6, %v4530_v30 }
 0x3c5   :  { %v3618_v57 = vpop.f32.mrf.mxu1 }
 0x3c6   :  { %v3619_v24 = vadd.f32 %v3618_v57, %v3617_v33 }
 0x3c7   :  { %v3620_v21 = vpop.f32.mrf.mxu1 }
 0x3c8   :  { %v2875_v2 = vadd.f32 %v3619_v24, %v2687_v5 }
 0x3c9   :  { %v3621_v35 = vpop.f32.mrf.mxu1 }
 0x3ca   :  { %v3622_v25 = vadd.f32 %v3621_v35, %v3620_v21 }
 0x3cb   :  { %v3623_v47 = vpop.f32.mrf.mxu1 }
 0x3cc   :  { %v2878_v63 = vadd.f32 %v3622_v25, %v2687_v5 }
 0x3cd   :  { %v3624_v8 = vpop.f32.mrf.mxu1 }
 0x3ce   :  { %v3625_v61 = vadd.f32 %v3624_v8, %v3623_v47 }
 0x3cf   :  { %v3626_v29 = vpop.f32.mrf.mxu1 }
 0x3d0   :  { %v2883_v28 = vadd.f32 %v3625_v61, %v2687_v5 }
 0x3d1   :  { %v3627_v9 = vpop.f32.mrf.mxu1 }
 0x3d2   :  { %v3628_v37 = vadd.f32 %v3627_v9, %v3626_v29 }
 0x3d4   :  { %v2886_v18 = vadd.f32 %v3628_v37, %v2687_v5 }
 0x3d6   :  { %v2923_v26 = vpop.f32.mrf.mxu0 }
 0x3d7   :  { %v6051_v17 = vadd.f32 %v2923_v26, %v2867_v12 }
 0x3d8   :  { %v3872_v14 = vpop.f32.mrf.mxu0 }
 0x3d9   :  { %3914 = vmatprep.mubr.f32.mxu1 %v6051_v17  ;;  %v3057_v15 = vmul.f32 %v6051_v17, %v6051_v17 }
 0x3da   :  { %v2926_v39 = vpop.f32.mrf.mxu0 }
 0x3db   :  { %v6056_v4 = vadd.f32 %v2926_v39, %v2870_v41  ;;  %3955 = vmatprep.mubr.f32.mxu0 %v3057_v15  ;;  %v3212_v15 = vsub.s32 7, %v4530_v30 }
 0x3dc   :  { %v3873_v58 = vpop.f32.mrf.mxu0 }
 0x3dd   :  { %v3058_v50 = vmul.f32 %v6056_v4, %v6056_v4  ;;  %3915 = vmatmul.mubr.f32.vlgmr.msra.gmra.mxu1 %v6056_v4  ;;  %v4315_v58 = vld [vmem:[%s6111_s11] sm:$0xff] }
 0x3de   :  { %v2931_v60 = vpop.f32.mrf.mxu0  ;;  %v3203_v25 = vrot.slane %v4315_v58, %v3202_v48  ;;  %v3213_v9 = vrot.slane %v4315_v58, %v3212_v15 }
 0x3df   :  { %v6061_v13 = vadd.f32 %v2931_v60, %v2875_v2  ;;  %3956 = vmatmul.mubr.f32.vlgmr.msra.gmra.mxu0 %v3058_v50 }
 0x3e0   :  { %v3876_v23 = vpop.f32.mrf.mxu0 }
 0x3e1   :  { %3917 = vmatprep.mubr.f32.mxu1 %v6061_v13  ;;  %v3059_v52 = vmul.f32 %v6061_v13, %v6061_v13 }
 0x3e2   :  { %v2934_v42 = vpop.f32.mrf.mxu0 }
 0x3e3   :  { %v6066_v11 = vadd.f32 %v2934_v42, %v2878_v63  ;;  %3958 = vmatprep.mubr.f32.mxu0 %v3059_v52 }
 0x3e4   :  { %v3877_v16 = vpop.f32.mrf.mxu0 }
 0x3e5   :  { %3918 = vmatmul.mubr.f32.gmra.mxu1 %v6066_v11  ;;  %v3060_v44 = vmul.f32 %v6066_v11, %v6066_v11 }
 0x3e6   :  { %v2939_v45 = vpop.f32.mrf.mxu0 }
 0x3e7   :  { %v6071_v38 = vadd.f32 %v2939_v45, %v2883_v28  ;;  %3959 = vmatmul.mubr.f32.gmra.mxu0 %v3060_v44 }
 0x3e8   :  { %v3880_v20 = vpop.f32.mrf.mxu0 }
 0x3e9   :  { %3920 = vmatprep.mubr.f32.mxu1 %v6071_v38  ;;  %v3061_v32 = vmul.f32 %v6071_v38, %v6071_v38 }
 0x3ea   :  { %v2942_v62 = vpop.f32.mrf.mxu0 }
 0x3eb   :  { %v6076_v40 = vadd.f32 %v2942_v62, %v2886_v18  ;;  %3961 = vmatprep.mubr.f32.mxu0 %v3061_v32 }
 0x3ec   :  { %v3881_v46 = vpop.f32.mrf.mxu0 }
 0x3ed   :  { %3921 = vmatmul.mubr.f32.gmra.mxu1 %v6076_v40  ;;  %v3062_v0 = vmul.f32 %v6076_v40, %v6076_v40 }
 0x3ef   :  { %3962 = vmatmul.mubr.f32.gmra.mxu0 %v3062_v0 }
 0x49d   :  { %v3916_v55 = vpop.f32.mrf.mxu1 }
 0x49e   :  { %v3159_v36 = vmul.f32 %v3916_v55, %v3916_v55  ;;  %v3177_v39 = vsub.f32 %v6056_v4, %v3916_v55 }
 0x49f   :  { %v3028_v43 = vpop.f32.mrf.mxu1  ;;  %v3957_v49 = vpop.f32.mrf.mxu0 }
 0x4a0   :  { %v3158_v7 = vmul.f32 %v3028_v43, %v3028_v43  ;;  %v3165_v22 = vsub.f32 %v3957_v49, %v3159_v36  ;;  %v3176_v60 = vsub.f32 %v6051_v17, %v3028_v43 }
 0x4a1   :  { %v3129_v31 = vpop.f32.mrf.mxu0 }
 0x4a2   :  { %v3171_v10 = vmax.f32 %v3165_v22, 0.0  ;;  %v3164_v1 = vsub.f32 %v3129_v31, %v3158_v7 }
 0x4a4   :  { %v3183_v54 = vadd.f32 1e-05, %v3171_v10  ;;  %v3170_v19 = vmax.f32 %v3164_v1, 0.0 }
 0x4a5   :  { %v3919_v34 = vpop.f32.mrf.mxu1 }
 0x4a6   :  { %4297 = vrsqrt.f32 %v3183_v54  ;;  %v3182_v59 = vadd.f32 1e-05, %v3170_v19  ;;  %v3161_v51 = vmul.f32 %v3919_v34, %v3919_v34  ;;  %v3179_v44 = vsub.f32 %v6066_v11, %v3919_v34 }
 0x4a7   :  { %v3038_v56 = vpop.f32.mrf.mxu1  ;;  %v3960_v3 = vpop.f32.mrf.mxu0 }
 0x4a8   :  { %4299 = vrsqrt.f32 %v3182_v59  ;;  %v3160_v6 = vmul.f32 %v3038_v56, %v3038_v56  ;;  %v3167_v33 = vsub.f32 %v3960_v3, %v3161_v51  ;;  %v3178_v18 = vsub.f32 %v6061_v13, %v3038_v56 }
 0x4a9   :  { %v3139_v57 = vpop.f32.mrf.mxu0 }
 0x4aa   :  { %v3173_v21 = vmax.f32 %v3167_v33, 0.0  ;;  %v3166_v53 = vsub.f32 %v3139_v57, %v3160_v6 }
 0x4ac   :  { %v3185_v27 = vadd.f32 1e-05, %v3173_v21  ;;  %v3172_v5 = vmax.f32 %v3166_v53, 0.0 }
 0x4ad   :  { %v3922_v35 = vpop.f32.mrf.mxu1 }
 0x4ae   :  { %4301 = vrsqrt.f32 %v3185_v27  ;;  %v3184_v12 = vadd.f32 1e-05, %v3172_v5  ;;  %v3163_v47 = vmul.f32 %v3922_v35, %v3922_v35  ;;  %v3181_v43 = vsub.f32 %v6076_v40, %v3922_v35 }
 0x4af   :  { %v3048_v26 = vpop.f32.mrf.mxu1  ;;  %v3963_v14 = vpop.f32.mrf.mxu0 }
 0x4b0   :  { %4303 = vrsqrt.f32 %v3184_v12  ;;  %v3162_v24 = vmul.f32 %v3048_v26, %v3048_v26  ;;  %v3169_v41 = vsub.f32 %v3963_v14, %v3163_v47  ;;  %v3180_v11 = vsub.f32 %v6071_v38, %v3048_v26 }
 0x4b1   :  { %v3149_v8 = vpop.f32.mrf.mxu0 }
 0x4b2   :  { %v3175_v50 = vmax.f32 %v3169_v41, 0.0  ;;  %v3168_v2 = vsub.f32 %v3149_v8, %v3162_v24 }
 0x4b3   :  { %v4298_v29 = vpop.eup %4297 }
 0x4b4   :  { %v3195_v23 = vmul.f32 %v4298_v29, %v3177_v39  ;;  %v3187_v61 = vadd.f32 1e-05, %v3175_v50  ;;  %v3174_v63 = vmax.f32 %v3168_v2, 0.0 }
 0x4b5   :  { %v4300_v52 = vpop.eup %4299 }
 0x4b6   :  { %v3205_v42 = vmul.f32 %v3203_v25, %v3195_v23  ;;  %v3194_v30 = vmul.f32 %v4300_v52, %v3176_v60  ;;  %4305 = vrsqrt.f32 %v3187_v61  ;;  %v3186_v16 = vadd.f32 1e-05, %v3174_v63 }
 0x4b8   :  { %v3204_v4 = vmul.f32 %v3203_v25, %v3194_v30  ;;  %4307 = vrsqrt.f32 %v3186_v16  ;;  %v3215_v37 = vadd.f32 %v3213_v9, %v3205_v42 }
 0x4ba   :  { %v3214_v28 = vadd.f32 %v3213_v9, %v3204_v4 }
 0x4bb   :  { %v4302_v45 = vpop.eup %4301 }
 0x4bc   :  { %v3471_v20 = vpack.c.bf16 %v3215_v37, %v3214_v28  ;;  %v3197_v17 = vmul.f32 %v4302_v45, %v3179_v44 }
 0x4bd   :  { %v4304_v32 = vpop.eup %4303 }
 0x4be   :  { %3472 = vst [vmem:[%s6116_s15] sm:$0xff] %v3471_v20   ;;  %v3207_v62 = vmul.f32 %v3203_v25, %v3197_v17  ;;  %v3196_v46 = vmul.f32 %v4304_v32, %v3178_v18 }
 0x4c0   :  { %v3206_v0 = vmul.f32 %v3203_v25, %v3196_v46  ;;  %v3217_v55 = vadd.f32 %v3213_v9, %v3207_v62 }
 0x4c2   :  { %v3216_v36 = vadd.f32 %v3213_v9, %v3206_v0 }
 0x4c3   :  { %v4306_v49 = vpop.eup %4305 }
 0x4c4   :  { %v3476_v7 = vpack.c.bf16 %v3217_v55, %v3216_v36  ;;  %v3199_v22 = vmul.f32 %v4306_v49, %v3181_v43 }
 0x4c5   :  { %v4308_v31 = vpop.eup %4307 }
 0x4c6   :  { %3483 = vst [vmem:[%s6116_s15 + $0x8] sm:$0xff] %v3476_v7   ;;  %v3209_v13 = vmul.f32 %v3203_v25, %v3199_v22  ;;  %v3198_v10 = vmul.f32 %v4308_v31, %v3180_v11 }
 0x4c8   :  { %v3208_v1 = vmul.f32 %v3203_v25, %v3198_v10  ;;  %v3219_v54 = vadd.f32 %v3213_v9, %v3209_v13 }
 0x4ca   :  { %v3218_v19 = vadd.f32 %v3213_v9, %v3208_v1 }
 0x4cc   :  { %v3481_v34 = vpack.c.bf16 %v3219_v54, %v3218_v19 }
 0x4ce   :  { %3484 = vst [vmem:[%s6116_s15 + $0x10] sm:$0xff] %v3481_v34  }

// kernel: _lambda_.21
= control target key start
LH: loop header
LB: loop body
LE: loop exit
PB: predicated region body
PF: predicated region fallthrough
CT: control target
= control target key end

     0   :  { %vm39_vm0 = vcmask 523264   ;;  %vm146_vm1 = vcmask 261120   ;;  %vm228_vm2 = vcmask 7168   ;;  %s383_s1 = inlined_call_operand.vmem [shape: f32[64,32], index: 1, kind: input, shape index: {}]   ;;  %s384_s0 = inlined_call_operand.vmem [shape: f32[16,64], index: 0, kind: input, shape index: {}]   ;;  %s385_s3 = inlined_call_operand.vmem [shape: f32[32,1], index: 3, kind: input, shape index: {}]   ;;  %s386_s4 = inlined_call_operand.<no memory space> [shape: f32[1,1], index: 4, kind: input, shape index: {}]   ;;  %s387_s2 = inlined_call_operand.vmem [shape: f32[1,32], index: 2, kind: input, shape index: {}]   ;;  %s388_s5 = inlined_call_operand.vmem [shape: f32[16,1], index: 5, kind: output, shape index: {}]  }
   0x1   :  { %v31_v0 = vld [vmem:[%s383_s1 + $0x38] sm:$0xff]  ;;  %v30_v1 = vld [vmem:[%s383_s1 + $0x30] sm:$0xff]  ;;  %v29_v2 = vld [vmem:[%s383_s1 + $0x28] sm:$0xff]  ;;  %v10_v14 = vstv %s386_s4 }
   0x2   :  { %259 = vmatprep.subr.mxu0 %v31_v0  ;;  %v22_v3 = vld [vmem:[%s384_s0] sm:$0xff]  ;;  %v27_v5 = vld [vmem:[%s383_s1 + $0x18] sm:$0xff]  ;;  %v26_v6 = vld [vmem:[%s383_s1 + $0x10] sm:$0xff]  ;;  %11 = vst [vmem:[#allocation2] sm:$0x1] %v10_v14 }
   0x3   :  { %260 = vmatpush3.msra.mxu0 %v31_v0  ;;  %275 = vmatprep.mubr.msk.f32.mxu0 %vm39_vm0, %v22_v3  ;;  %v28_v4 = vld [vmem:[%s383_s1 + $0x20] sm:$0xff]  ;;  %v25_v7 = vld [vmem:[%s383_s1 + $0x8] sm:$0xff]  ;;  %v138_v10 = vld [vmem:[%s385_s3 + $0x18] sm:$0xff] }
   0x4   :  { %261 = vmatprep.subr.mxu0 %v30_v1  ;;  %v24_v8 = vld [vmem:[%s383_s1] sm:$0xff]  ;;  %v23_v9 = vld [vmem:[%s384_s0 + $0x8] sm:$0xff]  ;;  %278 = vmatprep.subr.mxu1 %v138_v10  ;;  %v137_v11 = vld [vmem:[%s385_s3 + $0x10] sm:$0xff] }
   0x5   :  { %262 = vmatpush3.msra.mxu0 %v30_v1  ;;  %279 = vmatpush3.msra.mxu1 %v138_v10  ;;  %v136_v12 = vld [vmem:[%s385_s3 + $0x8] sm:$0xff]  ;;  %v135_v13 = vld [vmem:[%s385_s3] sm:$0xff] }
   0x6   :  { %263 = vmatprep.subr.mxu0 %v29_v2  ;;  %280 = vmatprep.subr.mxu1 %v137_v11  ;;  %v235_v15 = vld [vmem:[%s387_s2] ss:$0 sm:$0xff] }
   0x7   :  { %264 = vmatpush3.msra.mxu0 %v29_v2  ;;  %281 = vmatpush3.msra.mxu1 %v137_v11 }
   0x8   :  { %265 = vmatprep.subr.mxu0 %v28_v4  ;;  %282 = vmatprep.subr.mxu1 %v136_v12 }
   0x9   :  { %266 = vmatpush3.msra.mxu0 %v28_v4  ;;  %283 = vmatpush3.msra.mxu1 %v136_v12  ;;  %v240_v30 = vld [vmem:[#allocation2] ss:$0 sm:$0xff] }
   0xa   :  { %267 = vmatprep.subr.mxu0 %v27_v5  ;;  %284 = vmatprep.subr.mxu1 %v135_v13 }
   0xb   :  { %268 = vmatpush3.msra.mxu0 %v27_v5  ;;  %285 = vmatpush3.msra.mxu1 %v135_v13 }
   0xc   :  { %269 = vmatprep.subr.mxu0 %v26_v6 }
   0xd   :  { %270 = vmatpush3.msra.mxu0 %v26_v6 }
   0xe   :  { %271 = vmatprep.subr.mxu0 %v25_v7 }
   0xf   :  { %272 = vmatpush3.msra.mxu0 %v25_v7 }
  0x10   :  { %273 = vmatprep.subr.mxu0 %v24_v8 }
  0x11   :  { %274 = vmatpush3.msra.mxu0 %v24_v8 }
  0x12   :  { %276 = vmatmul.mubr.msk.f32.vlgmr.msra.gmra.mxu0 %vm39_vm0, %v23_v9 }
  0xd2   :  { %v277_v16 = vpop.f32.mrf.mxu0 }
  0xd3   :  { %v118_v17 = vadd.f32 %v277_v16, %v235_v15 }
  0xd4   :  { %v112_v18 = vpop.f32.mrf.mxu0 }
  0xd5   :  { %v239_v19 = vmul.f32 -1.442695, %v118_v17  ;;  %v113_v20 = vadd.f32 %v235_v15, %v112_v18 }
  0xd7   :  { %289 = vpow2.f32 %v239_v19  ;;  %v238_v21 = vmul.f32 -1.442695, %v113_v20 }
  0xd9   :  { %291 = vpow2.f32 %v238_v21 }
  0xe4   :  { %v290_v22 = vpop.eup %289 }
  0xe5   :  { %v128_v23 = vadd.f32 1.0, %v290_v22 }
  0xe6   :  { %v292_v24 = vpop.eup %291 }
  0xe7   :  { %v127_v25 = vadd.f32 1.0, %v292_v24  ;;  %293 = vrcp.f32 %v128_v23 }
  0xe9   :  { %295 = vrcp.f32 %v127_v25 }
  0xf4   :  { %v294_v26 = vpop.eup %293 }
  0xf5   :  { %v134_v29 = vmul.f32 %v294_v26, %v118_v17 }
  0xf6   :  { %v296_v27 = vpop.eup %295 }
  0xf7   :  { %v133_v28 = vmul.f32 %v296_v27, %v113_v20 }
  0xf9   :  { %286 = vmatprep.mubr.msk.f32.mxu1 %vm146_vm1, %v133_v28 }
  0xfa   :  { %287 = vmatmul.mubr.msk.f32.vlgmr.msra.gmra.mxu1 %vm146_vm1, %v134_v29 }
 0x1ba   :  { %v288_v31 = vpop.f32.mrf.mxu1 }
 0x1bb   :  { %v225_v32 = vadd.f32 %v288_v31, %v240_v30 }
 0x1bc   :  { %v219_v33 = vpop.f32.mrf.mxu1 }
 0x1bd   :  { %230 = vst.msk [vmem:[%s388_s5 + $0x8] sm:$0xff] %vm228_vm2, %v225_v32  ;;  %v220_v34 = vadd.f32 %v240_v30, %v219_v33 }
 0x1bf   :  { %229 = vst.msk [vmem:[%s388_s5] sm:$0xff] %vm228_vm2, %v220_v34 }

</bundles_post_ra>
